<compile_context>
chip_gen: v7x
topology: tpu7x:2x2x1
jax: 0.10.0
libtpu: 0.0.40
codegen_flags: <defaults>
</compile_context>

<pallas_src>
import functools

import jax
import jax.numpy as jnp
from jax.experimental import pallas as pl
from jax.experimental.pallas import tpu as pltpu


def _dot_attention_kernel(a_ref, v_ref, wa_ref, ba_ref, wv_ref, bv_ref, o_ref):
    # a_ref : (tn, a_dim)    audio features for tn (batch, segment) elements
    # v_ref : (tn, HW, C)    spatial video features (native dtype, ideally bf16)
    # wa_ref: (a_dim, hid)   linear_a weight (in x out), activation dtype
    # ba_ref: (1, hid)       linear_a bias, f32
    # wv_ref: (C, hid)       linear_v weight (in x out), activation dtype
    # bv_ref: (1, hid)       linear_v bias, f32
    # o_ref : (tn, C)        attended video features
    tn, hw, c = v_ref.shape
    hid = wa_ref.shape[1]

    a = a_ref[...]                                   # (tn, a_dim), native dtype
    v = v_ref[...]                                   # (tn, HW, C), native dtype

    # Linear projections on the MXU: native-dtype operands, f32 accumulation.
    # Video projection fused across the tn batch -> one (tn*HW, C) x (C, hid) matmul.
    a_fea = jnp.dot(a, wa_ref[...],
                    preferred_element_type=jnp.float32) + ba_ref[...]      # (tn, hid) f32
    v_fea = jnp.dot(v.reshape(tn * hw, c), wv_ref[...],
                    preferred_element_type=jnp.float32) + bv_ref[...]      # (tn*HW, hid) f32
    v_fea = v_fea.reshape(tn, hw, hid)

    # F.normalize(a_fea): x * rsqrt(max(sumsq, 1e-24))  (EUP rsqrt).
    a_fea = a_fea * jax.lax.rsqrt(
        jnp.maximum(jnp.sum(a_fea * a_fea, axis=-1, keepdims=True), 1e-24))

    # v_fea normalization folded into the score. Both reductions below stream the
    # same VMEM-resident v_fea tile once each (no normalized copy is materialized):
    #   d[n,k]  = sum_h a_norm[n,h] * v_fea[n,k,h]
    #   ss[n,k] = sum_h v_fea[n,k,h]^2
    d = jnp.sum(v_fea * a_fea[:, None, :], axis=-1)                        # (tn, HW)
    ss = jnp.sum(v_fea * v_fea, axis=-1)                                   # (tn, HW)
    scores = d * jax.lax.rsqrt(jnp.maximum(ss, 1e-24))                     # cosine in [-1,1]

    # Softmax over spatial positions. Logits are cosine similarities, so exp cannot
    # overflow -> no max-subtraction needed. Denominator reciprocal on the EUP.
    p = jnp.exp(scores)
    p = p * pl.reciprocal(jnp.sum(p, axis=-1, keepdims=True), approx=True)  # (tn, HW) f32

    # Weighted sum of the RAW video features: VPU broadcast-mul (f32 x native dtype
    # promotes to f32) + sublane reduce over HW.
    out = jnp.sum(p[:, :, None] * v, axis=1)                               # (tn, C) f32
    o_ref[...] = out.astype(o_ref.dtype)


def _round_up(x, m):
    return (x + m - 1) // m * m


def _step_vmem_bytes(tn, hw, c, a_dim, hid, v_isz, a_isz, o_isz, w_isz):
    """Approximate per-step VMEM working set (double-buffered blocks + f32 temps)."""
    vid = 2 * tn * hw * c * v_isz                # double-buffered video block
    aud = 2 * tn * a_dim * a_isz
    out = 2 * tn * c * o_isz
    wts = 2 * ((a_dim + c) * hid * w_isz + 2 * hid * 4)
    # f32 temps: v_fea + one transient product over (tn,HW,hid), plus p*v over (tn,HW,C)
    tmp = 2 * tn * hw * hid * 4 + tn * hw * c * 4
    return vid + aud + out + wts + tmp


def _choose_tn(n, fits):
    """Pick tn: prefer divisors of n (no padded video copy), >=4 grid steps, biggest
    block that fits the VMEM budget. tn must be a multiple of 8 or equal n (sublane
    constraint on the (tn, C) output block)."""
    divisors = [t for t in range(1, n + 1)
                if n % t == 0 and (t % 8 == 0 or t == n) and fits(t)]
    for min_steps in (4, 2, 1):
        cand = [t for t in divisors if n // t >= min_steps]
        if cand:
            return max(cand), n                  # no padding needed
    # Fallback (rare): pad N up to a multiple of tn. Padding materializes an extra
    # copy of the video tensor, so this path is avoided whenever a divisor exists.
    tn = 8
    while tn * 2 <= 256 and fits(tn * 2) and _round_up(n, tn * 2) // (tn * 2) >= 2:
        tn *= 2
    return tn, _round_up(n, tn)


@jax.jit
def dot_attention(audio, video, wa, ba, wv, bv):
    bs, seg, a_dim = audio.shape
    _, _, H, W, C = video.shape
    hid = wa.shape[1]
    N = bs * seg
    HW = H * W

    # Match MXU operand dtype to the activations; keep biases in f32.
    wa_c = wa.astype(audio.dtype)
    wv_c = wv.astype(video.dtype)
    ba2 = ba.reshape(1, hid).astype(jnp.float32)
    bv2 = bv.reshape(1, hid).astype(jnp.float32)

    v_isz = jnp.dtype(video.dtype).itemsize
    a_isz = jnp.dtype(audio.dtype).itemsize
    budget = 20 * 1024 * 1024                    # working-set target, well under scoped VMEM

    def fits(t):
        return _step_vmem_bytes(t, HW, C, a_dim, hid, v_isz, a_isz, v_isz, v_isz) <= budget

    tn, n_pad = _choose_tn(N, fits)

    audio2 = audio.reshape(N, a_dim)
    video2 = video.reshape(N, HW, C)
    if n_pad != N:
        # Padded rows: audio projects to the (normalized) bias direction, but the
        # weighted sum uses the zero-padded raw video, so padded outputs are zero
        # and are sliced off below.
        audio2 = jnp.pad(audio2, ((0, n_pad - N), (0, 0)))
        video2 = jnp.pad(video2, ((0, n_pad - N), (0, 0), (0, 0)))

    out = pl.pallas_call(
        _dot_attention_kernel,
        out_shape=jax.ShapeDtypeStruct((n_pad, C), video.dtype),
        grid_spec=pltpu.PrefetchScalarGridSpec(
            num_scalar_prefetch=0,
            grid=(n_pad // tn,),
            in_specs=[
                pl.BlockSpec((tn, a_dim), lambda i: (i, 0)),
                pl.BlockSpec((tn, HW, C), lambda i: (i, 0, 0)),
                pl.BlockSpec((a_dim, hid), lambda i: (0, 0)),   # weights: constant index map
                pl.BlockSpec((1, hid), lambda i: (0, 0)),       #  -> stay VMEM-resident
                pl.BlockSpec((C, hid), lambda i: (0, 0)),
                pl.BlockSpec((1, hid), lambda i: (0, 0)),
            ],
            out_specs=pl.BlockSpec((tn, C), lambda i: (i, 0)),
        ),
        compiler_params=pltpu.CompilerParams(
            dimension_semantics=("parallel",),
            vmem_limit_bytes=32 * 1024 * 1024,
        ),
    )(audio2, video2, wa_c, ba2, wv_c, bv2)

    if n_pad != N:
        out = out[:N]
    return out.reshape(bs, seg, C)


def _reference(audio, video, wa, ba, wv, bv):
    """Pure-JAX f32 reference mirroring the PyTorch forward."""
    audio = audio.astype(jnp.float32)
    video = video.astype(jnp.float32)
    bs, seg, a_dim = audio.shape
    _, _, H, W, C = video.shape
    N, HW = bs * seg, H * W
    a_fea = audio.reshape(N, a_dim) @ wa + ba            # (N, hid)
    a_fea = a_fea[:, None, :]                            # (N, 1, hid)
    video_t = video.reshape(N, HW, C)
    v_fea = video_t @ wv + bv                            # (N, HW, hid)
    a_fea = a_fea / jnp.maximum(jnp.linalg.norm(a_fea, axis=-1, keepdims=True), 1e-12)
    v_fea = v_fea / jnp.maximum(jnp.linalg.norm(v_fea, axis=-1, keepdims=True), 1e-12)
    att = jnp.einsum("nqh,nkh->nqk", a_fea, v_fea)       # (N, 1, HW)
    att = jax.nn.softmax(att, axis=-1)
    out = jnp.einsum("nqk,nkc->nqc", att, video_t)       # (N, 1, C)
    return out.reshape(bs, seg, C)


def _xavier_uniform(key, fan_in, fan_out, dtype=jnp.float32):
    # nn.init.xavier_uniform_ for a Linear weight of shape (out, in), stored
    # pre-transposed as (in, out) for the kernel.
    limit = jnp.sqrt(6.0 / (fan_in + fan_out))
    return jax.random.uniform(key, (fan_in, fan_out), dtype, -limit, limit)


if __name__ == "__main__":
    # Small-but-TPU-friendly shapes implied by the module's forward.
    bs, seg = 2, 8
    H = W = 8
    a_dim, v_dim, hid_dim = 128, 128, 128

    key = jax.random.PRNGKey(0)
    k_audio, k_video, k_wa, k_wv = jax.random.split(key, 4)

    audio = jax.random.normal(k_audio, (bs, seg, a_dim), jnp.float32)
    video = jax.random.normal(k_video, (bs, seg, H, W, v_dim), jnp.float32)

    # Deterministic parameter init: xavier_uniform weights, zero biases.
    wa = _xavier_uniform(k_wa, a_dim, hid_dim)        # (a_dim, hid) == linear_a.weight.T
    ba = jnp.zeros((hid_dim,), jnp.float32)
    wv = _xavier_uniform(k_wv, v_dim, hid_dim)        # (v_dim, hid) == linear_v.weight.T
    bv = jnp.zeros((hid_dim,), jnp.float32)

    # f32 path (exactness check against the PyTorch-equivalent reference).
    out = jax.block_until_ready(dot_attention(audio, video, wa, ba, wv, bv))
    ref = _reference(audio, video, wa, ba, wv, bv)
    assert out.shape == (bs, seg, v_dim), out.shape
    # Tolerance accounts for the EUP approx reciprocal (~2^-12 rel.) in the softmax denom.
    assert jnp.allclose(out, ref, atol=1e-3, rtol=1e-3), float(jnp.max(jnp.abs(out - ref)))

    # bf16 path (the bandwidth-optimal configuration on v5e/v6e): same kernel, halved
    # HBM traffic for the video stream. Compared against the f32 reference on the
    # bf16-rounded inputs with a tolerance matching bf16 precision.
    audio_bf = audio.astype(jnp.bfloat16)
    video_bf = video.astype(jnp.bfloat16)
    out_bf = jax.block_until_ready(dot_attention(audio_bf, video_bf, wa, ba, wv, bv))
    ref_bf = _reference(audio_bf, video_bf, wa, ba, wv, bv)
    assert out_bf.shape == (bs, seg, v_dim), out_bf.shape
    assert jnp.allclose(out_bf.astype(jnp.float32), ref_bf, atol=8e-2, rtol=8e-2), \
        float(jnp.max(jnp.abs(out_bf.astype(jnp.float32) - ref_bf)))

    print("KERNEL_OK")
</pallas_src>

<mosaic_0001>
module attributes {stable_mosaic.version = 11 : i64} {
  func.func @_dot_attention_kernel(%arg0: i32, %arg1: memref<8x128xf32, #tpu.memory_space<vmem>>, %arg2: memref<8x64x128xf32, #tpu.memory_space<vmem>>, %arg3: memref<128x128xf32, #tpu.memory_space<vmem>>, %arg4: memref<1x128xf32, #tpu.memory_space<vmem>>, %arg5: memref<128x128xf32, #tpu.memory_space<vmem>>, %arg6: memref<1x128xf32, #tpu.memory_space<vmem>>, %arg7: memref<8x128xf32, #tpu.memory_space<vmem>>) attributes {dimension_semantics = [#tpu.dimension_semantics<parallel>], iteration_bounds = array<i64: 2>, scalar_prefetch = 0 : i64, scratch_operands = 0 : i64, tpu.core_type = #tpu.core_type<tc>, window_params = [{transform_indices = @transform_0, window_bounds = array<i64: 8, 128>}, {transform_indices = @transform_1, window_bounds = array<i64: 8, 64, 128>}, {pipeline_mode = #tpu.pipeline_mode<synchronous>, transform_indices = @transform_2, window_bounds = array<i64: 128, 128>}, {pipeline_mode = #tpu.pipeline_mode<synchronous>, transform_indices = @transform_3, window_bounds = array<i64: 1, 128>}, {pipeline_mode = #tpu.pipeline_mode<synchronous>, transform_indices = @transform_4, window_bounds = array<i64: 128, 128>}, {pipeline_mode = #tpu.pipeline_mode<synchronous>, transform_indices = @transform_5, window_bounds = array<i64: 1, 128>}, {transform_indices = @transform_6, window_bounds = array<i64: 8, 128>}]} {
    %c0 = arith.constant 0 : index
    %c0_0 = arith.constant 0 : index
    %0 = vector.load %arg1[%c0, %c0_0] : memref<8x128xf32, #tpu.memory_space<vmem>>, vector<8x128xf32>
    %c0_1 = arith.constant 0 : index
    %c0_2 = arith.constant 0 : index
    %c0_3 = arith.constant 0 : index
    %1 = vector.load %arg2[%c0_1, %c0_2, %c0_3] : memref<8x64x128xf32, #tpu.memory_space<vmem>>, vector<8x64x128xf32>
    %c0_4 = arith.constant 0 : index
    %c0_5 = arith.constant 0 : index
    %2 = vector.load %arg3[%c0_4, %c0_5] : memref<128x128xf32, #tpu.memory_space<vmem>>, vector<128x128xf32>
    %cst = arith.constant dense<0.000000e+00> : vector<8x128xf32>
    %3 = tpu.matmul %0, %2, %cst {dimension_numbers = #tpu.dot_dimension_numbers<[1], [0], [0], [1], [0, 0, 1, 1], [], []>} : vector<8x128xf32>, vector<128x128xf32>, vector<8x128xf32> -> vector<8x128xf32>
    %c0_6 = arith.constant 0 : index
    %c0_7 = arith.constant 0 : index
    %4 = vector.load %arg4[%c0_6, %c0_7] : memref<1x128xf32, #tpu.memory_space<vmem>>, vector<1x128xf32>
    %5 = vector.broadcast %4 : vector<1x128xf32> to vector<8x128xf32>
    %6 = arith.addf %3, %5 : vector<8x128xf32>
    %7 = vector.shape_cast %1 : vector<8x64x128xf32> to vector<512x128xf32>
    %c0_8 = arith.constant 0 : index
    %c0_9 = arith.constant 0 : index
    %8 = vector.load %arg5[%c0_8, %c0_9] : memref<128x128xf32, #tpu.memory_space<vmem>>, vector<128x128xf32>
    %cst_10 = arith.constant dense<0.000000e+00> : vector<512x128xf32>
    %9 = tpu.matmul %7, %8, %cst_10 {dimension_numbers = #tpu.dot_dimension_numbers<[1], [0], [0], [1], [0, 0, 1, 1], [], []>} : vector<512x128xf32>, vector<128x128xf32>, vector<512x128xf32> -> vector<512x128xf32>
    %c0_11 = arith.constant 0 : index
    %c0_12 = arith.constant 0 : index
    %10 = vector.load %arg6[%c0_11, %c0_12] : memref<1x128xf32, #tpu.memory_space<vmem>>, vector<1x128xf32>
    %11 = vector.broadcast %10 : vector<1x128xf32> to vector<512x128xf32>
    %12 = arith.addf %9, %11 : vector<512x128xf32>
    %13 = vector.shape_cast %12 : vector<512x128xf32> to vector<8x64x128xf32>
    %14 = arith.mulf %6, %6 : vector<8x128xf32>
    %cst_13 = arith.constant dense<0.000000e+00> : vector<8xf32>
    %15 = vector.multi_reduction <add>, %14, %cst_13 [1] : vector<8x128xf32> to vector<8xf32>
    %16 = vector.shape_cast %15 : vector<8xf32> to vector<8x1xf32>
    %cst_14 = arith.constant 1.000000e-24 : f32
    %17 = vector.broadcast %cst_14 : f32 to vector<8x1xf32>
    %18 = arith.maximumf %16, %17 : vector<8x1xf32>
    %19 = math.rsqrt %18 : vector<8x1xf32>
    %20 = vector.broadcast %19 : vector<8x1xf32> to vector<8x128xf32>
    %21 = arith.mulf %6, %20 : vector<8x128xf32>
    %22 = vector.shape_cast %21 : vector<8x128xf32> to vector<8x1x128xf32>
    %23 = vector.broadcast %22 : vector<8x1x128xf32> to vector<8x64x128xf32>
    %24 = arith.mulf %13, %23 : vector<8x64x128xf32>
    %cst_15 = arith.constant dense<0.000000e+00> : vector<8x64xf32>
    %25 = vector.multi_reduction <add>, %24, %cst_15 [2] : vector<8x64x128xf32> to vector<8x64xf32>
    %26 = arith.mulf %13, %13 : vector<8x64x128xf32>
    %cst_16 = arith.constant dense<0.000000e+00> : vector<8x64xf32>
    %27 = vector.multi_reduction <add>, %26, %cst_16 [2] : vector<8x64x128xf32> to vector<8x64xf32>
    %cst_17 = arith.constant 1.000000e-24 : f32
    %28 = vector.broadcast %cst_17 : f32 to vector<8x64xf32>
    %29 = arith.maximumf %27, %28 : vector<8x64xf32>
    %30 = math.rsqrt %29 : vector<8x64xf32>
    %31 = arith.mulf %25, %30 : vector<8x64xf32>
    %32 = math.exp %31 : vector<8x64xf32>
    %cst_18 = arith.constant dense<0.000000e+00> : vector<8xf32>
    %33 = vector.multi_reduction <add>, %32, %cst_18 [1] : vector<8x64xf32> to vector<8xf32>
    %34 = vector.shape_cast %33 : vector<8xf32> to vector<8x1xf32>
    %35 = tpu.reciprocal %34 {approx = true} : vector<8x1xf32> -> vector<8x1xf32>
    %36 = vector.broadcast %35 : vector<8x1xf32> to vector<8x64xf32>
    %37 = arith.mulf %32, %36 : vector<8x64xf32>
    %38 = vector.shape_cast %37 : vector<8x64xf32> to vector<8x64x1xf32>
    %39 = vector.broadcast %38 : vector<8x64x1xf32> to vector<8x64x128xf32>
    %40 = arith.mulf %39, %1 : vector<8x64x128xf32>
    %cst_19 = arith.constant dense<0.000000e+00> : vector<8x128xf32>
    %41 = vector.multi_reduction <add>, %40, %cst_19 [1] : vector<8x64x128xf32> to vector<8x128xf32>
    %c0_20 = arith.constant 0 : index
    %c0_21 = arith.constant 0 : index
    %42 = vector.load %arg7[%c0_20, %c0_21] : memref<8x128xf32, #tpu.memory_space<vmem>>, vector<8x128xf32>
    tpu.vector_store %arg7[%c0_20, %c0_21], %41 {strides = array<i32>} : memref<8x128xf32, #tpu.memory_space<vmem>>, vector<8x128xf32>,
    return
  }
  func.func @transform_0(%arg0: i32) -> (i32, i32) {
    %c0_i32 = arith.constant 0 : i32
    %c0_i32_0 = arith.constant 0 : i32
    return %arg0, %c0_i32 : i32, i32
  }
  func.func @transform_1(%arg0: i32) -> (i32, i32, i32) {
    %c0_i32 = arith.constant 0 : i32
    %c0_i32_0 = arith.constant 0 : i32
    %c0_i32_1 = arith.constant 0 : i32
    return %arg0, %c0_i32, %c0_i32_0 : i32, i32, i32
  }
  func.func @transform_2(%arg0: i32) -> (i32, i32) {
    %c0_i32 = arith.constant 0 : i32
    %c0_i32_0 = arith.constant 0 : i32
    %c0_i32_1 = arith.constant 0 : i32
    return %c0_i32, %c0_i32_0 : i32, i32
  }
  func.func @transform_3(%arg0: i32) -> (i32, i32) {
    %c0_i32 = arith.constant 0 : i32
    %c0_i32_0 = arith.constant 0 : i32
    %c0_i32_1 = arith.constant 0 : i32
    return %c0_i32, %c0_i32_0 : i32, i32
  }
  func.func @transform_4(%arg0: i32) -> (i32, i32) {
    %c0_i32 = arith.constant 0 : i32
    %c0_i32_0 = arith.constant 0 : i32
    %c0_i32_1 = arith.constant 0 : i32
    return %c0_i32, %c0_i32_0 : i32, i32
  }
  func.func @transform_5(%arg0: i32) -> (i32, i32) {
    %c0_i32 = arith.constant 0 : i32
    %c0_i32_0 = arith.constant 0 : i32
    %c0_i32_1 = arith.constant 0 : i32
    return %c0_i32, %c0_i32_0 : i32, i32
  }
  func.func @transform_6(%arg0: i32) -> (i32, i32) {
    %c0_i32 = arith.constant 0 : i32
    %c0_i32_0 = arith.constant 0 : i32
    return %arg0, %c0_i32 : i32, i32
  }
}

</mosaic_0001>

<bundles_post_ra>
// kernel: dot_attention.1
= control target key start
LH: loop header
LB: loop body
LE: loop exit
PB: predicated region body
PF: predicated region fallthrough
CT: control target
= control target key end

     0   :  { %s5882_s0 = inlined_call_operand.hbm [shape: f32[16,128], index: 0, kind: input, shape index: {}]   ;;  %s5883_s1 = inlined_call_operand.hbm [shape: f32[16,64,128], index: 1, kind: input, shape index: {}]   ;;  %s5884_s2 = inlined_call_operand.hbm [shape: f32[128,128], index: 2, kind: input, shape index: {}]   ;;  %s5885_s3 = inlined_call_operand.vmem [shape: f32[1,128], index: 3, kind: input, shape index: {}]   ;;  %s5886_s4 = inlined_call_operand.hbm [shape: f32[128,128], index: 4, kind: input, shape index: {}]   ;;  %s5887_s5 = inlined_call_operand.vmem [shape: f32[1,128], index: 5, kind: input, shape index: {}]   ;;  %s5888_s6 = inlined_call_operand.hbm [shape: f32[16,128], index: 6, kind: output, shape index: {}]  }
   0x1   :  { %5944 = sst [smem:[#allocation65_spill]] %s5882_s0 }
   0x2   :  { %5945 = sst [smem:[#allocation66_spill]] %s5884_s2 }
   0x3   :  { %11 = vsyncpa [#allocation3], 0 }
   0x4   :  { %13 = vsyncpa [#allocation3 + $0x1], 0 }
   0x5   :  { %14 = vsyncpa [#allocation6], 0 }
   0x6   :  { %16 = vsyncpa [#allocation6 + $0x1], 0 }
   0x7   :  { %17 = vsyncpa [#allocation9], 0 }
   0x8   :  { %18 = vsyncpa [#allocation4], 0 }
   0x9   :  { %20 = vsyncpa [#allocation4 + $0x1], 0  ;;  %s3857_s21 = smov 0   ;;  %s3859_s22 = smov 0  }
   0xa   :  { %s3861_s23 = smov 0   ;;  %s3863_s24 = smov 0  }
   0xb LB: > { %s3878_s25 = sadd.s32 4294967295, %s3808_s24   ;;  %s2852_s26 = sadd.s32 4294967294, %s3808_s24   ;;  %s3808_s24 = sphi %s3863_s24, %s6182_s24   ;;  %s3804_s23 = sphi %s3861_s23, %s6181_s23   ;;  %s3800_s22 = sphi %s3859_s22, %s6180_s22   ;;  %s3796_s21 = sphi %s3857_s21, %s6179_s21  }
   0xc   : > { %p46_p0 = scmp.ne.s32.totalorder %s3800_s22, %s3796_s21  ;;  %p5889_p1 = scmp.eq.s32.totalorder %s3878_s25, 0 }
   0xd   : > { %p186_p3 = scmp.eq.s32.totalorder %s2852_s26, 1  ;;  %p2853_p5 = scmp.ge.s32.totalorder %s3808_s24, 1 }
   0xe   : > { %p3887_p4 = por %p5889_p1, %p46_p0  ;;  %p193_p7 = scmp.lt.s32.totalorder %s3808_s24, 3 }
   0xf   : > { %p3892_p6 = por %p186_p3, %p46_p0  ;;  %s3810_s30 = smov [#allocation7]  }
  0x10   : > { %s5946_s27 = scalar_select %p3887_p4, 1, 0 }
  0x11   : > { %s5947_s28 = scalar_select %p3892_p6, 1, 0 }
  0x12   : > { %p3897_p8 = pnand %p2853_p5, %p193_p7  ;;  %s205_s7 = sshll.u32 %s3810_s30, 4  ;;  %s3901_s7 = int_to_ptr.vmem [resolvable:$true] %s205_s7 }
  0x13   : > { %s3811_s9 = smov [#allocation8]   ;;  %s5950_s2 = sld [smem:[#allocation66_spill]] }
  0x14   : > { %p3223_p9 = pneg %p3897_p8  ;;  %s221_s10 = sshll.u32 %s3811_s9, 4  ;;  %s3912_s10 = int_to_ptr.vmem [resolvable:$true] %s221_s10 }
  0x16   : > { %p3908_p11 = pnand %p3223_p9, %p5889_p1 }
  0x18   : > { %p3616_p13 = pneg %p3908_p11 }
  0x19   : > { %s3614_s13 = scalar_lea.hbm %s5950_s2, 2048 }
  0x1a   : > { %p3615_p12 = scmp.ne.s32.totalorder %s5950_s2, %s3614_s13  ;;  %p3621_p5 = scmp.lt.u32.totalorder %s3614_s13, %s5950_s2 }
  0x1c   : > { %p3617_p0 = pnand %p3616_p13, %p3615_p12 }
  0x1e   : > { %p3618_p3 = pneg %p3617_p0 }
  0x20   : > { %p3623_p7 = pnand %p3621_p5, %p3618_p3 }
  0x22   : > { %3626 = shalt.err (!%p3623_p7)
}
  0x23   : > { %s3627_s18 = scalar_lea.vmem %s3901_s7, 2048  ;;  %p3635_p2 = scmp.lt.s32.totalorder %s3901_s7, %s3901_s7 }
  0x24   : > { %p3628_p9 = scmp.ne.s32.totalorder %s3901_s7, %s3627_s18  ;;  %p3636_p12 = scmp.lt.s32.totalorder %s3627_s18, %s3627_s18 }
  0x26   : > { %p3630_p10 = pnand %p3628_p9, %p3616_p13  ;;  %p3637_p0 = por %p3636_p12, %p3635_p2 }
  0x28   : > { %p3631_p1 = pneg %p3630_p10 }
  0x2a   : > { %p3638_p6 = pnand %p3637_p0, %p3631_p1 }
  0x2c   : > { %3641 = shalt.err (!%p3638_p6)
}
  0x2d   : > { %s5890_s19 = smov 128   ;;  %s5891_s20 = smov 8  }
  0x2e   : > { %3226 = dma.hbm_to_vmem [thread:$0]  (!%p3908_p11), %s5950_s2, 2048, %s3901_s7, [#allocation6], %s5890_s19, %s5890_s19, %s5891_s20  }
  0x2f   : > { %s3642_s12 = scalar_lea.hbm %s5886_s4, 2048 }
  0x30   : > { %p3643_p1 = scmp.ne.s32.totalorder %s5886_s4, %s3642_s12  ;;  %p3649_p10 = scmp.lt.u32.totalorder %s3642_s12, %s5886_s4 }
  0x32   : > { %p3645_p2 = pnand %p3643_p1, %p3616_p13 }
  0x34   : > { %p3646_p6 = pneg %p3645_p2 }
  0x36   : > { %p3651_p3 = pnand %p3649_p10, %p3646_p6 }
  0x38   : > { %3654 = shalt.err (!%p3651_p3)
}
  0x39   : > { %s3655_s7 = scalar_lea.vmem %s3912_s10, 2048  ;;  %p3663_p12 = scmp.lt.s32.totalorder %s3912_s10, %s3912_s10 }
  0x3a   : > { %p3656_p5 = scmp.ne.s32.totalorder %s3912_s10, %s3655_s7  ;;  %p3664_p0 = scmp.lt.s32.totalorder %s3655_s7, %s3655_s7 }
  0x3c   : > { %p3658_p7 = pnand %p3656_p5, %p3616_p13  ;;  %p3665_p1 = por %p3664_p0, %p3663_p12 }
  0x3e   : > { %p3659_p9 = pneg %p3658_p7 }
  0x40   : > { %p3666_p2 = pnand %p3665_p1, %p3659_p9 }
  0x42   : > { %3669 = shalt.err (!%p3666_p2)
}
  0x43   : > { %3229 = dma.hbm_to_vmem [thread:$0]  (!%p3908_p11), %s5886_s4, 2048, %s3912_s10, [#allocation9], %s5890_s19, %s5890_s19, %s5891_s20  }
  0x44   : > { %s3973_s8 = sadd.s32 1, %s3808_s24   ;;  %s33_s26 = sadd.s32 1, %s3804_s23 }
  0x45   : > { %s30_s30 = ssub.s32 %s3808_s24, %s3973_s8  ;;  %p40_p13 = scmp.ne.s32.totalorder %s3804_s23, %s3800_s22 }
  0x46   : > { %p31_p6 = scmp.eq.s32.totalorder %s30_s30, 0  ;;  %p41_p10 = scmp.eq.s32.totalorder %s3808_s24, 0 }
  0x47   : > { %p5951_p3 = scmp.eq.s32.totalorder %s3878_s25, 1  ;;  %p3243_p7 = scmp.lt.s32.totalorder %s3808_s24, 2 }
  0x48   : > { %s3989_s11 = scalar_select %p31_p6, %s3804_s23, %s33_s26  }
  0x49   : > { %p3983_p5 = por %p5951_p3, %p40_p13  ;;  %p42_p9 = por %p41_p10, %p40_p13 }
  0x4a   : > { %s3992_s12 = sand.u32 1, %s3804_s23   ;;  %s2858_s13 = sshll.u32 %s3808_s24, 7 }
  0x4b   : > { %s5952_s9 = scalar_select %p3983_p5, 1, 0 }
  0x4c   : > { %s2857_s10 = sshll.u32 %s3992_s12, 3  ;;  %s5953_s0 = sld [smem:[#allocation65_spill]] }
  0x4d   : > { %s242_s7 = scalar_lea.vmem [#allocation2], %s2857_s10  ;;  %p4003_p11 = pnand %p3243_p7, %p42_p9 }
  0x4e   : > { %s249_s17 = sshll.u32 %s242_s7, 4  ;;  %s2859_s26 = sshll.u32 %s3992_s12, 9  ;;  %s4001_s17 = int_to_ptr.vmem [resolvable:$true] %s249_s17 }
  0x4f   : > { %s239_s19 = scalar_lea.sflag [#allocation3], %s3992_s12  ;;  %p3672_p0 = pneg %p4003_p11 }
  0x52   : > { %s3999_s16 = scalar_lea.hbm %s5953_s0, %s2858_s13  ;;  %s3675_s15 = scalar_lea.hbm %s5953_s0, 256 }
  0x53   : > { %s3670_s14 = scalar_lea.hbm %s3999_s16, 128  ;;  %p3676_p13 = scmp.lt.u32.totalorder %s3999_s16, %s5953_s0 }
  0x54   : > { %p3671_p12 = scmp.ne.s32.totalorder %s3999_s16, %s3670_s14  ;;  %p3677_p6 = scmp.lt.u32.totalorder %s3675_s15, %s3670_s14 }
  0x55   : > { %p3679_p3 = scmp.lt.u32.totalorder %s3670_s14, %s3999_s16 }
  0x56   : > { %p3673_p1 = pnand %p3672_p0, %p3671_p12  ;;  %p3678_p10 = por %p3677_p6, %p3676_p13 }
  0x58   : > { %p3674_p2 = pneg %p3673_p1  ;;  %p3680_p7 = por %p3679_p3, %p3678_p10 }
  0x5a   : > { %p3681_p9 = pnand %p3680_p7, %p3674_p2 }
  0x5c   : > { %3684 = shalt.err (!%p3681_p9)
}
  0x5d   : > { %s3685_s30 = scalar_lea.vmem %s4001_s17, 128  ;;  %s3814_s10 = smov [#allocation2]  }
  0x5e   : > { %p3686_p12 = scmp.ne.s32.totalorder %s4001_s17, %s3685_s30  ;;  %s3690_s13 = sshll.u32 %s3814_s10, 4  ;;  %s3691_s13 = int_to_ptr.vmem [resolvable:$false] %s3690_s13 }
  0x5f   : > { %s3692_s20 = scalar_lea.vmem %s3691_s13, 256  ;;  %p3693_p4 = scmp.lt.s32.totalorder %s4001_s17, %s3691_s13 }
  0x60   : > { %p3688_p1 = pnand %p3686_p12, %p3672_p0  ;;  %p3694_p13 = scmp.lt.s32.totalorder %s3692_s20, %s3685_s30 }
  0x62   : > { %p3689_p5 = pneg %p3688_p1  ;;  %p3695_p6 = por %p3694_p13, %p3693_p4 }
  0x64   : > { %p3696_p10 = pnand %p3695_p6, %p3689_p5 }
  0x66   : > { %3699 = shalt.err (!%p3696_p10)
}
  0x67   : > { %3233 = dma.hbm_to_vmem [thread:$0]  (!%p4003_p11), %s3999_s16, 128, %s4001_s17, %s239_s19  }
  0x68   : > { %s260_s14 = scalar_lea.vmem [#allocation5], %s2859_s26  ;;  %s2876_s7 = sshll.u32 %s3808_s24, 13 }
  0x69   : > { %s268_s15 = sshll.u32 %s260_s14, 4  ;;  %s4043_s13 = scalar_lea.hbm %s5883_s1, %s2876_s7  ;;  %s4037_s15 = int_to_ptr.vmem [resolvable:$true] %s268_s15 }
  0x6a   : > { %s5955_s20 = sand.u32 1, %s3808_s24   ;;  %s3700_s2 = scalar_lea.hbm %s4043_s13, 8192 }
  0x6b   : > { %s4047_s0 = scalar_lea.sflag [#allocation6], %s5955_s20  ;;  %p3701_p4 = scmp.ne.s32.totalorder %s4043_s13, %s3700_s2 }
  0x6c   : > { %s3705_s16 = scalar_lea.hbm %s5883_s1, 16384  ;;  %p3706_p3 = scmp.lt.u32.totalorder %s4043_s13, %s5883_s1 }
  0x6d   : > { %p3703_p5 = pnand %p3701_p4, %p3672_p0  ;;  %p3707_p7 = scmp.lt.u32.totalorder %s3705_s16, %s3700_s2 }
  0x6e   : > { %p3709_p12 = scmp.lt.u32.totalorder %s3700_s2, %s4043_s13 }
  0x6f   : > { %p3704_p2 = pneg %p3703_p5  ;;  %p3708_p9 = por %p3707_p7, %p3706_p3 }
  0x71   : > { %p3710_p1 = por %p3709_p12, %p3708_p9 }
  0x73   : > { %p3711_p13 = pnand %p3710_p1, %p3704_p2 }
  0x75   : > { %3714 = shalt.err (!%p3711_p13)
}
  0x76   : > { %s3715_s14 = scalar_lea.vmem %s4037_s15, 8192  ;;  %s3815_s7 = smov [#allocation5]  }
  0x77   : > { %p3716_p6 = scmp.ne.s32.totalorder %s4037_s15, %s3715_s14  ;;  %s3720_s10 = sshll.u32 %s3815_s7, 4  ;;  %s3721_s10 = int_to_ptr.vmem [resolvable:$false] %s3720_s10 }
  0x78   : > { %s3722_s30 = scalar_lea.vmem %s3721_s10, 16384  ;;  %p3723_p5 = scmp.lt.s32.totalorder %s4037_s15, %s3721_s10 }
  0x79   : > { %p3718_p10 = pnand %p3716_p6, %p3672_p0  ;;  %p3724_p3 = scmp.lt.s32.totalorder %s3722_s30, %s3715_s14 }
  0x7b   : > { %p3719_p4 = pneg %p3718_p10  ;;  %p3725_p7 = por %p3724_p3, %p3723_p5 }
  0x7d   : > { %p3726_p9 = pnand %p3725_p7, %p3719_p4 }
  0x7f   : > { %3729 = shalt.err (!%p3726_p9)
}
  0x80   : > { %s5956_s2 = smov 8   ;;  %s5957_s20 = smov 128  }
  0x81   : > { %3236 = dma.hbm_to_vmem [thread:$0]  (!%p4003_p11), %s4043_s13, 8192, %s4037_s15, %s4047_s0, %s5957_s20, %s5957_s20, %s5956_s2  }
  0x82   : > { %280 = sbr.rel (%p3897_p8) target bundleno = 1322 (0x52a), region = 44 }
  0x89   : > { %s4079_s19 = sand.u32 1, %s3800_s22   ;;  %p5958_p0 = scmp.ne.s32.totalorder %s5946_s27, 0 }
  0x8a   : > { %s2864_s12 = sshll.u32 %s4079_s19, 3  ;;  %s283_s16 = scalar_lea.sflag [#allocation3], %s4079_s19 }
  0x8b   : > { %s4085_s18 = scalar_lea.vmem [#allocation2], %s2864_s12 }
  0x8c   : > { %3775 = dma.done.wait (%p5958_p0), %s283_s16, 128  }
  0x8d   : > { %3777 = vsyncadd (%p5958_p0), %s283_s16, 4294967168  ;;  %s291_s0 = sand.u32 1, %s3878_s25   ;;  %s2865_s29 = sshll.u32 %s4079_s19, 9 }
  0x8e   : > { %s292_s15 = scalar_lea.sflag [#allocation6], %s291_s0  ;;  %s4093_s13 = scalar_lea.vmem [#allocation5], %s2865_s29 }
  0x8f   : > { %3779 = dma.done.wait (%p5958_p0), %s292_s15, 8192  }
  0x90   : > { %3781 = vsyncadd (%p5958_p0), %s292_s15, 4294959104  ;;  %p5959_p8 = scmp.eq.s32.totalorder %s3878_s25, 0 }
  0x92   : > { %3783 = dma.done.wait (%p5959_p8), [#allocation6], 2048   ;;  %p5960_p11 = pmov %p5959_p8 }
  0x93   : > { %p5961_p2 = pmov %p5959_p8 }
  0x94   : > { %3785 = vsyncadd (%p5960_p11), [#allocation6], 4294965248 }
  0x95   : > { %3787 = dma.done.wait (%p5961_p2), [#allocation9], 2048   ;;  %p5962_p12 = pmov %p5961_p2 }
  0x96   : > { %v3816_v0 = vmov 0.0|0.0   ;;  %vm3817_vm0 = vmmov 0   ;;  %v3818_v1 = vmov 0.0   ;;  %v403_v2 = vld [vmem:[#allocation7] sm:$0xff]  ;;  %v404_v3 = vld [vmem:[#allocation7 + $0x8] sm:$0xff]  ;;  %v405_v4 = vld [vmem:[#allocation7 + $0x10] sm:$0xff] }
  0x97   : > { %3789 = vsyncadd (%p5962_p12), [#allocation9], 4294965248  ;;  %3137 = vmatprep.subr.bf16.mxu0 %v3816_v0  ;;  %3006 = vmatprep.mubr.msk.f32.mxu0 %vm3817_vm0, %v3818_v1  ;;  %v3138_v5 = vpack.c.bf16 %v404_v3, %v403_v2  ;;  %v406_v6 = vld [vmem:[#allocation7 + $0x18] sm:$0xff]  ;;  %v407_v8 = vld [vmem:[#allocation7 + $0x20] sm:$0xff]  ;;  %vm1779_vm1 = vcmask 130112   ;;  %vm1786_vm2 = vcmask 195712  }
  0x98   : > { %v3141_v7 = vpack.c.bf16 %v406_v6, %v405_v4  ;;  %v408_v9 = vld [vmem:[#allocation7 + $0x28] sm:$0xff]  ;;  %v496_v10 = vld [vmem:[#allocation8] sm:$0xff]  ;;  %v498_v12 = vld [vmem:[#allocation8 + $0x10] sm:$0xff]  ;;  %vm1793_vm3 = vcmask 261312   ;;  %vm1800_vm4 = vcmask 326912   ;;  %vm1807_vm5 = vcmask 392512  }
  0x99   : > { %3139 = vmatpush3.bf16.msra.mxu0 %v3138_v5  ;;  %v497_v11 = vld [vmem:[#allocation8 + $0x8] sm:$0xff]  ;;  %v499_v13 = vld [vmem:[#allocation8 + $0x18] sm:$0xff]  ;;  %v3144_v14 = vpack.c.bf16 %v408_v9, %v407_v8  ;;  %v409_v15 = vld [vmem:[#allocation7 + $0x30] sm:$0xff]  ;;  %vm1814_vm6 = vcmask 458112   ;;  %vm1821_vm7 = vcmask 523712   ;;  %vm2096_vm8 = vcmask 1041409  }
  0x9a   : > { %3140 = vmatprep.subr.bf16.mxu0 %v3816_v0  ;;  %v4109_v16 = vpack.c.bf16 %v497_v11, %v496_v10  ;;  %v4111_v17 = vpack.c.bf16 %v499_v13, %v498_v12  ;;  %v410_v18 = vld [vmem:[#allocation7 + $0x38] sm:$0xff]  ;;  %v500_v19 = vld [vmem:[#allocation8 + $0x20] sm:$0xff]  ;;  %v501_v20 = vld [vmem:[#allocation8 + $0x28] sm:$0xff]  ;;  %vm2098_vm9 = vcmask 1042434   ;;  %vm2100_vm10 = vcmask 1043459   ;;  %s2872_s7 = sshll.u32 %s3878_s25, 7 }
  0x9b   : > { %v3147_v21 = vpack.c.bf16 %v410_v18, %v409_v15  ;;  %v411_v22 = vld [vmem:[#allocation7 + $0x40] sm:$0xff]  ;;  %v4117_v23 = vpack.c.bf16 %v501_v20, %v500_v19  ;;  %v412_v25 = vld [vmem:[#allocation7 + $0x48] sm:$0xff]  ;;  %v502_v26 = vld [vmem:[#allocation8 + $0x30] sm:$0xff]  ;;  %vm2102_vm11 = vcmask 1044484   ;;  %vm2104_vm12 = vcmask 1045509   ;;  %s336_s10 = scalar_lea.vmem [#allocation10], %s2864_s12  ;;  %s5837_s16 = scalar_lea.hbm %s5888_s6, %s2872_s7 }
  0x9c   : > { %3193 = vmatprep.subr.bf16.mxu1 %v4109_v16  ;;  %v363_v24 = vld [vmem:[%s4093_s13 + $0xc0] sm:$0xff]  ;;  %v503_v27 = vld [vmem:[#allocation8 + $0x38] sm:$0xff]  ;;  %v3150_v28 = vpack.c.bf16 %v412_v25, %v411_v22  ;;  %v413_v29 = vld [vmem:[#allocation7 + $0x50] sm:$0xff]  ;;  %vm2106_vm13 = vcmask 1046534   ;;  %vm2108_vm14 = vcmask 1047559   ;;  %vm2111_vm15 = vcmask 523264  }
  0x9d   : > { %3142 = vmatpush3.bf16.msra.mxu0 %v3141_v7  ;;  %3201 = vmatpush3.bf16.msra.mxu1 %v4109_v16  ;;  %v3173_v30 = vpack.c.bf16 %v503_v27, %v502_v26  ;;  %v414_v31 = vld [vmem:[#allocation7 + $0x58] sm:$0xff]  ;;  %v504_v32 = vld [vmem:[#allocation8 + $0x40] sm:$0xff]  ;;  %v505_v33 = vld [vmem:[#allocation8 + $0x48] sm:$0xff]  ;;  %s2740_s30 = sshll.u32 %s336_s10, 4  ;;  %s2727_s25 = scalar_lea.sflag [#allocation4], %s4079_s19  ;;  %s5839_s30 = int_to_ptr.vmem [resolvable:$true] %s2740_s30 }
  0x9e   : > { %3143 = vmatprep.subr.bf16.mxu0 %v3816_v0  ;;  %3194 = vmatprep.subr.bf16.mxu1 %v4111_v17  ;;  %v3153_v34 = vpack.c.bf16 %v414_v31, %v413_v29  ;;  %v415_v35 = vld [vmem:[#allocation7 + $0x60] sm:$0xff]  ;;  %v3177_v36 = vpack.c.bf16 %v505_v33, %v504_v32  ;;  %v416_v37 = vld [vmem:[#allocation7 + $0x68] sm:$0xff]  ;;  %v506_v38 = vld [vmem:[#allocation8 + $0x50] sm:$0xff]  ;;  %s3730_s12 = scalar_lea.vmem %s5839_s30, 128  ;;  %p6176_p13 = scmp.ne.s32.totalorder %s5952_s9, 0 }
  0x9f   : > { %3077 = vmatprep.mubr.f32.mxu1 %v363_v24  ;;  %v507_v39 = vld [vmem:[#allocation8 + $0x58] sm:$0xff]  ;;  %v3156_v40 = vpack.c.bf16 %v416_v37, %v415_v35  ;;  %v417_v41 = vld [vmem:[#allocation7 + $0x70] sm:$0xff]  ;;  %v508_v44 = vld [vmem:[#allocation8 + $0x60] sm:$0xff]  ;;  %p3731_p1 = scmp.ne.s32.totalorder %s5839_s30, %s3730_s12 }
  0xa0   : > { %v3181_v42 = vpack.c.bf16 %v507_v39, %v506_v38  ;;  %v418_v43 = vld [vmem:[#allocation7 + $0x78] sm:$0xff]  ;;  %v509_v45 = vld [vmem:[#allocation8 + $0x68] sm:$0xff]  ;;  %v510_v48 = vld [vmem:[#allocation8 + $0x70] sm:$0xff] }
  0xa1   : > { %3145 = vmatpush3.bf16.msra.mxu0 %v3144_v14  ;;  %3202 = vmatpush3.bf16.msra.mxu1 %v4111_v17  ;;  %v3159_v46 = vpack.c.bf16 %v418_v43, %v417_v41  ;;  %v3185_v47 = vpack.c.bf16 %v509_v45, %v508_v44  ;;  %v511_v49 = vld [vmem:[#allocation8 + $0x78] sm:$0xff]  ;;  %v339_v52 = vld [vmem:[%s4093_s13] sm:$0xff]  ;;  %v364_v53 = vld [vmem:[%s4093_s13 + $0xc8] sm:$0xff]  ;;  %p3732_p6 = pnand %p3731_p1, %p6176_p13 }
  0xa2   : > { %3146 = vmatprep.subr.bf16.mxu0 %v3816_v0  ;;  %3195 = vmatprep.subr.bf16.mxu1 %v4117_v23  ;;  %v338_v50 = vld [vmem:[%s4085_s18] sm:$0xff]  ;;  %v3189_v51 = vpack.c.bf16 %v511_v49, %v510_v48  ;;  %v367_v56 = vld [vmem:[%s4093_s13 + $0xe0] sm:$0xff]  ;;  %v368_v57 = vld [vmem:[%s4093_s13 + $0xe8] sm:$0xff]  ;;  %s3821_s18 = smov [#allocation10]  }
  0xa3   : > { %v365_v54 = vld [vmem:[%s4093_s13 + $0xd0] sm:$0xff]  ;;  %v366_v55 = vld [vmem:[%s4093_s13 + $0xd8] sm:$0xff]  ;;  %v371_v60 = vld [vmem:[%s4093_s13 + $0x100] sm:$0xff]  ;;  %p3733_p10 = pneg %p3732_p6  ;;  %s3734_s0 = sshll.u32 %s3821_s18, 4  ;;  %s3735_s0 = int_to_ptr.vmem [resolvable:$false] %s3734_s0 }
  0xa4   : > { %v369_v58 = vld [vmem:[%s4093_s13 + $0xf0] sm:$0xff]  ;;  %v370_v59 = vld [vmem:[%s4093_s13 + $0xf8] sm:$0xff]  ;;  %v372_v61 = vld [vmem:[%s4093_s13 + $0x108] sm:$0xff]  ;;  %s3736_s29 = scalar_lea.vmem %s3735_s0, 256  ;;  %p3737_p4 = scmp.lt.s32.totalorder %s5839_s30, %s3735_s0 }
  0xa5   : > { %3148 = vmatpush3.bf16.msra.mxu0 %v3147_v21  ;;  %3203 = vmatpush3.bf16.msra.mxu1 %v4117_v23  ;;  %v373_v62 = vld [vmem:[%s4093_s13 + $0x110] sm:$0xff]  ;;  %v374_v63 = vld [vmem:[%s4093_s13 + $0x118] sm:$0xff]  ;;  %v376_v1 = vld [vmem:[%s4093_s13 + $0x128] sm:$0xff]  ;;  %p3738_p5 = scmp.lt.s32.totalorder %s3736_s29, %s3730_s12 }
  0xa6   : > { %3149 = vmatprep.subr.bf16.mxu0 %v3816_v0  ;;  %3196 = vmatprep.subr.bf16.mxu1 %v3173_v30  ;;  %v377_v2 = vld [vmem:[%s4093_s13 + $0x130] sm:$0xff]  ;;  %v340_v3 = vld [vmem:[%s4093_s13 + $0x8] sm:$0xff]  ;;  %v378_v5 = vld [vmem:[%s4093_s13 + $0x138] sm:$0xff] }
  0xa7   : > { %v341_v4 = vld [vmem:[%s4093_s13 + $0x10] sm:$0xff]  ;;  %v379_v6 = vld [vmem:[%s4093_s13 + $0x140] sm:$0xff]  ;;  %v342_v7 = vld [vmem:[%s4093_s13 + $0x18] sm:$0xff]  ;;  %p3739_p3 = por %p3738_p5, %p3737_p4 }
  0xa8   : > { %v343_v8 = vld [vmem:[%s4093_s13 + $0x20] sm:$0xff]  ;;  %v380_v9 = vld [vmem:[%s4093_s13 + $0x148] sm:$0xff]  ;;  %v381_v10 = vld [vmem:[%s4093_s13 + $0x150] sm:$0xff] }
  0xa9   : > { %3151 = vmatpush3.bf16.msra.mxu0 %v3150_v28  ;;  %3204 = vmatpush3.bf16.msra.mxu1 %v3173_v30  ;;  %v344_v11 = vld [vmem:[%s4093_s13 + $0x28] sm:$0xff]  ;;  %v345_v12 = vld [vmem:[%s4093_s13 + $0x30] sm:$0xff]  ;;  %v382_v13 = vld [vmem:[%s4093_s13 + $0x158] sm:$0xff]  ;;  %p3740_p7 = pnand %p3739_p3, %p3733_p10 }
  0xaa   : > { %3152 = vmatprep.subr.bf16.mxu0 %v3816_v0  ;;  %3197 = vmatprep.subr.bf16.mxu1 %v3177_v36  ;;  %v383_v14 = vld [vmem:[%s4093_s13 + $0x160] sm:$0xff]  ;;  %v346_v15 = vld [vmem:[%s4093_s13 + $0x38] sm:$0xff]  ;;  %v385_v18 = vld [vmem:[%s4093_s13 + $0x170] sm:$0xff] }
  0xab   : > { %v348_v19 = vld [vmem:[%s4093_s13 + $0x48] sm:$0xff]  ;;  %v349_v20 = vld [vmem:[%s4093_s13 + $0x50] sm:$0xff]  ;;  %v386_v21 = vld [vmem:[%s4093_s13 + $0x178] sm:$0xff] }
  0xac   : > { %v387_v22 = vld [vmem:[%s4093_s13 + $0x180] sm:$0xff]  ;;  %v388_v25 = vld [vmem:[%s4093_s13 + $0x188] sm:$0xff]  ;;  %v389_v26 = vld [vmem:[%s4093_s13 + $0x190] sm:$0xff] }
  0xad   : > { %3154 = vmatpush3.bf16.msra.mxu0 %v3153_v34  ;;  %3205 = vmatpush3.bf16.msra.mxu1 %v3177_v36  ;;  %v351_v24 = vld [vmem:[%s4093_s13 + $0x60] sm:$0xff]  ;;  %v352_v27 = vld [vmem:[%s4093_s13 + $0x68] sm:$0xff]  ;;  %v353_v28 = vld [vmem:[%s4093_s13 + $0x70] sm:$0xff] }
  0xae   : > { %3155 = vmatprep.subr.bf16.mxu0 %v3816_v0  ;;  %3198 = vmatprep.subr.bf16.mxu1 %v3181_v42  ;;  %v390_v29 = vld [vmem:[%s4093_s13 + $0x198] sm:$0xff]  ;;  %v355_v32 = vld [vmem:[%s4093_s13 + $0x80] sm:$0xff]  ;;  %v392_v33 = vld [vmem:[%s4093_s13 + $0x1a8] sm:$0xff] }
  0xaf   : > { %v354_v31 = vld [vmem:[%s4093_s13 + $0x78] sm:$0xff]  ;;  %v393_v34 = vld [vmem:[%s4093_s13 + $0x1b0] sm:$0xff]  ;;  %v356_v35 = vld [vmem:[%s4093_s13 + $0x88] sm:$0xff] }
  0xb0   : > { %v394_v37 = vld [vmem:[%s4093_s13 + $0x1b8] sm:$0xff]  ;;  %v395_v38 = vld [vmem:[%s4093_s13 + $0x1c0] sm:$0xff]  ;;  %v396_v41 = vld [vmem:[%s4093_s13 + $0x1c8] sm:$0xff] }
  0xb1   : > { %3157 = vmatpush3.bf16.msra.mxu0 %v3156_v40  ;;  %3206 = vmatpush3.bf16.msra.mxu1 %v3181_v42  ;;  %v358_v39 = vld [vmem:[%s4093_s13 + $0x98] sm:$0xff]  ;;  %v359_v40 = vld [vmem:[%s4093_s13 + $0xa0] sm:$0xff]  ;;  %v360_v43 = vld [vmem:[%s4093_s13 + $0xa8] sm:$0xff] }
  0xb2   : > { %3158 = vmatprep.subr.bf16.mxu0 %v3816_v0  ;;  %3199 = vmatprep.subr.bf16.mxu1 %v3185_v47  ;;  %v375_v0 = vld [vmem:[%s4093_s13 + $0x120] sm:$0xff]  ;;  %v361_v44 = vld [vmem:[%s4093_s13 + $0xb0] sm:$0xff]  ;;  %v398_v45 = vld [vmem:[%s4093_s13 + $0x1d8] sm:$0xff] }
  0xb3   : > { %v400_v48 = vld [vmem:[%s4093_s13 + $0x1e8] sm:$0xff]  ;;  %v401_v49 = vld [vmem:[%s4093_s13 + $0x1f0] sm:$0xff] }
  0xb5   : > { %3160 = vmatpush3.bf16.msra.mxu0 %v3159_v46  ;;  %3207 = vmatpush3.bf16.msra.mxu1 %v3185_v47  ;;  %v399_v46 = vld [vmem:[%s4093_s13 + $0x1e0] sm:$0xff] }
  0xb6   : > { %3162 = vmatprep.subr.bf16.mxu0 %v4109_v16  ;;  %3200 = vmatprep.subr.bf16.mxu1 %v3189_v51 }
  0xb8   : > { %3007 = vmatmul.mubr.f32.vlgmr.msra.gmra.mrb[0].mxu0 %v338_v50  ;;  %v402_v50 = vld [vmem:[%s4093_s13 + $0x1f8] sm:$0xff] }
  0xb9   : > { %3164 = vmatpush3.bf16.msra.mxu0 %v4109_v16  ;;  %3041 = vmatprep.mubr.f32.mxu0 %v339_v52  ;;  %v347_v16 = vld [vmem:[%s4093_s13 + $0x40] sm:$0xff] }
  0xba   : > { %3166 = vmatprep.subr.bf16.mxu0 %v4111_v17  ;;  %3208 = vmatpush3.bf16.msra.mxu1 %v3189_v51 }
  0xbd   : > { %3168 = vmatpush3.bf16.msra.mxu0 %v4111_v17  ;;  %3078 = vmatmul.mubr.f32.vlgmr.msra.gmra.mrb[0].mxu1 %v364_v53  ;;  %v384_v17 = vld [vmem:[%s4093_s13 + $0x168] sm:$0xff] }
  0xbe   : > { %3170 = vmatprep.subr.bf16.mxu0 %v4117_v23  ;;  %3080 = vmatprep.mubr.f32.mxu1 %v365_v54 }
  0xc1   : > { %3172 = vmatpush3.bf16.msra.mxu0 %v4117_v23  ;;  %3081 = vmatmul.mubr.f32.gmra.mrb[2].mxu1 %v366_v55  ;;  %v350_v23 = vld [vmem:[%s4093_s13 + $0x58] sm:$0xff] }
  0xc2   : > { %3174 = vmatprep.subr.bf16.mxu0 %v3173_v30  ;;  %3083 = vmatprep.mubr.f32.mxu1 %v367_v56  ;;  %v4208_v56 = vld [vmem:[%s5887_s5] ss:$0 sm:$0xff] }
  0xc5   : > { %3176 = vmatpush3.bf16.msra.mxu0 %v3173_v30  ;;  %3084 = vmatmul.mubr.f32.gmra.mrb[4].mxu1 %v368_v57  ;;  %v391_v30 = vld [vmem:[%s4093_s13 + $0x1a0] sm:$0xff] }
  0xc6   : > { %3178 = vmatprep.subr.bf16.mxu0 %v3177_v36  ;;  %3086 = vmatprep.mubr.f32.mxu1 %v369_v58 }
  0xc9   : > { %3180 = vmatpush3.bf16.msra.mxu0 %v3177_v36  ;;  %3087 = vmatmul.mubr.f32.gmra.mrb[6].mxu1 %v370_v59  ;;  %v357_v36 = vld [vmem:[%s4093_s13 + $0x90] sm:$0xff] }
  0xca   : > { %3182 = vmatprep.subr.bf16.mxu0 %v3181_v42  ;;  %3089 = vmatprep.mubr.f32.mxu1 %v371_v60 }
  0xcd   : > { %3184 = vmatpush3.bf16.msra.mxu0 %v3181_v42  ;;  %3090 = vmatmul.mubr.f32.gmra.mrb[8].mxu1 %v372_v61  ;;  %v397_v42 = vld [vmem:[%s4093_s13 + $0x1d0] sm:$0xff] }
  0xce   : > { %3186 = vmatprep.subr.bf16.mxu0 %v3185_v47  ;;  %3092 = vmatprep.mubr.f32.mxu1 %v373_v62 }
  0xd1   : > { %3188 = vmatpush3.bf16.msra.mxu0 %v3185_v47  ;;  %3093 = vmatmul.mubr.f32.gmra.mrb[10].mxu1 %v374_v63  ;;  %v362_v47 = vld [vmem:[%s4093_s13 + $0xb8] sm:$0xff] }
  0xd2   : > { %3190 = vmatprep.subr.bf16.mxu0 %v3189_v51  ;;  %3095 = vmatprep.mubr.f32.mxu1 %v375_v0 }
  0xd5   : > { %3192 = vmatpush3.bf16.msra.mxu0 %v3189_v51  ;;  %3096 = vmatmul.mubr.f32.gmra.mrb[12].mxu1 %v376_v1  ;;  %v2869_v51 = vld [vmem:[%s5885_s3] ss:$0 sm:$0xff] }
  0xd6   : > { %3098 = vmatprep.mubr.f32.mxu1 %v377_v2 }
  0xd8   : > { %3042 = vmatmul.mubr.f32.vlgmr.msra.gmra.mrb[2].mxu0 %v340_v3 }
  0xd9   : > { %3044 = vmatprep.mubr.f32.mxu0 %v341_v4  ;;  %3099 = vmatmul.mubr.f32.gmra.mrb[14].mxu1 %v378_v5 }
  0xda   : > { %3101 = vmatprep.mubr.f32.mxu1 %v379_v6 }
  0xdc   : > { %3045 = vmatmul.mubr.f32.gmra.mrb[4].mxu0 %v342_v7 }
  0xdd   : > { %3047 = vmatprep.mubr.f32.mxu0 %v343_v8  ;;  %3102 = vmatmul.mubr.f32.gmra.mrb[16].mxu1 %v380_v9 }
  0xde   : > { %3104 = vmatprep.mubr.f32.mxu1 %v381_v10 }
  0xe0   : > { %3048 = vmatmul.mubr.f32.gmra.mrb[6].mxu0 %v344_v11 }
  0xe1   : > { %3050 = vmatprep.mubr.f32.mxu0 %v345_v12  ;;  %3105 = vmatmul.mubr.f32.gmra.mrb[18].mxu1 %v382_v13 }
  0xe2   : > { %3107 = vmatprep.mubr.f32.mxu1 %v383_v14 }
  0xe4   : > { %3051 = vmatmul.mubr.f32.gmra.mrb[8].mxu0 %v346_v15 }
  0xe5   : > { %3053 = vmatprep.mubr.f32.mxu0 %v347_v16  ;;  %3108 = vmatmul.mubr.f32.gmra.mrb[20].mxu1 %v384_v17 }
  0xe6   : > { %3110 = vmatprep.mubr.f32.mxu1 %v385_v18 }
  0xe8   : > { %3054 = vmatmul.mubr.f32.gmra.mrb[10].mxu0 %v348_v19 }
  0xe9   : > { %3056 = vmatprep.mubr.f32.mxu0 %v349_v20  ;;  %3111 = vmatmul.mubr.f32.gmra.mrb[22].mxu1 %v386_v21 }
  0xea   : > { %3113 = vmatprep.mubr.f32.mxu1 %v387_v22 }
  0xec   : > { %3057 = vmatmul.mubr.f32.gmra.mrb[12].mxu0 %v350_v23 }
  0xed   : > { %3059 = vmatprep.mubr.f32.mxu0 %v351_v24  ;;  %3114 = vmatmul.mubr.f32.gmra.mrb[24].mxu1 %v388_v25 }
  0xee   : > { %3116 = vmatprep.mubr.f32.mxu1 %v389_v26 }
  0xf0   : > { %3060 = vmatmul.mubr.f32.gmra.mrb[14].mxu0 %v352_v27 }
  0xf1   : > { %3062 = vmatprep.mubr.f32.mxu0 %v353_v28  ;;  %3117 = vmatmul.mubr.f32.gmra.mrb[26].mxu1 %v390_v29 }
  0xf2   : > { %3119 = vmatprep.mubr.f32.mxu1 %v391_v30 }
  0xf4   : > { %3063 = vmatmul.mubr.f32.gmra.mrb[16].mxu0 %v354_v31 }
  0xf5   : > { %3065 = vmatprep.mubr.f32.mxu0 %v355_v32  ;;  %3120 = vmatmul.mubr.f32.gmra.mrb[28].mxu1 %v392_v33 }
  0xf6   : > { %3122 = vmatprep.mubr.f32.mxu1 %v393_v34 }
  0xf8   : > { %3066 = vmatmul.mubr.f32.gmra.mrb[18].mxu0 %v356_v35 }
  0xf9   : > { %3068 = vmatprep.mubr.f32.mxu0 %v357_v36  ;;  %3123 = vmatmul.mubr.f32.gmra.mrb[30].mxu1 %v394_v37 }
  0xfa   : > { %3125 = vmatprep.mubr.f32.mxu1 %v395_v38 }
  0xfc   : > { %3069 = vmatmul.mubr.f32.gmra.mrb[20].mxu0 %v358_v39 }
  0xfd   : > { %3071 = vmatprep.mubr.f32.mxu0 %v359_v40  ;;  %3126 = vmatmul.mubr.f32.gmra.mrb[32].mxu1 %v396_v41 }
  0xfe   : > { %3128 = vmatprep.mubr.f32.mxu1 %v397_v42 }
 0x100   : > { %3072 = vmatmul.mubr.f32.gmra.mrb[22].mxu0 %v360_v43 }
 0x101   : > { %3074 = vmatprep.mubr.f32.mxu0 %v361_v44  ;;  %3129 = vmatmul.mubr.f32.gmra.mrb[34].mxu1 %v398_v45 }
 0x102   : > { %3131 = vmatprep.mubr.f32.mxu1 %v399_v46 }
 0x104   : > { %3075 = vmatmul.mubr.f32.gmra.mrb[24].mxu0 %v362_v47 }
 0x105   : > { %3132 = vmatmul.mubr.f32.gmra.mrb[36].mxu1 %v400_v48 }
 0x106   : > { %3134 = vmatprep.mubr.f32.mxu1 %v401_v49 }
 0x109   : > { %3135 = vmatmul.mubr.f32.gmra.mrb[38].mxu1 %v402_v50 }
 0x18b   : > { %v492_v52 = vpop.f32.mrb[0].mxu0 }
 0x18c   : > { %v4201_v53 = vadd.f32 %v2869_v51, %v492_v52  ;;  %v3008_v54 = vpop.f32.mrb[1].mxu0 }
 0x18e   : > { %v904_v55 = vmul.f32 %v4201_v53, %v4201_v53 }
 0x190   : > { %905 = vadd.xlane.f32.xlu0 %v904_v55  ;;  %v3079_v57 = vpop.f32.mrb[0].mxu1 }
 0x191   : > { %v4211_v58 = vadd.f32 %v3079_v57, %v4208_v56  ;;  %v705_v59 = vpop.f32.mrb[1].mxu1 }
 0x192   : > { %v4214_v60 = vadd.f32 %v4208_v56, %v705_v59 }
 0x193   : > { %v1217_v61 = vmul.f32 %v4211_v58, %v4211_v58 }
 0x194   : > { %v3082_v62 = vpop.f32.mrb[2].mxu1  ;;  %v1216_v63 = vmul.f32 %v4214_v60, %v4214_v60 }
 0x195   : > { %v4221_v0 = vadd.f32 %v3082_v62, %v4208_v56  ;;  %1306 = vadd.xlane.f32.xlu0 %v1217_v61  ;;  %v715_v1 = vpop.f32.mrb[3].mxu1 }
 0x196   : > { %v4224_v2 = vadd.f32 %v4208_v56, %v715_v1  ;;  %1304 = vadd.xlane.f32.xlu1 %v1216_v63 }
 0x197   : > { %v1219_v3 = vmul.f32 %v4221_v0, %v4221_v0 }
 0x198   : > { %v3085_v4 = vpop.f32.mrb[4].mxu1  ;;  %v1218_v5 = vmul.f32 %v4224_v2, %v4224_v2 }
 0x199   : > { %v4231_v6 = vadd.f32 %v3085_v4, %v4208_v56  ;;  %1310 = vadd.xlane.f32.xlu0 %v1219_v3  ;;  %v725_v7 = vpop.f32.mrb[5].mxu1 }
 0x19a   : > { %v4234_v8 = vadd.f32 %v4208_v56, %v725_v7  ;;  %1308 = vadd.xlane.f32.xlu1 %v1218_v5 }
 0x19b   : > { %v1221_v9 = vmul.f32 %v4231_v6, %v4231_v6 }
 0x19c   : > { %v3088_v10 = vpop.f32.mrb[6].mxu1  ;;  %v1220_v11 = vmul.f32 %v4234_v8, %v4234_v8 }
 0x19d   : > { %v4241_v12 = vadd.f32 %v3088_v10, %v4208_v56  ;;  %1314 = vadd.xlane.f32.xlu0 %v1221_v9  ;;  %v735_v13 = vpop.f32.mrb[7].mxu1 }
 0x19e   : > { %v4244_v14 = vadd.f32 %v4208_v56, %v735_v13  ;;  %1312 = vadd.xlane.f32.xlu1 %v1220_v11 }
 0x19f   : > { %v1223_v15 = vmul.f32 %v4241_v12, %v4241_v12 }
 0x1a0   : > { %v3091_v16 = vpop.f32.mrb[8].mxu1  ;;  %v1222_v17 = vmul.f32 %v4244_v14, %v4244_v14 }
 0x1a1   : > { %v4251_v18 = vadd.f32 %v3091_v16, %v4208_v56  ;;  %1318 = vadd.xlane.f32.xlu0 %v1223_v15  ;;  %v745_v19 = vpop.f32.mrb[9].mxu1 }
 0x1a2   : > { %v4254_v20 = vadd.f32 %v4208_v56, %v745_v19  ;;  %1316 = vadd.xlane.f32.xlu1 %v1222_v17 }
 0x1a3   : > { %v1225_v21 = vmul.f32 %v4251_v18, %v4251_v18 }
 0x1a4   : > { %v3094_v22 = vpop.f32.mrb[10].mxu1  ;;  %v1224_v23 = vmul.f32 %v4254_v20, %v4254_v20 }
 0x1a5   : > { %v4261_v24 = vadd.f32 %v3094_v22, %v4208_v56  ;;  %1322 = vadd.xlane.f32.xlu0 %v1225_v21  ;;  %v755_v25 = vpop.f32.mrb[11].mxu1 }
 0x1a6   : > { %v4264_v26 = vadd.f32 %v4208_v56, %v755_v25  ;;  %1320 = vadd.xlane.f32.xlu1 %v1224_v23 }
 0x1a7   : > { %v1227_v27 = vmul.f32 %v4261_v24, %v4261_v24 }
 0x1a8   : > { %v3097_v28 = vpop.f32.mrb[12].mxu1  ;;  %v1226_v29 = vmul.f32 %v4264_v26, %v4264_v26 }
 0x1a9   : > { %v4271_v30 = vadd.f32 %v3097_v28, %v4208_v56  ;;  %1326 = vadd.xlane.f32.xlu0 %v1227_v27  ;;  %v765_v31 = vpop.f32.mrb[13].mxu1 }
 0x1aa   : > { %v4274_v33 = vadd.f32 %v4208_v56, %v765_v31  ;;  %1324 = vadd.xlane.f32.xlu1 %v1226_v29 }
 0x1ab   : > { %v3043_v32 = vpop.f32.mrb[2].mxu0  ;;  %v1229_v35 = vmul.f32 %v4271_v30, %v4271_v30 }
 0x1ac   : > { %v585_v34 = vpop.f32.mrb[3].mxu0  ;;  %v3100_v36 = vpop.f32.mrb[14].mxu1  ;;  %v1228_v37 = vmul.f32 %v4274_v33, %v4274_v33  ;;  %v4284_v39 = vadd.f32 %v3043_v32, %v4208_v56 }
 0x1ad   : > { %v4281_v38 = vadd.f32 %v3100_v36, %v4208_v56  ;;  %1330 = vadd.xlane.f32.xlu0 %v1229_v35  ;;  %v775_v40 = vpop.f32.mrb[15].mxu1  ;;  %v4290_v43 = vadd.f32 %v4208_v56, %v585_v34 }
 0x1ae   : > { %v4287_v42 = vadd.f32 %v4208_v56, %v775_v40  ;;  %1328 = vadd.xlane.f32.xlu1 %v1228_v37  ;;  %v1193_v49 = vmul.f32 %v4284_v39, %v4284_v39 }
 0x1af   : > { %v3046_v41 = vpop.f32.mrb[4].mxu0  ;;  %v1231_v45 = vmul.f32 %v4281_v38, %v4281_v38  ;;  %v1192_v54 = vmul.f32 %v4290_v43, %v4290_v43 }
 0x1b0   : > { %v595_v44 = vpop.f32.mrb[5].mxu0  ;;  %v3103_v46 = vpop.f32.mrb[16].mxu1  ;;  %v1230_v47 = vmul.f32 %v4287_v42, %v4287_v42  ;;  %v4307_v59 = vadd.f32 %v3046_v41, %v4208_v56 }
 0x1b1   : > { %1334 = vadd.xlane.f32.xlu0 %v1231_v45  ;;  %v4297_v48 = vadd.f32 %v3103_v46, %v4208_v56  ;;  %v785_v50 = vpop.f32.mrb[17].mxu1  ;;  %v4312_v1 = vadd.f32 %v4208_v56, %v595_v44 }
 0x1b2   : > { %1332 = vadd.xlane.f32.xlu1 %v1230_v47  ;;  %v4302_v52 = vadd.f32 %v4208_v56, %v785_v50  ;;  %v1195_v9 = vmul.f32 %v4307_v59, %v4307_v59 }
 0x1b3   : > { %v3049_v51 = vpop.f32.mrb[6].mxu0  ;;  %v1233_v61 = vmul.f32 %v4297_v48, %v4297_v48  ;;  %v1194_v15 = vmul.f32 %v4312_v1, %v4312_v1 }
 0x1b4   : > { %v605_v55 = vpop.f32.mrb[7].mxu0  ;;  %v3106_v57 = vpop.f32.mrb[18].mxu1  ;;  %v1232_v3 = vmul.f32 %v4302_v52, %v4302_v52  ;;  %v4327_v19 = vadd.f32 %v3049_v51, %v4208_v56 }
 0x1b5   : > { %1258 = vadd.xlane.f32.xlu0 %v1193_v49  ;;  %v795_v62 = vpop.f32.mrb[19].mxu1  ;;  %v4317_v7 = vadd.f32 %v3106_v57, %v4208_v56  ;;  %v4332_v25 = vadd.f32 %v4208_v56, %v605_v55 }
 0x1b6   : > { %1256 = vadd.xlane.f32.xlu1 %v1192_v54  ;;  %v4322_v13 = vadd.f32 %v4208_v56, %v795_v62  ;;  %v1197_v32 = vmul.f32 %v4327_v19, %v4327_v19 }
 0x1b7   : > { %v3052_v63 = vpop.f32.mrb[8].mxu0  ;;  %5963 = vst [vmem:[#allocation16_spill] sm:$0xff] %v4317_v7  ;;  %v1235_v21 = vmul.f32 %v4317_v7, %v4317_v7  ;;  %v1196_v37 = vmul.f32 %v4332_v25, %v4332_v25 }
 0x1b8   : > { %v615_v4 = vpop.f32.mrb[9].mxu0  ;;  %v3109_v5 = vpop.f32.mrb[20].mxu1  ;;  %5964 = vst [vmem:[#allocation17_spill] sm:$0xff] %v4322_v13  ;;  %v1234_v27 = vmul.f32 %v4322_v13, %v4322_v13  ;;  %v4351_v44 = vadd.f32 %v3052_v63, %v4208_v56 }
 0x1b9   : > { %1338 = vadd.xlane.f32.xlu0 %v1233_v61  ;;  %v805_v10 = vpop.f32.mrb[21].mxu1  ;;  %v4337_v31 = vadd.f32 %v3109_v5, %v4208_v56  ;;  %v4358_v49 = vadd.f32 %v4208_v56, %v615_v4 }
 0x1ba   : > { %1336 = vadd.xlane.f32.xlu1 %v1232_v3  ;;  %v4344_v36 = vadd.f32 %v4208_v56, %v805_v10  ;;  %v1199_v57 = vmul.f32 %v4351_v44, %v4351_v44 }
 0x1bb   : > { %v3055_v11 = vpop.f32.mrb[10].mxu0  ;;  %5965 = vst [vmem:[#allocation18_spill] sm:$0xff] %v4337_v31  ;;  %v1237_v45 = vmul.f32 %v4337_v31, %v4337_v31  ;;  %v1198_v3 = vmul.f32 %v4358_v49, %v4358_v49 }
 0x1bc   : > { %v625_v16 = vpop.f32.mrb[11].mxu0  ;;  %v3112_v17 = vpop.f32.mrb[22].mxu1  ;;  %5966 = vst [vmem:[#allocation19_spill] sm:$0xff] %v4344_v36  ;;  %v1236_v50 = vmul.f32 %v4344_v36, %v4344_v36 }
 0x1bd   : > { %1262 = vadd.xlane.f32.xlu0 %v1195_v9  ;;  %v815_v22 = vpop.f32.mrb[23].mxu1  ;;  %v4365_v55 = vadd.f32 %v3112_v17, %v4208_v56  ;;  %v4379_v9 = vadd.f32 %v3055_v11, %v4208_v56 }
 0x1be   : > { %1260 = vadd.xlane.f32.xlu1 %v1194_v15  ;;  %v4372_v63 = vadd.f32 %v4208_v56, %v815_v22 }
 0x1bf   : > { %v3058_v23 = vpop.f32.mrb[12].mxu0  ;;  %5967 = vst [vmem:[#allocation20_spill] sm:$0xff] %v4365_v55  ;;  %v1239_v10 = vmul.f32 %v4365_v55, %v4365_v55 }
 0x1c0   : > { %v635_v28 = vpop.f32.mrb[13].mxu0  ;;  %v3115_v29 = vpop.f32.mrb[24].mxu1  ;;  %5968 = vst [vmem:[#allocation21_spill] sm:$0xff] %v4372_v63  ;;  %v1238_v22 = vmul.f32 %v4372_v63, %v4372_v63 }
 0x1c1   : > { %1342 = vadd.xlane.f32.xlu0 %v1235_v21  ;;  %v825_v34 = vpop.f32.mrb[25].mxu1  ;;  %v4386_v21 = vadd.f32 %v4208_v56, %v625_v16  ;;  %v4393_v11 = vadd.f32 %v3115_v29, %v4208_v56  ;;  %v4409_v29 = vadd.f32 %v3058_v23, %v4208_v56 }
 0x1c2   : > { %1340 = vadd.xlane.f32.xlu1 %v1234_v27  ;;  %v4402_v16 = vadd.f32 %v4208_v56, %v825_v34  ;;  %v4418_v34 = vadd.f32 %v4208_v56, %v635_v28 }
 0x1c3   : > { %v4341_v35 = vpop.f32.mrb[14].mxu0  ;;  %5969 = vst [vmem:[#allocation22_spill] sm:$0xff] %v4393_v11  ;;  %v1241_v55 = vmul.f32 %v4393_v11, %v4393_v11  ;;  %v1203_v11 = vmul.f32 %v4409_v29, %v4409_v29 }
 0x1c4   : > { %v4348_v40 = vpop.f32.mrb[15].mxu0  ;;  %v3118_v41 = vpop.f32.mrb[26].mxu1  ;;  %5970 = vst [vmem:[#allocation23_spill] sm:$0xff] %v4402_v16  ;;  %v1202_v28 = vmul.f32 %v4418_v34, %v4418_v34 }
 0x1c5   : > { %1266 = vadd.xlane.f32.xlu0 %v1197_v32  ;;  %v835_v46 = vpop.f32.mrb[27].mxu1  ;;  %v4425_v23 = vadd.f32 %v3118_v41, %v4208_v56 }
 0x1c6   : > { %1264 = vadd.xlane.f32.xlu1 %v1196_v37  ;;  %v1201_v37 = vmul.f32 %v4379_v9, %v4379_v9 }
 0x1c7   : > { %v4355_v47 = vpop.f32.mrb[16].mxu0  ;;  %5971 = vst [vmem:[#allocation24_spill] sm:$0xff] %v4425_v23  ;;  %v1243_v41 = vmul.f32 %v4425_v23, %v4425_v23 }
 0x1c8   : > { %v4362_v51 = vpop.f32.mrb[17].mxu0  ;;  %v3121_v54 = vpop.f32.mrb[28].mxu1 }
 0x1c9   : > { %1346 = vadd.xlane.f32.xlu0 %v1237_v45  ;;  %v845_v61 = vpop.f32.mrb[29].mxu1 }
 0x1ca   : > { %1344 = vadd.xlane.f32.xlu1 %v1236_v50  ;;  %v4458_v23 = vadd.f32 %v4208_v56, %v845_v61 }
 0x1cb   : > { %v4369_v62 = vpop.f32.mrb[18].mxu0 }
 0x1cc   : > { %v4376_v4 = vpop.f32.mrb[19].mxu0  ;;  %v3124_v5 = vpop.f32.mrb[30].mxu1  ;;  %v1244_v61 = vmul.f32 %v4458_v23, %v4458_v23 }
 0x1cd   : > { %1270 = vadd.xlane.f32.xlu0 %v1199_v57  ;;  %v855_v15 = vpop.f32.mrb[31].mxu1  ;;  %v1200_v57 = vmul.f32 %v4386_v21, %v4386_v21 }
 0x1ce   : > { %1268 = vadd.xlane.f32.xlu1 %v1198_v3 }
 0x1cf   : > { %v4383_v17 = vpop.f32.mrb[20].mxu0 }
 0x1d0   : > { %v4390_v27 = vpop.f32.mrb[21].mxu0  ;;  %v3127_v32 = vpop.f32.mrb[32].mxu1 }
 0x1d1   : > { %1350 = vadd.xlane.f32.xlu0 %v1239_v10  ;;  %v4397_v45 = vpop.f32.mrb[33].mxu1 }
 0x1d2   : > { %1348 = vadd.xlane.f32.xlu1 %v1238_v22  ;;  %v1240_v22 = vmul.f32 %v4402_v16, %v4402_v16 }
 0x1d3   : > { %v4399_v50 = vpop.f32.mrb[22].mxu0 }
 0x1d4   : > { %v4406_v3 = vpop.f32.mrb[23].mxu0  ;;  %v3130_v10 = vpop.f32.mrb[34].mxu1 }
 0x1d5   : > { %1274 = vadd.xlane.f32.xlu0 %v1201_v37  ;;  %v4413_v63 = vpop.f32.mrb[35].mxu1 }
 0x1d6   : > { %1272 = vadd.xlane.f32.xlu1 %v1200_v57  ;;  %v4432_v57 = vadd.f32 %v4208_v56, %v835_v46  ;;  %v4448_v46 = vadd.f32 %v4208_v56, %v4348_v40  ;;  %v4464_v40 = vadd.f32 %v4355_v47, %v4208_v56  ;;  %v4481_v47 = vadd.f32 %v4208_v56, %v4376_v4 }
 0x1d7   : > { %v4415_v31 = vpop.f32.mrb[24].mxu0  ;;  %v4497_v4 = vadd.f32 %v4369_v62, %v4208_v56 }
 0x1d8   : > { %v4422_v36 = vpop.f32.mrb[25].mxu0  ;;  %v3133_v37 = vpop.f32.mrb[36].mxu1 }
 0x1d9   : > { %1354 = vadd.xlane.f32.xlu0 %v1241_v55  ;;  %v4429_v7 = vpop.f32.mrb[37].mxu1  ;;  %v4440_v55 = vadd.f32 %v4341_v35, %v4208_v56  ;;  %v1209_v62 = vmul.f32 %v4497_v4, %v4497_v4 }
 0x1da   : > { %1352 = vadd.xlane.f32.xlu1 %v1240_v22  ;;  %v1242_v22 = vmul.f32 %v4432_v57, %v4432_v57 }
 0x1db   : > { %v1205_v35 = vmul.f32 %v4440_v55, %v4440_v55 }
 0x1dc   : > { %v4436_v16 = vpop.f32.mrb[38].mxu1 }
 0x1dd   : > { %1278 = vadd.xlane.f32.xlu0 %v1203_v11  ;;  %v4444_v13 = vpop.f32.mrb[39].mxu1  ;;  %v4453_v11 = vadd.f32 %v3121_v54, %v4208_v56  ;;  %v4470_v54 = vadd.f32 %v4208_v56, %v4362_v51  ;;  %v4486_v51 = vadd.f32 %v4208_v56, %v855_v15  ;;  %v4503_v15 = vadd.f32 %v4208_v56, %v4390_v27 }
 0x1de   : > { %1276 = vadd.xlane.f32.xlu1 %v1202_v28  ;;  %v1204_v28 = vmul.f32 %v4448_v46, %v4448_v46  ;;  %v4520_v27 = vadd.f32 %v4383_v17, %v4208_v56 }
 0x1df   : > { %5973 = vst [vmem:[#allocation26_spill] sm:$0xff] %v4486_v51 }
 0x1e0   : > { %v1211_v17 = vmul.f32 %v4520_v27, %v4520_v27 }
 0x1e1   : > { %1358 = vadd.xlane.f32.xlu0 %v1243_v41  ;;  %v1245_v41 = vmul.f32 %v4453_v11, %v4453_v11 }
 0x1e2   : > { %1356 = vadd.xlane.f32.xlu1 %v1242_v22  ;;  %v4475_v22 = vadd.f32 %v3124_v5, %v4208_v56  ;;  %v4491_v5 = vadd.f32 %v3127_v32, %v4208_v56 }
 0x1e4   : > { %5972 = vst [vmem:[#allocation25_spill] sm:$0xff] %v4475_v22  ;;  %5974 = vst [vmem:[#allocation27_spill] sm:$0xff] %v4491_v5  ;;  %v1249_v32 = vmul.f32 %v4491_v5, %v4491_v5 }
 0x1e5   : > { %1282 = vadd.xlane.f32.xlu0 %v1205_v35  ;;  %v1207_v35 = vmul.f32 %v4464_v40, %v4464_v40 }
 0x1e6   : > { %1280 = vadd.xlane.f32.xlu1 %v1204_v28  ;;  %v1206_v28 = vmul.f32 %v4470_v54, %v4470_v54 }
 0x1e9   : > { %1362 = vadd.xlane.f32.xlu0 %v1245_v41  ;;  %v1247_v41 = vmul.f32 %v4475_v22, %v4475_v22 }
 0x1ea   : > { %1360 = vadd.xlane.f32.xlu1 %v1244_v61  ;;  %v1208_v61 = vmul.f32 %v4481_v47, %v4481_v47 }
 0x1ed   : > { %1286 = vadd.xlane.f32.xlu0 %v1207_v35  ;;  %v1246_v35 = vmul.f32 %v4486_v51, %v4486_v51 }
 0x1ee   : > { %1284 = vadd.xlane.f32.xlu1 %v1206_v28  ;;  %v4509_v28 = vadd.f32 %v4208_v56, %v4397_v45  ;;  %v4526_v45 = vadd.f32 %v4208_v56, %v4406_v3  ;;  %v4543_v3 = vadd.f32 %v4399_v50, %v4208_v56  ;;  %v4557_v50 = vadd.f32 %v4415_v31, %v4208_v56 }
 0x1f0   : > { %5975 = vst [vmem:[#allocation28_spill] sm:$0xff] %v4509_v28 }
 0x1f1   : > { %1366 = vadd.xlane.f32.xlu0 %v1247_v41  ;;  %v4514_v41 = vadd.f32 %v3130_v10, %v4208_v56 }
 0x1f2   : > { %1288 = vadd.xlane.f32.xlu1 %v1208_v61  ;;  %v1210_v61 = vmul.f32 %v4503_v15, %v4503_v15 }
 0x1f3   : > { %5976 = vst [vmem:[#allocation29_spill] sm:$0xff] %v4514_v41  ;;  %v1251_v10 = vmul.f32 %v4514_v41, %v4514_v41 }
 0x1f5   : > { %1364 = vadd.xlane.f32.xlu0 %v1246_v35  ;;  %v1248_v35 = vmul.f32 %v4509_v28, %v4509_v28 }
 0x1f6   : > { %1370 = vadd.xlane.f32.xlu1 %v1249_v32  ;;  %v4532_v32 = vadd.f32 %v4208_v56, %v4413_v63  ;;  %v4549_v63 = vadd.f32 %v4208_v56, %v4429_v7  ;;  %v1215_v7 = vmul.f32 %v4557_v50, %v4557_v50 }
 0x1f8   : > { %5977 = vst [vmem:[#allocation30_spill] sm:$0xff] %v4532_v32  ;;  %5979 = vst [vmem:[#allocation32_spill] sm:$0xff] %v4549_v63 }
 0x1f9   : > { %1290 = vadd.xlane.f32.xlu0 %v1209_v62  ;;  %v4537_v62 = vadd.f32 %v3133_v37, %v4208_v56 }
 0x1fa   : > { %1292 = vadd.xlane.f32.xlu1 %v1210_v61  ;;  %v1212_v61 = vmul.f32 %v4526_v45, %v4526_v45 }
 0x1fb   : > { %5978 = vst [vmem:[#allocation31_spill] sm:$0xff] %v4537_v62  ;;  %v1253_v37 = vmul.f32 %v4537_v62, %v4537_v62 }
 0x1fd   : > { %1368 = vadd.xlane.f32.xlu0 %v1248_v35  ;;  %v1250_v35 = vmul.f32 %v4532_v32, %v4532_v32 }
 0x1fe   : > { %1374 = vadd.xlane.f32.xlu1 %v1251_v10  ;;  %v1213_v10 = vmul.f32 %v4543_v3, %v4543_v3 }
 0x201   : > { %1294 = vadd.xlane.f32.xlu0 %v1211_v17  ;;  %v1252_v17 = vmul.f32 %v4549_v63, %v4549_v63  ;;  %v5909_v63 = vlaneseq }
 0x202   : > { %1296 = vadd.xlane.f32.xlu1 %v1212_v61  ;;  %v4563_v61 = vadd.f32 %v4208_v56, %v4422_v36 }
 0x205   : > { %1372 = vadd.xlane.f32.xlu0 %v1250_v35  ;;  %v1214_v35 = vmul.f32 %v4563_v61, %v4563_v61 }
 0x206   : > { %1378 = vadd.xlane.f32.xlu1 %v1253_v37  ;;  %v3819_v37 = vmov 1966171168  }
 0x207   : > { %v913_v41 = vunpack.c.l.s4 %v3819_v37 }
 0x209   : > { %1298 = vadd.xlane.f32.xlu0 %v1213_v10  ;;  %v914_v36 = vunpack.c.0.s8 %v913_v41  ;;  %v4572_v10 = vshrl.u32 %v5909_v63, 7 }
 0x20a   : > { %1376 = vadd.xlane.f32.xlu1 %v1252_v17 }
 0x20b   : > { %5981 = vst [vmem:[#allocation34_spill] sm:$0xff] %v4572_v10  ;;  %v4579_v28 = vsub.s32 %v914_v36, %v4572_v10  ;;  %v4590_v63 = vsub.s32 0, %v4572_v10 }
 0x20d   : > { %1302 = vadd.xlane.f32.xlu0 %v1215_v7  ;;  %5987 = vst [vmem:[#allocation40_spill] sm:$0xff] %v4590_v63 }
 0x20e   : > { %1300 = vadd.xlane.f32.xlu1 %v1214_v35 }
 0x21d   : > { %v906_v31 = vpop.xlane.xlu0 %905 }
 0x21e   : > { %v907_v62 = vmax.f32 %v906_v31, 1e-24 }
 0x220   : > { %3290 = vrsqrt.f32 %v907_v62 }
 0x222   : > { %v4569_v32 = vpop.xlane.xlu0 %1306 }
 0x223   : > { %5980 = vst [vmem:[#allocation33_spill] sm:$0xff] %v4569_v32  ;;  %v4574_v5 = vpop.xlane.xlu1 %1304 }
 0x224   : > { %5982 = vst [vmem:[#allocation35_spill] sm:$0xff] %v4574_v5 }
 0x226   : > { %v4576_v17 = vpop.xlane.xlu0 %1310 }
 0x227   : > { %5983 = vst [vmem:[#allocation36_spill] sm:$0xff] %v4576_v17  ;;  %v4581_v7 = vpop.xlane.xlu1 %1308 }
 0x228   : > { %5984 = vst [vmem:[#allocation37_spill] sm:$0xff] %v4581_v7 }
 0x22a   : > { %v3291_v35 = vpop.eup %3290  ;;  %v4584_v31 = vpop.xlane.xlu0 %1314 }
 0x22b   : > { %v909_v62 = vmul.f32 %v3291_v35, %v4201_v53  ;;  %5985 = vst [vmem:[#allocation38_spill] sm:$0xff] %v4584_v31  ;;  %v4587_v32 = vpop.xlane.xlu1 %1312 }
 0x22c   : > { %5986 = vst [vmem:[#allocation39_spill] sm:$0xff] %v4587_v32 }
 0x22d   : > { %v911_v37 = vcombine.high %v909_v62, %v909_v62  ;;  %v918_v41 = vrot.slane %v909_v62, %v4579_v28 }
 0x22e   : > { %v4596_v5 = vpop.xlane.xlu0 %1318 }
 0x22f   : > { %v4593_v17 = vrot.slane %v911_v37, %v4579_v28  ;;  %v934_v36 = vrot.slane %v918_v41, %v4579_v28  ;;  %5988 = vst [vmem:[#allocation41_spill] sm:$0xff] %v4596_v5  ;;  %v4600_v35 = vpop.xlane.xlu1 %1316  ;;  %v4614_v5 = vadd.f32 %v4436_v16, %v4208_v56 }
 0x230   : > { %5989 = vst [vmem:[#allocation42_spill] sm:$0xff] %v4600_v35  ;;  %v4618_v35 = vadd.f32 %v4208_v56, %v4444_v13 }
 0x231   : > { %v927_v53 = vcombine.high %v4593_v17, %v4593_v17  ;;  %v963_v31 = vrot.slane %v934_v36, %v4590_v63 }
 0x232   : > { %v4608_v37 = vpop.xlane.xlu0 %1322 }
 0x233   : > { %v4604_v62 = vrot.slane %v927_v53, %v4579_v28  ;;  %v1001_v10 = vmul.f32 %v963_v31, %v4284_v39  ;;  %v1000_v32 = vmul.f32 %v963_v31, %v4290_v43  ;;  %5990 = vst [vmem:[#allocation43_spill] sm:$0xff] %v4608_v37  ;;  %v4620_v22 = vpop.xlane.xlu1 %1320  ;;  %v926_v43 = vcombine.high %v918_v41, %v918_v41 }
 0x234   : > { %v1002_v53 = vmul.f32 %v963_v31, %v4312_v1  ;;  %v1003_v37 = vmul.f32 %v963_v31, %v4307_v59  ;;  %v1004_v1 = vmul.f32 %v963_v31, %v4332_v25  ;;  %v1005_v59 = vmul.f32 %v963_v31, %v4327_v19 }
 0x235   : > { %v959_v7 = vcombine.high %v4604_v62, %v4604_v62  ;;  %1066 = vadd.xlane.f32.xlu1 %v1001_v10  ;;  %1064 = vadd.xlane.f32.xlu0 %v1000_v32  ;;  %v4640_v32 = vrot.slane %v926_v43, %v4579_v28 }
 0x236   : > { %v4627_v51 = vpop.xlane.xlu0 %1326 }
 0x237   : > { %v4623_v39 = vrot.slane %v959_v7, %v4590_v63  ;;  %v4637_v13 = vpop.xlane.xlu1 %1324  ;;  %v967_v41 = vrot.slane %v4640_v32, %v4590_v63 }
 0x238   : > { %5991 = vst [vmem:[#allocation44_spill] sm:$0xff] %v4637_v13  ;;  %v1006_v13 = vmul.f32 %v963_v31, %v4358_v49 }
 0x239   : > { %v4631_v16 = vmul.f32 %v4623_v39, %v4614_v5  ;;  %v4635_v56 = vmul.f32 %v4623_v39, %v4618_v35  ;;  %1068 = vadd.xlane.f32.xlu1 %v1002_v53  ;;  %1070 = vadd.xlane.f32.xlu0 %v1003_v37  ;;  %v1007_v37 = vmul.f32 %v963_v31, %v4351_v44 }
 0x23a   : > { %v4644_v10 = vpop.xlane.xlu0 %1330  ;;  %v1008_v19 = vmul.f32 %v967_v41, %v4386_v21  ;;  %v1009_v25 = vmul.f32 %v967_v41, %v4379_v9  ;;  %v1010_v49 = vmul.f32 %v967_v41, %v4418_v34  ;;  %v1011_v44 = vmul.f32 %v967_v41, %v4409_v29 }
 0x23b   : > { %v4646_v7 = vpop.xlane.xlu1 %1328  ;;  %v1012_v21 = vmul.f32 %v967_v41, %v4448_v46  ;;  %v1013_v9 = vmul.f32 %v967_v41, %v4440_v55  ;;  %v1014_v29 = vmul.f32 %v967_v41, %v4470_v54 }
 0x23c   : > { %5992 = vst [vmem:[#allocation45_spill] sm:$0xff] %v4646_v7 }
 0x23d   : > { %1072 = vadd.xlane.f32.xlu1 %v1004_v1  ;;  %1074 = vadd.xlane.f32.xlu0 %v1005_v59 }
 0x23e   : > { %v4652_v53 = vpop.xlane.xlu0 %1334 }
 0x23f   : > { %v4654_v43 = vpop.xlane.xlu1 %1332 }
 0x241   : > { %1076 = vadd.xlane.f32.xlu1 %v1006_v13  ;;  %1078 = vadd.xlane.f32.xlu0 %v1007_v37  ;;  %v956_v13 = vcombine.high %v934_v36, %v934_v36 }
 0x242   : > { %v4658_v7 = vpop.xlane.xlu0 %1258 }
 0x243   : > { %v4660_v1 = vpop.xlane.xlu1 %1256  ;;  %v971_v34 = vrot.slane %v956_v13, %v4590_v63 }
 0x244   : > { %5993 = vst [vmem:[#allocation46_spill] sm:$0xff] %v4660_v1 }
 0x245   : > { %1080 = vadd.xlane.f32.xlu1 %v1008_v19  ;;  %1082 = vadd.xlane.f32.xlu0 %v1009_v25  ;;  %v1015_v19 = vmul.f32 %v967_v41, %v4464_v40  ;;  %v1016_v55 = vmul.f32 %v971_v34, %v4481_v47  ;;  %v1017_v46 = vmul.f32 %v971_v34, %v4497_v4 }
 0x246   : > { %v4664_v31 = vpop.xlane.xlu0 %1338  ;;  %v1018_v54 = vmul.f32 %v971_v34, %v4503_v15  ;;  %v1019_v40 = vmul.f32 %v971_v34, %v4520_v27  ;;  %v4695_v47 = vrot.slane %v4593_v17, %v4579_v28  ;;  %v1020_v4 = vmul.f32 %v971_v34, %v4526_v45 }
 0x247   : > { %v4666_v59 = vpop.xlane.xlu1 %1336 }
 0x248   : > { %v979_v27 = vrot.slane %v4695_v47, %v4590_v63 }
 0x249   : > { %1084 = vadd.xlane.f32.xlu1 %v1010_v49  ;;  %1086 = vadd.xlane.f32.xlu0 %v1011_v44 }
 0x24a   : > { %v4670_v37 = vpop.xlane.xlu0 %1262  ;;  %v1032_v28 = vmul.f32 %v979_v27, %v4254_v20  ;;  %v1033_v45 = vmul.f32 %v979_v27, %v4251_v18  ;;  %v958_v20 = vcombine.high %v4640_v32, %v4640_v32  ;;  %v1036_v18 = vmul.f32 %v979_v27, %v4274_v33 }
 0x24b   : > { %v4672_v1 = vpop.xlane.xlu1 %1260 }
 0x24d   : > { %1088 = vadd.xlane.f32.xlu1 %v1012_v21  ;;  %1090 = vadd.xlane.f32.xlu0 %v1013_v9  ;;  %v1021_v21 = vmul.f32 %v971_v34, %v4543_v3 }
 0x24e   : > { %v4677_v25 = vpop.xlane.xlu0 %1342 }
 0x24f   : > { %v4679_v49 = vpop.xlane.xlu1 %1340 }
 0x251   : > { %1092 = vadd.xlane.f32.xlu1 %v1014_v29  ;;  %1094 = vadd.xlane.f32.xlu0 %v1015_v19  ;;  %v1022_v29 = vmul.f32 %v971_v34, %v4563_v61  ;;  %v1023_v19 = vmul.f32 %v971_v34, %v4557_v50  ;;  %v1037_v34 = vmul.f32 %v979_v27, %v4271_v30 }
 0x252   : > { %v4683_v36 = vpop.xlane.xlu0 %1266 }
 0x253   : > { %v4685_v44 = vpop.xlane.xlu1 %1264 }
 0x255   : > { %1096 = vadd.xlane.f32.xlu1 %v1016_v55  ;;  %1098 = vadd.xlane.f32.xlu0 %v1017_v46  ;;  %v1034_v55 = vmul.f32 %v979_v27, %v4264_v26  ;;  %v1035_v46 = vmul.f32 %v979_v27, %v4261_v24  ;;  %v1038_v26 = vmul.f32 %v979_v27, %v4287_v42 }
 0x256   : > { %v4689_v41 = vpop.xlane.xlu0 %1346  ;;  %v1039_v24 = vmul.f32 %v979_v27, %v4281_v38 }
 0x257   : > { %v4691_v13 = vpop.xlane.xlu1 %1344 }
 0x259   : > { %1100 = vadd.xlane.f32.xlu1 %v1018_v54  ;;  %1102 = vadd.xlane.f32.xlu0 %v1019_v40  ;;  %v975_v54 = vrot.slane %v958_v20, %v4590_v63  ;;  %v5995_v20 = vld [vmem:[#allocation16_spill] sm:$0xff] }
 0x25a   : > { %v4699_v9 = vpop.xlane.xlu0 %1270 }
 0x25b   : > { %v4701_v15 = vpop.xlane.xlu1 %1268  ;;  %v1024_v32 = vmul.f32 %v975_v54, %v4214_v60  ;;  %v1025_v33 = vmul.f32 %v975_v54, %v4211_v58  ;;  %v1026_v42 = vmul.f32 %v975_v54, %v4224_v2  ;;  %v1027_v38 = vmul.f32 %v975_v54, %v4221_v0 }
 0x25c   : > { %v1028_v27 = vmul.f32 %v975_v54, %v4234_v8  ;;  %v983_v58 = vrot.slane %v4604_v62, %v4590_v63  ;;  %v1031_v2 = vmul.f32 %v975_v54, %v4241_v12  ;;  %v957_v12 = vcombine.high %v4695_v47, %v4695_v47 }
 0x25d   : > { %1104 = vadd.xlane.f32.xlu1 %v1020_v4  ;;  %1106 = vadd.xlane.f32.xlu0 %v1021_v21 }
 0x25e   : > { %v4709_v3 = vpop.xlane.xlu0 %1350  ;;  %v1043_v62 = vmul.f32 %v983_v58, %v5995_v20 }
 0x25f   : > { %v4711_v17 = vpop.xlane.xlu1 %1348 }
 0x261   : > { %1108 = vadd.xlane.f32.xlu1 %v1022_v29  ;;  %1110 = vadd.xlane.f32.xlu0 %v1023_v19  ;;  %v1029_v29 = vmul.f32 %v975_v54, %v4231_v6  ;;  %v1040_v6 = vmul.f32 %v983_v58, %v4302_v52  ;;  %v5997_v52 = vld [vmem:[#allocation18_spill] sm:$0xff] }
 0x262   : > { %v4715_v61 = vpop.xlane.xlu0 %1274 }
 0x263   : > { %v4717_v50 = vpop.xlane.xlu1 %1272 }
 0x265   : > { %1128 = vadd.xlane.f32.xlu1 %v1032_v28  ;;  %1130 = vadd.xlane.f32.xlu0 %v1033_v45  ;;  %v1030_v28 = vmul.f32 %v975_v54, %v4244_v14  ;;  %v1041_v45 = vmul.f32 %v983_v58, %v4297_v48 }
 0x266   : > { %v4726_v40 = vpop.xlane.xlu0 %1354 }
 0x267   : > { %v4728_v4 = vpop.xlane.xlu1 %1352 }
 0x269   : > { %1132 = vadd.xlane.f32.xlu1 %v1034_v55  ;;  %1134 = vadd.xlane.f32.xlu0 %v1035_v46  ;;  %v5994_v55 = vld [vmem:[#allocation17_spill] sm:$0xff] }
 0x26a   : > { %v4732_v30 = vpop.xlane.xlu0 %1278  ;;  %v1042_v46 = vmul.f32 %v983_v58, %v5994_v55 }
 0x26b   : > { %v4734_v21 = vpop.xlane.xlu1 %1276 }
 0x26d   : > { %1136 = vadd.xlane.f32.xlu1 %v1036_v18  ;;  %1138 = vadd.xlane.f32.xlu0 %v1037_v34  ;;  %v5996_v34 = vld [vmem:[#allocation19_spill] sm:$0xff] }
 0x26e   : > { %v4740_v19 = vpop.xlane.xlu0 %1358  ;;  %v1044_v54 = vmul.f32 %v983_v58, %v5996_v34 }
 0x26f   : > { %v4742_v60 = vpop.xlane.xlu1 %1356 }
 0x271   : > { %1140 = vadd.xlane.f32.xlu1 %v1038_v26  ;;  %1142 = vadd.xlane.f32.xlu0 %v1039_v24  ;;  %v1045_v26 = vmul.f32 %v983_v58, %v5997_v52 }
 0x272   : > { %v4748_v0 = vpop.xlane.xlu0 %1282 }
 0x273   : > { %v4750_v8 = vpop.xlane.xlu1 %1280 }
 0x275   : > { %1112 = vadd.xlane.f32.xlu1 %v1024_v32  ;;  %1114 = vadd.xlane.f32.xlu0 %v1025_v33  ;;  %v987_v32 = vrot.slane %v957_v12, %v4590_v63  ;;  %v5998_v33 = vld [vmem:[#allocation21_spill] sm:$0xff] }
 0x276   : > { %v4756_v18 = vpop.xlane.xlu0 %1362 }
 0x277   : > { %v4758_v14 = vpop.xlane.xlu1 %1360  ;;  %v1050_v55 = vmul.f32 %v987_v32, %v4432_v57  ;;  %v1052_v12 = vmul.f32 %v987_v32, %v4458_v23  ;;  %v1053_v34 = vmul.f32 %v987_v32, %v4453_v11 }
 0x279   : > { %1116 = vadd.xlane.f32.xlu1 %v1026_v42  ;;  %1118 = vadd.xlane.f32.xlu0 %v1027_v38  ;;  %v1046_v42 = vmul.f32 %v983_v58, %v5998_v33  ;;  %v5999_v38 = vld [vmem:[#allocation20_spill] sm:$0xff] }
 0x27a   : > { %v4764_v48 = vpop.xlane.xlu0 %1286 }
 0x27b   : > { %v4766_v24 = vpop.xlane.xlu1 %1284 }
 0x27d   : > { %1120 = vadd.xlane.f32.xlu1 %v1028_v27  ;;  %1122 = vadd.xlane.f32.xlu0 %v1029_v29  ;;  %v1047_v27 = vmul.f32 %v983_v58, %v5999_v38  ;;  %v6000_v29 = vld [vmem:[#allocation23_spill] sm:$0xff]  ;;  %v6005_v38 = vld [vmem:[#allocation28_spill] sm:$0xff] }
 0x27e   : > { %v1048_v47 = vmul.f32 %v987_v32, %v6000_v29  ;;  %v6006_v29 = vld [vmem:[#allocation27_spill] sm:$0xff] }
 0x27f   : > { %v1057_v23 = vmul.f32 %v4623_v39, %v6006_v29 }
 0x281   : > { %1124 = vadd.xlane.f32.xlu1 %v1030_v28  ;;  %1126 = vadd.xlane.f32.xlu0 %v1031_v2  ;;  %v6001_v28 = vld [vmem:[#allocation22_spill] sm:$0xff] }
 0x282   : > { %v1049_v2 = vmul.f32 %v987_v32, %v6001_v28  ;;  %v6007_v28 = vld [vmem:[#allocation30_spill] sm:$0xff] }
 0x285   : > { %1144 = vadd.xlane.f32.xlu1 %v1040_v6  ;;  %1146 = vadd.xlane.f32.xlu0 %v1041_v45  ;;  %v4773_v6 = vpop.xlane.xlu0 %1366  ;;  %v4775_v45 = vpop.xlane.xlu1 %1288 }
 0x289   : > { %1148 = vadd.xlane.f32.xlu1 %v1042_v46  ;;  %1150 = vadd.xlane.f32.xlu0 %v1043_v62  ;;  %v6002_v46 = vld [vmem:[#allocation24_spill] sm:$0xff]  ;;  %v4779_v62 = vpop.xlane.xlu0 %1364  ;;  %v4781_v58 = vpop.xlane.xlu1 %1370 }
 0x28a   : > { %v1051_v20 = vmul.f32 %v987_v32, %v6002_v46  ;;  %v6009_v46 = vld [vmem:[#allocation31_spill] sm:$0xff] }
 0x28d   : > { %1152 = vadd.xlane.f32.xlu1 %v1044_v54  ;;  %1154 = vadd.xlane.f32.xlu0 %v1045_v26  ;;  %v6003_v54 = vld [vmem:[#allocation26_spill] sm:$0xff]  ;;  %v6004_v26 = vld [vmem:[#allocation25_spill] sm:$0xff]  ;;  %v4789_v57 = vpop.xlane.xlu1 %1292 }
 0x28e   : > { %v1054_v52 = vmul.f32 %v987_v32, %v6003_v54  ;;  %v1055_v33 = vmul.f32 %v987_v32, %v6004_v26  ;;  %v1058_v32 = vmul.f32 %v4623_v39, %v6007_v28 }
 0x291   : > { %1156 = vadd.xlane.f32.xlu1 %v1046_v42  ;;  %1158 = vadd.xlane.f32.xlu0 %v1047_v27  ;;  %v4787_v42 = vpop.xlane.xlu0 %1290  ;;  %v1056_v27 = vmul.f32 %v4623_v39, %v6005_v38  ;;  %v1255_v38 = vmul.f32 %v4614_v5, %v4614_v5 }
 0x295   : > { %1160 = vadd.xlane.f32.xlu1 %v1048_v47  ;;  %1162 = vadd.xlane.f32.xlu0 %v1049_v2  ;;  %v4795_v11 = vpop.xlane.xlu0 %1368  ;;  %v4797_v47 = vpop.xlane.xlu1 %1374  ;;  %v6008_v2 = vld [vmem:[#allocation29_spill] sm:$0xff] }
 0x299   : > { %1164 = vadd.xlane.f32.xlu1 %v1050_v55  ;;  %1166 = vadd.xlane.f32.xlu0 %v1051_v20  ;;  %v1059_v55 = vmul.f32 %v4623_v39, %v6008_v2  ;;  %v1061_v20 = vmul.f32 %v4623_v39, %v6009_v46  ;;  %v4807_v54 = vpop.xlane.xlu0 %1294 }
 0x29d   : > { %1168 = vadd.xlane.f32.xlu1 %v1052_v12  ;;  %1170 = vadd.xlane.f32.xlu0 %v1053_v34  ;;  %v6010_v12 = vld [vmem:[#allocation32_spill] sm:$0xff]  ;;  %v4813_v26 = vpop.xlane.xlu0 %1372 }
 0x29e   : > { %v1060_v34 = vmul.f32 %v4623_v39, %v6010_v12  ;;  %v1254_v39 = vmul.f32 %v4618_v35, %v4618_v35 }
 0x2a1   : > { %1172 = vadd.xlane.f32.xlu1 %v1054_v52  ;;  %1174 = vadd.xlane.f32.xlu0 %v1055_v33  ;;  %v4809_v52 = vpop.xlane.xlu1 %1296 }
 0x2a5   : > { %1176 = vadd.xlane.f32.xlu1 %v1056_v27  ;;  %1178 = vadd.xlane.f32.xlu0 %v1057_v23  ;;  %v4815_v33 = vpop.xlane.xlu1 %1378  ;;  %v4821_v27 = vpop.xlane.xlu0 %1298 }
 0x2a6   : > { %6011 = vst [vmem:[#allocation17_spill] sm:$0xff] %v4815_v33  ;;  %6012 = vst [vmem:[#allocation16_spill] sm:$0xff] %v4821_v27 }
 0x2a9   : > { %1180 = vadd.xlane.f32.xlu1 %v1058_v32  ;;  %1182 = vadd.xlane.f32.xlu0 %v1059_v55  ;;  %v4823_v29 = vpop.xlane.xlu1 %1376  ;;  %v4825_v23 = vpop.xlane.xlu0 %1302  ;;  %v6020_v55 = vld [vmem:[#allocation33_spill] sm:$0xff] }
 0x2aa   : > { %6013 = vst [vmem:[#allocation19_spill] sm:$0xff] %v4823_v29  ;;  %6014 = vst [vmem:[#allocation18_spill] sm:$0xff] %v4825_v23  ;;  %v1409_v46 = vmax.f32 %v6020_v55, 1e-24  ;;  %v6026_v29 = vld [vmem:[#allocation38_spill] sm:$0xff]  ;;  %v6028_v55 = vld [vmem:[#allocation41_spill] sm:$0xff] }
 0x2ac   : > { %3292 = vrsqrt.f32 %v1409_v46 }
 0x2ad   : > { %1184 = vadd.xlane.f32.xlu1 %v1060_v34  ;;  %1186 = vadd.xlane.f32.xlu0 %v1061_v20  ;;  %v6021_v20 = vld [vmem:[#allocation35_spill] sm:$0xff] }
 0x2ae   : > { %v1408_v12 = vmax.f32 %v6021_v20, 1e-24  ;;  %v1415_v20 = vmax.f32 %v6028_v55, 1e-24 }
 0x2b0   : > { %3294 = vrsqrt.f32 %v1408_v12 }
 0x2b1   : > { %1188 = vadd.xlane.f32.xlu1 %v4635_v56  ;;  %1190 = vadd.xlane.f32.xlu0 %v4631_v16  ;;  %v4827_v56 = vpop.xlane.xlu1 %1300 }
 0x2b2   : > { %6015 = vst [vmem:[#allocation21_spill] sm:$0xff] %v4827_v56  ;;  %v6025_v56 = vld [vmem:[#allocation37_spill] sm:$0xff] }
 0x2b3   : > { %v1410_v23 = vmax.f32 %v6025_v56, 1e-24  ;;  %v1419_v56 = vmax.f32 %v4627_v51, 1e-24 }
 0x2b5   : > { %1380 = vadd.xlane.f32.xlu1 %v1254_v39  ;;  %1382 = vadd.xlane.f32.xlu0 %v1255_v38  ;;  %v6024_v39 = vld [vmem:[#allocation36_spill] sm:$0xff] }
 0x2b6   : > { %v1411_v63 = vmax.f32 %v6024_v39, 1e-24  ;;  %v6030_v39 = vld [vmem:[#allocation43_spill] sm:$0xff]  ;;  %v4871_v51 = vpop.eup %3292 }
 0x2b7   : > { %v1417_v33 = vmax.f32 %v6030_v39, 1e-24  ;;  %6033 = vst [vmem:[#allocation28_spill] sm:$0xff] %v4871_v51  ;;  %v1392_v51 = vmax.f32 %v4717_v50, 1e-24 }
 0x2b8   : > { %3296 = vrsqrt.f32 %v1411_v63  ;;  %v1421_v63 = vmax.f32 %v4644_v10, 1e-24 }
 0x2b9   : > { %3298 = vrsqrt.f32 %v1410_v23  ;;  %v6031_v23 = vld [vmem:[#allocation44_spill] sm:$0xff] }
 0x2ba   : > { %v1418_v12 = vmax.f32 %v6031_v23, 1e-24  ;;  %v4874_v39 = vpop.eup %3294 }
 0x2bb   : > { %6034 = vst [vmem:[#allocation27_spill] sm:$0xff] %v4874_v39 }
 0x2c2   : > { %v4829_v16 = vpop.xlane.xlu1 %1066  ;;  %v4831_v28 = vpop.xlane.xlu0 %1064 }
 0x2c3   : > { %v4877_v10 = vpop.eup %3296 }
 0x2c4   : > { %6035 = vst [vmem:[#allocation30_spill] sm:$0xff] %v4877_v10  ;;  %v1386_v10 = vmax.f32 %v4672_v1, 1e-24 }
 0x2c6   : > { %v4833_v32 = vpop.xlane.xlu1 %1068  ;;  %v4835_v5 = vpop.xlane.xlu0 %1070 }
 0x2c7   : > { %6016 = vst [vmem:[#allocation20_spill] sm:$0xff] %v4833_v32  ;;  %6017 = vst [vmem:[#allocation23_spill] sm:$0xff] %v4835_v5  ;;  %v1413_v32 = vmax.f32 %v6026_v29, 1e-24  ;;  %v6027_v5 = vld [vmem:[#allocation39_spill] sm:$0xff] }
 0x2c9   : > { %3300 = vrsqrt.f32 %v1413_v32  ;;  %v6032_v32 = vld [vmem:[#allocation45_spill] sm:$0xff] }
 0x2ca   : > { %v4837_v2 = vpop.xlane.xlu1 %1072  ;;  %v4839_v35 = vpop.xlane.xlu0 %1074 }
 0x2cb   : > { %6018 = vst [vmem:[#allocation22_spill] sm:$0xff] %v4837_v2  ;;  %6019 = vst [vmem:[#allocation24_spill] sm:$0xff] %v4839_v35  ;;  %v1412_v2 = vmax.f32 %v6027_v5, 1e-24  ;;  %v1416_v5 = vmax.f32 %v4620_v22, 1e-24 }
 0x2cc   : > { %v1422_v22 = vmax.f32 %v4654_v43, 1e-24 }
 0x2cd   : > { %3302 = vrsqrt.f32 %v1412_v2 }
 0x2ce   : > { %v4843_v34 = vpop.xlane.xlu1 %1076  ;;  %v4845_v38 = vpop.xlane.xlu0 %1078  ;;  %3304 = vrsqrt.f32 %v1415_v20  ;;  %v1423_v20 = vmax.f32 %v4652_v53, 1e-24 }
 0x2cf   : > { %6022 = vst [vmem:[#allocation26_spill] sm:$0xff] %v4843_v34  ;;  %6023 = vst [vmem:[#allocation25_spill] sm:$0xff] %v4845_v38  ;;  %v6029_v34 = vld [vmem:[#allocation42_spill] sm:$0xff] }
 0x2d0   : > { %v1414_v38 = vmax.f32 %v6029_v34, 1e-24  ;;  %v1420_v34 = vmax.f32 %v6032_v32, 1e-24 }
 0x2d2   : > { %v4851_v27 = vpop.xlane.xlu1 %1080  ;;  %v4853_v35 = vpop.xlane.xlu0 %1082  ;;  %3306 = vrsqrt.f32 %v1414_v38 }
 0x2d3   : > { %3308 = vrsqrt.f32 %v1417_v33  ;;  %v1385_v33 = vmax.f32 %v4658_v7, 1e-24  ;;  %v4880_v38 = vpop.eup %3298 }
 0x2d4   : > { %3310 = vrsqrt.f32 %v1419_v56  ;;  %6036 = vst [vmem:[#allocation29_spill] sm:$0xff] %v4880_v38  ;;  %v6037_v56 = vld [vmem:[#allocation46_spill] sm:$0xff]  ;;  %v4887_v53 = vpop.eup %3300 }
 0x2d5   : > { %3312 = vrsqrt.f32 %v1416_v5  ;;  %v1384_v23 = vmax.f32 %v6037_v56, 1e-24  ;;  %6038 = vst [vmem:[#allocation31_spill] sm:$0xff] %v4887_v53  ;;  %v1390_v53 = vmax.f32 %v4701_v15, 1e-24 }
 0x2d6   : > { %v4859_v29 = vpop.xlane.xlu1 %1084  ;;  %v4861_v46 = vpop.xlane.xlu0 %1086  ;;  %3314 = vrsqrt.f32 %v1421_v63  ;;  %v1425_v63 = vmax.f32 %v4664_v31, 1e-24 }
 0x2d7   : > { %3316 = vrsqrt.f32 %v1418_v12  ;;  %v4890_v43 = vpop.eup %3302  ;;  %v1424_v12 = vmax.f32 %v4666_v59, 1e-24 }
 0x2d8   : > { %3318 = vrsqrt.f32 %v1420_v34  ;;  %6039 = vst [vmem:[#allocation32_spill] sm:$0xff] %v4890_v43  ;;  %v4893_v7 = vpop.eup %3304  ;;  %v1387_v34 = vmax.f32 %v4670_v37, 1e-24 }
 0x2d9   : > { %3320 = vrsqrt.f32 %v1423_v20  ;;  %6040 = vst [vmem:[#allocation33_spill] sm:$0xff] %v4893_v7  ;;  %v1388_v7 = vmax.f32 %v4685_v44, 1e-24 }
 0x2da   : > { %v4867_v55 = vpop.xlane.xlu1 %1088  ;;  %v4869_v2 = vpop.xlane.xlu0 %1090  ;;  %3322 = vrsqrt.f32 %v1422_v22  ;;  %v1427_v22 = vmax.f32 %v4677_v25, 1e-24 }
 0x2db   : > { %3324 = vrsqrt.f32 %v1385_v33  ;;  %v1426_v33 = vmax.f32 %v4679_v49, 1e-24 }
 0x2dc   : > { %v4896_v56 = vpop.eup %3306  ;;  %3326 = vrsqrt.f32 %v1384_v23  ;;  %v1389_v23 = vmax.f32 %v4683_v36, 1e-24 }
 0x2dd   : > { %6041 = vst [vmem:[#allocation35_spill] sm:$0xff] %v4896_v56  ;;  %v4903_v31 = vpop.eup %3308  ;;  %3328 = vrsqrt.f32 %v1425_v63 }
 0x2de   : > { %v4883_v32 = vpop.xlane.xlu1 %1092  ;;  %v4885_v5 = vpop.xlane.xlu0 %1094  ;;  %3330 = vrsqrt.f32 %v1424_v12  ;;  %v1429_v12 = vmax.f32 %v4689_v41, 1e-24 }
 0x2df   : > { %v4906_v59 = vpop.eup %3310  ;;  %3332 = vrsqrt.f32 %v1387_v34  ;;  %v1428_v34 = vmax.f32 %v4691_v13, 1e-24 }
 0x2e0   : > { %v4909_v37 = vpop.eup %3312  ;;  %3334 = vrsqrt.f32 %v1386_v10  ;;  %v1391_v10 = vmax.f32 %v4699_v9, 1e-24 }
 0x2e1   : > { %v4912_v1 = vpop.eup %3314  ;;  %3336 = vrsqrt.f32 %v1427_v22 }
 0x2e2   : > { %v4899_v38 = vpop.xlane.xlu1 %1096  ;;  %v4901_v20 = vpop.xlane.xlu0 %1098  ;;  %3338 = vrsqrt.f32 %v1426_v33  ;;  %v1431_v33 = vmax.f32 %v4709_v3, 1e-24 }
 0x2e3   : > { %v4919_v25 = vpop.eup %3316  ;;  %3340 = vrsqrt.f32 %v1389_v23  ;;  %v1430_v23 = vmax.f32 %v4711_v17, 1e-24 }
 0x2e4   : > { %v4922_v49 = vpop.eup %3318  ;;  %3342 = vrsqrt.f32 %v1388_v7  ;;  %v1393_v7 = vmax.f32 %v4715_v61, 1e-24 }
 0x2e5   : > { %v4925_v36 = vpop.eup %3320  ;;  %3344 = vrsqrt.f32 %v1429_v12 }
 0x2e6   : > { %v4915_v56 = vpop.xlane.xlu1 %1100  ;;  %v4917_v63 = vpop.xlane.xlu0 %1102  ;;  %6042 = vst [vmem:[#allocation36_spill] sm:$0xff] %v4925_v36  ;;  %3346 = vrsqrt.f32 %v1428_v34  ;;  %v1433_v34 = vmax.f32 %v4726_v40, 1e-24 }
 0x2e7   : > { %v4928_v44 = vpop.eup %3322  ;;  %3348 = vrsqrt.f32 %v1391_v10  ;;  %v1432_v10 = vmax.f32 %v4728_v4, 1e-24 }
 0x2e8   : > { %v4935_v41 = vpop.eup %3324  ;;  %3350 = vrsqrt.f32 %v1390_v53  ;;  %v1395_v53 = vmax.f32 %v4732_v30, 1e-24 }
 0x2e9   : > { %v4938_v13 = vpop.eup %3326  ;;  %3352 = vrsqrt.f32 %v1431_v33 }
 0x2ea   : > { %v4931_v43 = vpop.xlane.xlu1 %1104  ;;  %v4933_v22 = vpop.xlane.xlu0 %1106  ;;  %3354 = vrsqrt.f32 %v1430_v23  ;;  %v1435_v23 = vmax.f32 %v4740_v19, 1e-24 }
 0x2eb   : > { %v4941_v9 = vpop.eup %3328  ;;  %3356 = vrsqrt.f32 %v1393_v7  ;;  %v1434_v7 = vmax.f32 %v4742_v60, 1e-24 }
 0x2ec   : > { %6043 = vst [vmem:[#allocation37_spill] sm:$0xff] %v4941_v9  ;;  %v4944_v15 = vpop.eup %3330  ;;  %3358 = vrsqrt.f32 %v1392_v51  ;;  %v1394_v9 = vmax.f32 %v4734_v21, 1e-24  ;;  %v1397_v51 = vmax.f32 %v4748_v0, 1e-24 }
 0x2ed   : > { %6044 = vst [vmem:[#allocation38_spill] sm:$0xff] %v4944_v15  ;;  %v4951_v3 = vpop.eup %3332  ;;  %3360 = vrsqrt.f32 %v1433_v34 }
 0x2ee   : > { %v4947_v39 = vpop.xlane.xlu1 %1108  ;;  %v4949_v12 = vpop.xlane.xlu0 %1110  ;;  %3362 = vrsqrt.f32 %v1432_v10  ;;  %v1437_v10 = vmax.f32 %v4756_v18, 1e-24 }
 0x2ef   : > { %v4954_v17 = vpop.eup %3334  ;;  %3364 = vrsqrt.f32 %v1395_v53  ;;  %v1436_v53 = vmax.f32 %v4758_v14, 1e-24 }
 0x2f0   : > { %v4957_v61 = vpop.eup %3336  ;;  %3366 = vrsqrt.f32 %v1394_v9  ;;  %v1399_v9 = vmax.f32 %v4764_v48, 1e-24 }
 0x2f1   : > { %6045 = vst [vmem:[#allocation39_spill] sm:$0xff] %v4957_v61  ;;  %v4960_v50 = vpop.eup %3338  ;;  %v1396_v61 = vmax.f32 %v4750_v8, 1e-24  ;;  %3368 = vrsqrt.f32 %v1435_v23 }
 0x2f2   : > { %6046 = vst [vmem:[#allocation41_spill] sm:$0xff] %v4960_v50  ;;  %v4963_v15 = vpop.xlane.xlu1 %1128  ;;  %v4965_v33 = vpop.xlane.xlu0 %1130  ;;  %3370 = vrsqrt.f32 %v1434_v7  ;;  %v1439_v7 = vmax.f32 %v4773_v6, 1e-24 }
 0x2f3   : > { %v4967_v40 = vpop.eup %3340  ;;  %3372 = vrsqrt.f32 %v1397_v51  ;;  %v1400_v51 = vmax.f32 %v4775_v45, 1e-24 }
 0x2f4   : > { %v4970_v4 = vpop.eup %3342  ;;  %3374 = vrsqrt.f32 %v1396_v61  ;;  %v1438_v61 = vmax.f32 %v4779_v62, 1e-24 }
 0x2f5   : > { %v4973_v30 = vpop.eup %3344  ;;  %3376 = vrsqrt.f32 %v1437_v10 }
 0x2f6   : > { %6047 = vst [vmem:[#allocation42_spill] sm:$0xff] %v4973_v30  ;;  %v4976_v21 = vpop.eup %3346  ;;  %v4979_v50 = vpop.xlane.xlu1 %1132  ;;  %v1398_v30 = vmax.f32 %v4766_v24, 1e-24  ;;  %3378 = vrsqrt.f32 %v1436_v53  ;;  %v1401_v53 = vmax.f32 %v4787_v42, 1e-24 }
 0x2f7   : > { %6048 = vst [vmem:[#allocation43_spill] sm:$0xff] %v4976_v21  ;;  %v4981_v34 = vpop.xlane.xlu0 %1134  ;;  %v4983_v19 = vpop.eup %3348  ;;  %3380 = vrsqrt.f32 %v1399_v9  ;;  %v1402_v9 = vmax.f32 %v4789_v57, 1e-24 }
 0x2f8   : > { %v4986_v60 = vpop.eup %3350  ;;  %3382 = vrsqrt.f32 %v1398_v30  ;;  %v1440_v30 = vmax.f32 %v4795_v11, 1e-24  ;;  %v1513_v11 = vmul.f32 %v4935_v41, %v4829_v16  ;;  %v6064_v41 = vld [vmem:[#allocation16_spill] sm:$0xff] }
 0x2f9   : > { %v4989_v0 = vpop.eup %3352  ;;  %3384 = vrsqrt.f32 %v1439_v7 }
 0x2fa   : > { %6049 = vst [vmem:[#allocation44_spill] sm:$0xff] %v4989_v0  ;;  %v4992_v8 = vpop.eup %3354  ;;  %v4995_v21 = vpop.xlane.xlu1 %1136  ;;  %v1441_v0 = vmax.f32 %v4781_v58, 1e-24  ;;  %3386 = vrsqrt.f32 %v1400_v51  ;;  %v1403_v51 = vmax.f32 %v4807_v54, 1e-24  ;;  %v6060_v54 = vld [vmem:[#allocation17_spill] sm:$0xff] }
 0x2fb   : > { %6050 = vst [vmem:[#allocation45_spill] sm:$0xff] %v4992_v8  ;;  %v4997_v23 = vpop.xlane.xlu0 %1138  ;;  %v4999_v18 = vpop.eup %3356  ;;  %3388 = vrsqrt.f32 %v1438_v61  ;;  %v1404_v61 = vmax.f32 %v4809_v52, 1e-24 }
 0x2fc   : > { %v5002_v14 = vpop.eup %3358  ;;  %3390 = vrsqrt.f32 %v1441_v0 }
 0x2fd   : > { %v5005_v48 = vpop.eup %3360  ;;  %3392 = vrsqrt.f32 %v1401_v53  ;;  %v1445_v53 = vmax.f32 %v6060_v54, 1e-24 }
 0x2fe   : > { %6051 = vst [vmem:[#allocation46_spill] sm:$0xff] %v5005_v48  ;;  %v5008_v24 = vpop.eup %3362  ;;  %v5011_v8 = vpop.xlane.xlu1 %1140  ;;  %v1443_v48 = vmax.f32 %v4797_v47, 1e-24  ;;  %3394 = vrsqrt.f32 %v1402_v9  ;;  %v1442_v47 = vmax.f32 %v4813_v26, 1e-24 }
 0x2ff   : > { %6052 = vst [vmem:[#allocation47_spill] sm:$0xff] %v5008_v24  ;;  %v5013_v10 = vpop.xlane.xlu0 %1142  ;;  %v5015_v6 = vpop.eup %3364  ;;  %3396 = vrsqrt.f32 %v1440_v30  ;;  %v1405_v26 = vmax.f32 %v6064_v41, 1e-24  ;;  %v6065_v30 = vld [vmem:[#allocation20_spill] sm:$0xff] }
 0x300   : > { %6053 = vst [vmem:[#allocation48_spill] sm:$0xff] %v5013_v10  ;;  %v5018_v45 = vpop.eup %3366  ;;  %3398 = vrsqrt.f32 %v1443_v48  ;;  %v1578_v48 = vmul.f32 1.442695, %v1513_v11 }
 0x301   : > { %v5021_v62 = vpop.eup %3368  ;;  %3400 = vrsqrt.f32 %v1403_v51 }
 0x302   : > { %6054 = vst [vmem:[#allocation49_spill] sm:$0xff] %v5021_v62  ;;  %v5024_v58 = vpop.eup %3370  ;;  %v5027_v24 = vpop.xlane.xlu1 %1112  ;;  %v1512_v62 = vmul.f32 %v4938_v13, %v4831_v28  ;;  %v1514_v28 = vmul.f32 %v4954_v17, %v6065_v30  ;;  %3402 = vrsqrt.f32 %v1404_v61 }
 0x303   : > { %6055 = vst [vmem:[#allocation50_spill] sm:$0xff] %v5024_v58  ;;  %6056 = vst [vmem:[#allocation51_spill] sm:$0xff] %v5027_v24  ;;  %v5029_v7 = vpop.xlane.xlu0 %1114  ;;  %v5031_v42 = vpop.eup %3372  ;;  %3404 = vrsqrt.f32 %v1442_v47  ;;  %v6072_v47 = vld [vmem:[#allocation22_spill] sm:$0xff] }
 0x304   : > { %6057 = vst [vmem:[#allocation52_spill] sm:$0xff] %v5029_v7  ;;  %v5034_v57 = vpop.eup %3374  ;;  %v6061_v7 = vlaneseq  ;;  %3406 = vrsqrt.f32 %v1445_v53  ;;  %v1580_v11 = vmul.f32 1.442695, %v1514_v28  ;;  %v6074_v53 = vld [vmem:[#allocation18_spill] sm:$0xff] }
 0x305   : > { %v5039_v0 = vpop.eup %3376  ;;  %3408 = vrsqrt.f32 %v1405_v26 }
 0x306   : > { %6058 = vst [vmem:[#allocation53_spill] sm:$0xff] %v5039_v0  ;;  %v5044_v58 = vpop.eup %3378  ;;  %v5048_v9 = vand.u32 127, %v6061_v7  ;;  %v5050_v52 = vpop.xlane.xlu1 %1116  ;;  %v1576_v7 = vmul.f32 1.442695, %v1512_v62  ;;  %v1516_v62 = vmul.f32 %v4970_v4, %v6072_v47  ;;  %3410 = vpow2.f32 %v1578_v48  ;;  %v6078_v4 = vld [vmem:[#allocation34_spill] sm:$0xff] }
 0x307   : > { %6059 = vst [vmem:[#allocation54_spill] sm:$0xff] %v5044_v58  ;;  %6062 = vst [vmem:[#allocation17_spill] sm:$0xff] %v5050_v52  ;;  %v5052_v24 = vpop.xlane.xlu0 %1118  ;;  %v5054_v16 = vpop.eup %3380  ;;  %v6067_v58 = vld [vmem:[#allocation19_spill] sm:$0xff] }
 0x308   : > { %6063 = vst [vmem:[#allocation55_spill] sm:$0xff] %v5052_v24  ;;  %v5059_v13 = vpop.eup %3382  ;;  %v1444_v24 = vmax.f32 %v6067_v58, 1e-24  ;;  %v1774_v51 = vadd.s32 4294967288, %v5048_v9  ;;  %v6068_v52 = vld [vmem:[#allocation23_spill] sm:$0xff]  ;;  %3412 = vpow2.f32 %v1576_v7  ;;  %v5102_v7 = vsub.s32 %v5048_v9, %v6078_v4 }
 0x309   : > { %v5061_v54 = vpop.eup %3384  ;;  %v1515_v41 = vmul.f32 %v4951_v3, %v6068_v52  ;;  %v1407_v58 = vmax.f32 %v6074_v53, 1e-24  ;;  %v6076_v52 = vld [vmem:[#allocation21_spill] sm:$0xff] }
 0x30a   : > { %6066 = vst [vmem:[#allocation16_spill] sm:$0xff] %v5061_v54  ;;  %v5063_v0 = vpop.eup %3386  ;;  %v5069_v36 = vpop.xlane.xlu1 %1120  ;;  %v6075_v54 = vld [vmem:[#allocation24_spill] sm:$0xff]  ;;  %3414 = vrsqrt.f32 %v1444_v24  ;;  %v5090_v47 = vsub.s32 %v1774_v51, %v6078_v4  ;;  %v6079_v53 = vld [vmem:[#allocation25_spill] sm:$0xff]  ;;  %v1520_v24 = vmul.f32 %v5002_v14, %v4851_v27  ;;  %v1795_v27 = vadd.s32 4294967264, %v5048_v9 }
 0x30b   : > { %6069 = vst [vmem:[#allocation20_spill] sm:$0xff] %v5069_v36  ;;  %v5071_v17 = vpop.xlane.xlu0 %1122  ;;  %v5073_v61 = vpop.eup %3388  ;;  %v1517_v10 = vmul.f32 %v4967_v40, %v6075_v54  ;;  %v1406_v36 = vmax.f32 %v6076_v52, 1e-24  ;;  %v1519_v48 = vmul.f32 %v4983_v19, %v6079_v53  ;;  %3416 = vpow2.f32 %v1580_v11 }
 0x30c   : > { %6070 = vst [vmem:[#allocation19_spill] sm:$0xff] %v5071_v17  ;;  %6071 = vst [vmem:[#allocation23_spill] sm:$0xff] %v5073_v61  ;;  %v5077_v30 = vpop.eup %3390  ;;  %v6077_v17 = vld [vmem:[#allocation26_spill] sm:$0xff]  ;;  %v1582_v61 = vmul.f32 1.442695, %v1515_v41  ;;  %3418 = vrsqrt.f32 %v1407_v58  ;;  %v1781_v19 = vadd.s32 4294967280, %v5048_v9  ;;  %v1522_v11 = vmul.f32 %v5018_v45, %v4859_v29 }
 0x30d   : > { %6073 = vst [vmem:[#allocation22_spill] sm:$0xff] %v5077_v30  ;;  %v5082_v3 = vpop.eup %3392  ;;  %v1518_v26 = vmul.f32 %v4986_v60, %v6077_v17  ;;  %v1584_v60 = vmul.f32 1.442695, %v1516_v62  ;;  %v1586_v41 = vmul.f32 1.442695, %v1517_v10  ;;  %v1521_v17 = vmul.f32 %v4999_v18, %v4853_v35 }
 0x30e   : > { %v5087_v28 = vpop.eup %3394  ;;  %v5094_v30 = vpop.xlane.xlu1 %1124  ;;  %3420 = vrsqrt.f32 %v1406_v36  ;;  %v1788_v53 = vadd.s32 4294967272, %v5048_v9  ;;  %v1590_v14 = vmul.f32 1.442695, %v1519_v48  ;;  %v1523_v58 = vmul.f32 %v5015_v6, %v4861_v46 }
 0x30f   : > { %v5096_v40 = vpop.xlane.xlu0 %1126  ;;  %v5098_v54 = vpop.eup %3396  ;;  %3422 = vpow2.f32 %v1582_v61  ;;  %v1592_v36 = vmul.f32 1.442695, %v1520_v24  ;;  %v1524_v29 = vmul.f32 %v5034_v57, %v4867_v55  ;;  %v5128_v45 = vsub.s32 %v1781_v19, %v6078_v4 }
 0x310   : > { %6080 = vst [vmem:[#allocation18_spill] sm:$0xff] %v5098_v54  ;;  %v5106_v51 = vpop.eup %3398  ;;  %v1588_v54 = vmul.f32 1.442695, %v1518_v26  ;;  %3424 = vpow2.f32 %v1584_v60  ;;  %v1594_v61 = vmul.f32 1.442695, %v1521_v17  ;;  %v1525_v46 = vmul.f32 %v5031_v42, %v4869_v2 }
 0x311   : > { %6081 = vst [vmem:[#allocation24_spill] sm:$0xff] %v5106_v51  ;;  %v3401_v52 = vpop.eup %3400  ;;  %3426 = vpow2.f32 %v1586_v41  ;;  %v5133_v26 = vsub.s32 %v1788_v53, %v6078_v4  ;;  %v1596_v48 = vmul.f32 1.442695, %v1522_v11  ;;  %v1526_v55 = vmul.f32 %v5059_v13, %v4883_v32 }
 0x312   : > { %v3403_v62 = vpop.eup %3402  ;;  %v5117_v10 = vpop.xlane.xlu1 %1144  ;;  %3428 = vpow2.f32 %v1588_v54  ;;  %v5140_v60 = vsub.s32 %v1795_v27, %v6078_v4  ;;  %v1598_v24 = vmul.f32 1.442695, %v1523_v58  ;;  %v1527_v2 = vmul.f32 %v5054_v16, %v4885_v5 }
 0x313   : > { %v5119_v51 = vpop.xlane.xlu0 %1146  ;;  %v5121_v35 = vpop.eup %3404  ;;  %3430 = vpow2.f32 %v1590_v14  ;;  %v1802_v54 = vadd.s32 4294967256, %v5048_v9  ;;  %v1600_v32 = vmul.f32 1.442695, %v1524_v29  ;;  %v1528_v13 = vmul.f32 %v5063_v0, %v4899_v38 }
 0x314   : > { %v5125_v18 = vpop.eup %3406  ;;  %3432 = vpow2.f32 %v1592_v36  ;;  %v1809_v53 = vadd.s32 4294967248, %v5048_v9  ;;  %v1602_v5 = vmul.f32 1.442695, %v1525_v46  ;;  %v1529_v16 = vmul.f32 %v5082_v3, %v4901_v20 }
 0x315   : > { %v3409_v6 = vpop.eup %3408  ;;  %3434 = vpow2.f32 %v1594_v61  ;;  %v1604_v14 = vmul.f32 1.442695, %v1526_v55  ;;  %v1530_v38 = vmul.f32 %v5087_v28, %v4915_v56  ;;  %v1606_v36 = vmul.f32 1.442695, %v1527_v2 }
 0x316   : > { %v5137_v57 = vpop.eup %3410  ;;  %v5144_v42 = vpop.xlane.xlu1 %1148  ;;  %3436 = vpow2.f32 %v1596_v48  ;;  %v1531_v29 = vmul.f32 %v3401_v52, %v4917_v63  ;;  %v5172_v46 = vsub.s32 %v1802_v54, %v6078_v4  ;;  %v1608_v48 = vmul.f32 1.442695, %v1528_v13 }
 0x317   : > { %6082 = vst [vmem:[#allocation21_spill] sm:$0xff] %v5137_v57  ;;  %v5146_v19 = vpop.xlane.xlu0 %1150  ;;  %v5148_v41 = vpop.eup %3412  ;;  %v1778_v27 = vrot.slane %v5137_v57, %v5090_v47  ;;  %3438 = vpow2.f32 %v1598_v24  ;;  %v1532_v56 = vmul.f32 %v3403_v62, %v4931_v43  ;;  %v1610_v24 = vmul.f32 1.442695, %v1529_v16 }
 0x318   : > { %6083 = vst [vmem:[#allocation26_spill] sm:$0xff] %v5148_v41  ;;  %v5153_v17 = vpop.eup %3414  ;;  %v1773_v58 = vrot.slane %v5148_v41, %v5102_v7  ;;  %3440 = vpow2.f32 %v1600_v32  ;;  %v1533_v63 = vmul.f32 %v3409_v6, %v4933_v22  ;;  %v1816_v2 = vadd.s32 4294967240, %v5048_v9 }
 0x319   : > { %v5158_v11 = vpop.eup %3416  ;;  %3442 = vpow2.f32 %v1602_v5  ;;  %v1612_v54 = vmul.f32 1.442695, %v1530_v38  ;;  %v1614_v62 = vmul.f32 1.442695, %v1531_v29 }
 0x31a   : > { %6084 = vst [vmem:[#allocation25_spill] sm:$0xff] %v5158_v11  ;;  %v3419_v0 = vpop.eup %3418  ;;  %v5167_v61 = vpop.xlane.xlu1 %1152  ;;  %v1785_v55 = vrot.slane %v5158_v11, %v5128_v45  ;;  %3444 = vpow2.f32 %v1604_v14  ;;  %v1780_v43 = vsel %vm1779_vm1, %v1778_v27, %v1773_v58  ;;  %v1544_v14 = vmul.f32 %v4909_v37, %v4963_v15 }
 0x31b   : > { %v5169_v20 = vpop.xlane.xlu0 %1154  ;;  %v3421_v3 = vpop.eup %3420  ;;  %3446 = vpow2.f32 %v1606_v36  ;;  %v1535_v5 = vmul.f32 %v3419_v0, %v4949_v12  ;;  %v1618_v12 = vmul.f32 1.442695, %v1533_v63  ;;  %v1545_v0 = vmul.f32 %v4903_v31, %v4965_v33 }
 0x31c   : > { %v5175_v28 = vpop.eup %3422  ;;  %v1534_v32 = vmul.f32 %v3421_v3, %v4947_v39  ;;  %3448 = vpow2.f32 %v1608_v48  ;;  %v1616_v39 = vmul.f32 1.442695, %v1532_v56  ;;  %v1787_v38 = vsel %vm1786_vm2, %v1785_v55, %v1780_v43 }
 0x31d   : > { %6085 = vst [vmem:[#allocation56_spill] sm:$0xff] %v5175_v28  ;;  %v5180_v52 = vpop.eup %3424  ;;  %v1792_v9 = vrot.slane %v5175_v28, %v5133_v26  ;;  %3450 = vpow2.f32 %v1610_v24  ;;  %v5206_v36 = vsub.s32 %v1809_v53, %v6078_v4  ;;  %v1546_v3 = vmul.f32 %v4919_v25, %v4979_v50 }
 0x31e   : > { %6086 = vst [vmem:[#allocation57_spill] sm:$0xff] %v5180_v52  ;;  %v5184_v13 = vpop.eup %3426  ;;  %v5188_v16 = vpop.xlane.xlu1 %1156  ;;  %3452 = vpow2.f32 %v1612_v54  ;;  %v1620_v29 = vmul.f32 1.442695, %v1534_v32  ;;  %v5213_v15 = vsub.s32 %v1816_v2, %v6078_v4  ;;  %v1622_v48 = vmul.f32 1.442695, %v1535_v5  ;;  %v6094_v5 = vld [vmem:[#allocation48_spill] sm:$0xff] }
 0x31f   : > { %6087 = vst [vmem:[#allocation58_spill] sm:$0xff] %v5184_v13  ;;  %v5190_v22 = vpop.xlane.xlu0 %1158  ;;  %v5192_v6 = vpop.eup %3428  ;;  %3454 = vpow2.f32 %v1614_v62  ;;  %v1547_v31 = vmul.f32 %v4906_v59, %v4981_v34  ;;  %v1794_v55 = vsel %vm1793_vm3, %v1792_v9, %v1787_v38  ;;  %v1640_v25 = vmul.f32 1.442695, %v1544_v14  ;;  %v6095_v9 = vld [vmem:[#allocation36_spill] sm:$0xff] }
 0x320   : > { %v5198_v27 = vpop.eup %3430  ;;  %3456 = vpow2.f32 %v1616_v39  ;;  %v1548_v50 = vmul.f32 %v4922_v49, %v4995_v21  ;;  %v1799_v63 = vrot.slane %v5180_v52, %v5140_v60  ;;  %v1642_v59 = vmul.f32 1.442695, %v1545_v0 }
 0x321   : > { %v5203_v58 = vpop.eup %3432  ;;  %3458 = vpow2.f32 %v1618_v12  ;;  %v1549_v34 = vmul.f32 %v4912_v1, %v4997_v23  ;;  %v1644_v32 = vmul.f32 1.442695, %v1546_v3  ;;  %v1550_v49 = vmul.f32 %v4928_v44, %v5011_v8  ;;  %v6097_v8 = vld [vmem:[#allocation51_spill] sm:$0xff] }
 0x322   : > { %6088 = vst [vmem:[#allocation59_spill] sm:$0xff] %v5203_v58  ;;  %v5210_v37 = vpop.eup %3434  ;;  %v5217_v33 = vpop.xlane.xlu1 %1160  ;;  %v1826_v54 = vrot.slane %v5203_v58, %v5102_v7  ;;  %3460 = vpow2.f32 %v1620_v29  ;;  %v1646_v62 = vmul.f32 1.442695, %v1547_v31  ;;  %v1551_v1 = vmul.f32 %v6095_v9, %v6094_v5  ;;  %v6098_v12 = vld [vmem:[#allocation27_spill] sm:$0xff]  ;;  %v6099_v31 = vld [vmem:[#allocation52_spill] sm:$0xff] }
 0x323   : > { %6089 = vst [vmem:[#allocation60_spill] sm:$0xff] %v5210_v37  ;;  %v5219_v53 = vpop.xlane.xlu0 %1162  ;;  %v5221_v56 = vpop.eup %3436  ;;  %v1830_v43 = vrot.slane %v5210_v37, %v5090_v47  ;;  %3462 = vpow2.f32 %v1622_v48  ;;  %v1806_v38 = vrot.slane %v5184_v13, %v5172_v46  ;;  %v1648_v44 = vmul.f32 1.442695, %v1548_v50  ;;  %v6100_v5 = vld [vmem:[#allocation28_spill] sm:$0xff]  ;;  %v6102_v50 = vld [vmem:[#allocation17_spill] sm:$0xff] }
 0x324   : > { %6090 = vst [vmem:[#allocation61_spill] sm:$0xff] %v5221_v56  ;;  %v5226_v24 = vpop.eup %3438  ;;  %3464 = vpow2.f32 %v1640_v25  ;;  %v1536_v0 = vmul.f32 %v6098_v12, %v6097_v8  ;;  %v1835_v3 = vrot.slane %v5221_v56, %v5128_v45  ;;  %v1650_v48 = vmul.f32 1.442695, %v1549_v34  ;;  %v6103_v13 = vld [vmem:[#allocation29_spill] sm:$0xff]  ;;  %v6106_v34 = vld [vmem:[#allocation30_spill] sm:$0xff] }
 0x325   : > { %6091 = vst [vmem:[#allocation62_spill] sm:$0xff] %v5226_v24  ;;  %v5232_v2 = vpop.eup %3440  ;;  %3466 = vpow2.f32 %v1642_v59  ;;  %v1537_v9 = vmul.f32 %v6100_v5, %v6099_v31  ;;  %v1801_v52 = vsel %vm1800_vm4, %v1799_v63, %v1794_v55  ;;  %v1652_v25 = vmul.f32 1.442695, %v1550_v49  ;;  %v6105_v59 = vld [vmem:[#allocation55_spill] sm:$0xff]  ;;  %v6108_v63 = vld [vmem:[#allocation20_spill] sm:$0xff] }
 0x326   : > { %6092 = vst [vmem:[#allocation63_spill] sm:$0xff] %v5232_v2  ;;  %v5238_v21 = vpop.eup %3442  ;;  %v5244_v23 = vpop.xlane.xlu1 %1164  ;;  %3468 = vpow2.f32 %v1644_v32  ;;  %v1538_v28 = vmul.f32 %v6103_v13, %v6102_v50  ;;  %v1831_v12 = vsel %vm1779_vm1, %v1830_v43, %v1826_v54  ;;  %v1654_v56 = vmul.f32 1.442695, %v1551_v1  ;;  %v6109_v32 = vld [vmem:[#allocation32_spill] sm:$0xff]  ;;  %v6111_v1 = vld [vmem:[#allocation19_spill] sm:$0xff] }
 0x327   : > { %6093 = vst [vmem:[#allocation64_spill] sm:$0xff] %v5238_v21  ;;  %v5246_v39 = vpop.xlane.xlu0 %1166  ;;  %v5248_v14 = vpop.eup %3444  ;;  %3470 = vpow2.f32 %v1646_v62  ;;  %v1539_v37 = vmul.f32 %v6106_v34, %v6105_v59  ;;  %v1840_v55 = vrot.slane %v5226_v24, %v5133_v26  ;;  %v1624_v13 = vmul.f32 1.442695, %v1536_v0  ;;  %v6112_v50 = vld [vmem:[#allocation31_spill] sm:$0xff] }
 0x328   : > { %6096 = vst [vmem:[#allocation48_spill] sm:$0xff] %v5248_v14  ;;  %v5254_v29 = vpop.eup %3446  ;;  %3472 = vpow2.f32 %v1648_v44  ;;  %v1540_v49 = vmul.f32 %v6109_v32, %v6108_v63  ;;  %v1836_v43 = vsel %vm1786_vm2, %v1835_v3, %v1831_v12  ;;  %v1626_v62 = vmul.f32 1.442695, %v1537_v9  ;;  %v6114_v0 = vld [vmem:[#allocation35_spill] sm:$0xff]  ;;  %v6115_v9 = vld [vmem:[#allocation33_spill] sm:$0xff] }
 0x329   : > { %v5260_v58 = vpop.eup %3448  ;;  %3474 = vpow2.f32 %v1650_v48  ;;  %v1541_v59 = vmul.f32 %v6112_v50, %v6111_v1  ;;  %v5288_v41 = vsel %vm1807_vm5, %v1806_v38, %v1801_v52  ;;  %v1628_v44 = vmul.f32 1.442695, %v1538_v28  ;;  %v6117_v38 = vld [vmem:[#allocation38_spill] sm:$0xff] }
 0x32a   : > { %6101 = vst [vmem:[#allocation36_spill] sm:$0xff] %v5260_v58  ;;  %v5265_v8 = vpop.eup %3450  ;;  %v5270_v11 = vpop.xlane.xlu1 %1168  ;;  %3476 = vpow2.f32 %v1652_v25  ;;  %v1542_v24 = vmul.f32 %v6114_v0, %v5094_v30  ;;  %v1630_v48 = vmul.f32 1.442695, %v1539_v37  ;;  %v1543_v12 = vmul.f32 %v6115_v9, %v5096_v40 }
 0x32b   : > { %6104 = vst [vmem:[#allocation51_spill] sm:$0xff] %v5265_v8  ;;  %v5272_v31 = vpop.xlane.xlu0 %1170  ;;  %v5274_v5 = vpop.eup %3452  ;;  %3478 = vpow2.f32 %v1654_v56  ;;  %v1841_v28 = vsel %vm1793_vm3, %v1840_v55, %v1836_v43  ;;  %v1632_v30 = vmul.f32 1.442695, %v1540_v49  ;;  %v1552_v25 = vmul.f32 %v6117_v38, %v5117_v10  ;;  %v6119_v56 = vld [vmem:[#allocation37_spill] sm:$0xff] }
 0x32c   : > { %6107 = vst [vmem:[#allocation27_spill] sm:$0xff] %v5274_v5  ;;  %v5280_v54 = vpop.eup %3454  ;;  %3480 = vpow2.f32 %v1624_v13  ;;  %v1845_v37 = vrot.slane %v5232_v2, %v5140_v60  ;;  %v1634_v40 = vmul.f32 1.442695, %v1541_v59  ;;  %v1553_v0 = vmul.f32 %v6119_v56, %v5119_v51  ;;  %v6121_v49 = vld [vmem:[#allocation41_spill] sm:$0xff]  ;;  %v6122_v59 = vld [vmem:[#allocation39_spill] sm:$0xff] }
 0x32d   : > { %6110 = vst [vmem:[#allocation52_spill] sm:$0xff] %v5280_v54  ;;  %v5285_v34 = vpop.eup %3456  ;;  %3482 = vpow2.f32 %v1626_v62  ;;  %v1850_v55 = vrot.slane %v5238_v21, %v5172_v46  ;;  %v1636_v13 = vmul.f32 1.442695, %v1542_v24  ;;  %v1554_v10 = vmul.f32 %v6121_v49, %v5144_v42 }
 0x32e   : > { %6113 = vst [vmem:[#allocation28_spill] sm:$0xff] %v5285_v34  ;;  %v5292_v63 = vpop.eup %3458  ;;  %v5298_v32 = vpop.xlane.xlu1 %1172  ;;  %3484 = vpow2.f32 %v1628_v44  ;;  %v1865_v38 = vrot.slane %v5260_v58, %v5102_v7  ;;  %v1638_v62 = vmul.f32 1.442695, %v1543_v12  ;;  %v1555_v51 = vmul.f32 %v6122_v59, %v5146_v19  ;;  %v6124_v44 = vld [vmem:[#allocation43_spill] sm:$0xff]  ;;  %v6125_v12 = vld [vmem:[#allocation42_spill] sm:$0xff] }
 0x32f   : > { %v5300_v1 = vpop.xlane.xlu0 %1174  ;;  %v5302_v52 = vpop.eup %3460  ;;  %3486 = vpow2.f32 %v1630_v48  ;;  %v1869_v24 = vrot.slane %v5265_v8, %v5090_v47  ;;  %v1656_v42 = vmul.f32 1.442695, %v1552_v25  ;;  %v1556_v49 = vmul.f32 %v6124_v44, %v5167_v61  ;;  %v6126_v25 = vld [vmem:[#allocation45_spill] sm:$0xff] }
 0x330   : > { %6116 = vst [vmem:[#allocation17_spill] sm:$0xff] %v5302_v52  ;;  %v5307_v50 = vpop.eup %3462  ;;  %3488 = vpow2.f32 %v1632_v30  ;;  %v1846_v48 = vsel %vm1800_vm4, %v1845_v37, %v1841_v28  ;;  %v1658_v19 = vmul.f32 1.442695, %v1553_v0  ;;  %v1557_v59 = vmul.f32 %v6125_v12, %v5169_v20 }
 0x331   : > { %6118 = vst [vmem:[#allocation29_spill] sm:$0xff] %v5307_v50  ;;  %v5313_v9 = vpop.eup %3464  ;;  %3490 = vpow2.f32 %v1634_v40  ;;  %v1874_v57 = vrot.slane %v5274_v5, %v5128_v45  ;;  %v1660_v30 = vmul.f32 1.442695, %v1554_v10  ;;  %v1558_v8 = vmul.f32 %v6126_v25, %v5188_v16  ;;  %v6127_v40 = vld [vmem:[#allocation47_spill] sm:$0xff]  ;;  %v6128_v10 = vld [vmem:[#allocation46_spill] sm:$0xff] }
 0x332   : > { %6120 = vst [vmem:[#allocation55_spill] sm:$0xff] %v5313_v9  ;;  %v5319_v43 = vpop.eup %3466  ;;  %v1177_v56 = vpop.xlane.xlu1 %1176  ;;  %3492 = vpow2.f32 %v1636_v13  ;;  %v1855_v28 = vrot.slane %v5248_v14, %v5206_v36  ;;  %v1662_v37 = vmul.f32 1.442695, %v1555_v51  ;;  %v1560_v20 = vmul.f32 %v6127_v40, %v5217_v33  ;;  %v6129_v51 = vld [vmem:[#allocation50_spill] sm:$0xff] }
 0x333   : > { %v5325_v3 = vpop.xlane.xlu0 %1178  ;;  %v5327_v2 = vpop.eup %3468  ;;  %3494 = vpow2.f32 %v1638_v62  ;;  %v1870_v13 = vsel %vm1779_vm1, %v1869_v24, %v1865_v38  ;;  %v1664_v16 = vmul.f32 1.442695, %v1556_v49  ;;  %v1561_v25 = vmul.f32 %v6128_v10, %v5219_v53  ;;  %v6130_v24 = vld [vmem:[#allocation49_spill] sm:$0xff] }
 0x334   : > { %6123 = vst [vmem:[#allocation30_spill] sm:$0xff] %v5327_v2  ;;  %v5333_v58 = vpop.eup %3470  ;;  %3496 = vpow2.f32 %v1656_v42  ;;  %v1879_v62 = vrot.slane %v5280_v54, %v5133_v26  ;;  %v1666_v33 = vmul.f32 1.442695, %v1557_v59  ;;  %v1562_v40 = vmul.f32 %v6129_v51, %v5244_v23  ;;  %v6131_v59 = vld [vmem:[#allocation54_spill] sm:$0xff] }
 0x335   : > { %v5338_v21 = vpop.eup %3472  ;;  %3498 = vpow2.f32 %v1658_v19  ;;  %v1875_v4 = vsel %vm1786_vm2, %v1874_v57, %v1870_v13  ;;  %v1668_v38 = vmul.f32 1.442695, %v1558_v8  ;;  %v1563_v42 = vmul.f32 %v6130_v24, %v5246_v39  ;;  %v6132_v13 = vld [vmem:[#allocation18_spill] sm:$0xff] }
 0x336   : > { %v5344_v61 = vpop.eup %3474  ;;  %v1181_v0 = vpop.xlane.xlu1 %1180  ;;  %3500 = vpow2.f32 %v1660_v30  ;;  %v1884_v49 = vrot.slane %v5285_v34, %v5140_v60  ;;  %v1672_v19 = vmul.f32 1.442695, %v1560_v20  ;;  %v1564_v10 = vmul.f32 %v6131_v59, %v5270_v11 }
 0x337   : > { %v5350_v44 = vpop.xlane.xlu0 %1182  ;;  %v5352_v12 = vpop.eup %3476  ;;  %3502 = vpow2.f32 %v1662_v37  ;;  %v1851_v57 = vsel %vm1807_vm5, %v1850_v55, %v1846_v48  ;;  %v1860_v39 = vrot.slane %v5254_v29, %v5213_v15  ;;  %v1674_v8 = vmul.f32 1.442695, %v1561_v25 }
 0x338   : > { %v5357_v5 = vpop.eup %3478  ;;  %3504 = vpow2.f32 %v1664_v16  ;;  %v1856_v37 = vsel %vm1814_vm6, %v1855_v28, %v1851_v57  ;;  %v1676_v20 = vmul.f32 1.442695, %v1562_v40  ;;  %v1568_v11 = vmul.f32 %v6132_v13, %v1177_v56 }
 0x339   : > { %v5363_v14 = vpop.eup %3480  ;;  %3506 = vpow2.f32 %v1666_v33  ;;  %v1880_v59 = vsel %vm1793_vm3, %v1879_v62, %v1875_v4  ;;  %v1889_v55 = vrot.slane %v5292_v63, %v5172_v46  ;;  %v1678_v48 = vmul.f32 1.442695, %v1563_v42  ;;  %v6134_v42 = vld [vmem:[#allocation22_spill] sm:$0xff] }
 0x33a   : > { %v5368_v53 = vpop.eup %3482  ;;  %v1185_v23 = vpop.xlane.xlu1 %1184  ;;  %3508 = vpow2.f32 %v1668_v38  ;;  %v1885_v16 = vsel %vm1800_vm4, %v1884_v49, %v1880_v59  ;;  %v1894_v28 = vrot.slane %v5302_v52, %v5206_v36  ;;  %v1680_v25 = vmul.f32 1.442695, %v1564_v10 }
 0x33b   : > { %v5374_v51 = vpop.xlane.xlu0 %1186  ;;  %v5376_v54 = vpop.eup %3484  ;;  %3510 = vpow2.f32 %v1672_v19  ;;  %v6133_v62 = vrot.slane %v5192_v6, %v5206_v36  ;;  %v1820_v38 = vrot.slane %v5198_v27, %v5213_v15  ;;  %v1569_v49 = vmul.f32 %v6134_v42, %v5325_v3 }
 0x33c   : > { %v5381_v30 = vpop.eup %3486  ;;  %3512 = vpow2.f32 %v1674_v8  ;;  %v1861_v10 = vsel %vm1821_vm7, %v1860_v39, %v1856_v37  ;;  %v1688_v57 = vmul.f32 1.442695, %v1568_v11  ;;  %v1570_v13 = vmul.f32 %v5121_v35, %v1181_v0  ;;  %v6136_v8 = vld [vmem:[#allocation53_spill] sm:$0xff]  ;;  %v6137_v35 = vld [vmem:[#allocation23_spill] sm:$0xff] }
 0x33d   : > { %v5385_v24 = vpop.eup %3488  ;;  %v1815_v40 = vsel %vm1814_vm6, %v6133_v62, %v5288_v41  ;;  %3514 = vpow2.f32 %v1676_v20  ;;  %v1890_v52 = vsel %vm1807_vm5, %v1889_v55, %v1885_v16  ;;  %v1899_v41 = vrot.slane %v5307_v50, %v5213_v15 }
 0x33e   : > { %v5390_v34 = vpop.eup %3490  ;;  %v5395_v33 = vpop.xlane.xlu1 %1188  ;;  %3516 = vpow2.f32 %v1678_v48  ;;  %v1565_v62 = vmul.f32 %v6136_v8, %v5272_v31  ;;  %v1895_v42 = vsel %vm1814_vm6, %v1894_v28, %v1890_v52  ;;  %v1943_v39 = vrot.slane %v5313_v9, %v5102_v7  ;;  %v6139_v48 = vld [vmem:[#allocation24_spill] sm:$0xff] }
 0x33f   : > { %v5397_v56 = vpop.xlane.xlu0 %1190  ;;  %v5399_v4 = vpop.eup %3492  ;;  %3518 = vpow2.f32 %v1680_v25  ;;  %v1566_v0 = vmul.f32 %v6137_v35, %v5298_v32  ;;  %v1690_v55 = vmul.f32 1.442695, %v1569_v49  ;;  %v1571_v16 = vmul.f32 %v6139_v48, %v5350_v44  ;;  %v6140_v49 = vld [vmem:[#allocation44_spill] sm:$0xff] }
 0x340   : > { %v5410_v19 = vpop.eup %3494  ;;  %v1947_v52 = vrot.slane %v5319_v43, %v5090_v47  ;;  %3520 = vpow2.f32 %v1688_v57  ;;  %v1692_v28 = vmul.f32 1.442695, %v1570_v13  ;;  %v1572_v25 = vmul.f32 %v5153_v17, %v1185_v23  ;;  %v6142_v57 = vld [vmem:[#allocation16_spill] sm:$0xff] }
 0x341   : > { %v5414_v59 = vpop.eup %3496  ;;  %v1952_v35 = vrot.slane %v5327_v2, %v5128_v45  ;;  %v1559_v9 = vmul.f32 %v6140_v49, %v5190_v22  ;;  %v1682_v44 = vmul.f32 1.442695, %v1565_v62  ;;  %v1684_v48 = vmul.f32 1.442695, %v1566_v0 }
 0x342   : > { %6135 = vst [vmem:[#allocation20_spill] sm:$0xff] %v5414_v59  ;;  %v5421_v3 = vpop.eup %3498  ;;  %v1381_v37 = vpop.xlane.xlu1 %1380  ;;  %v1567_v13 = vmul.f32 %v6142_v57, %v5300_v1  ;;  %v1908_v23 = vrot.slane %v5368_v53, %v5090_v47  ;;  %v1694_v2 = vmul.f32 1.442695, %v1571_v16  ;;  %v1573_v22 = vmul.f32 %v5125_v18, %v5374_v51 }
 0x343   : > { %v1383_v20 = vpop.xlane.xlu0 %1382  ;;  %v5428_v11 = vpop.eup %3500  ;;  %v1446_v31 = vmax.f32 %v1381_v37, 1e-24  ;;  %v1913_v0 = vrot.slane %v5376_v54, %v5128_v45  ;;  %v1696_v1 = vmul.f32 1.442695, %v1572_v25  ;;  %v1670_v49 = vmul.f32 1.442695, %v1559_v9 }
 0x344   : > { %6138 = vst [vmem:[#allocation32_spill] sm:$0xff] %v5428_v11  ;;  %v1447_v8 = vmax.f32 %v1383_v20, 1e-24  ;;  %v5432_v50 = vpop.eup %3502  ;;  %v1904_v20 = vrot.slane %v5363_v14, %v5102_v7  ;;  %v5463_v57 = vsel %vm1821_vm7, %v1899_v41, %v1895_v42  ;;  %v1948_v51 = vsel %vm1779_vm1, %v1947_v52, %v1943_v39 }
 0x345   : > { %v5437_v32 = vpop.eup %3504  ;;  %3522 = vrsqrt.f32 %v1446_v31  ;;  %v1822_v31 = vsel %vm1821_vm7, %v1820_v38, %v1815_v40  ;;  %v1957_v40 = vrot.slane %v5333_v58, %v5133_v26  ;;  %v1686_v38 = vmul.f32 1.442695, %v1567_v13 }
 0x346   : > { %v5443_v37 = vpop.eup %3506  ;;  %3524 = vrsqrt.f32 %v1447_v8  ;;  %v1953_v9 = vsel %vm1786_vm2, %v1952_v35, %v1948_v51  ;;  %v1698_v41 = vmul.f32 1.442695, %v1573_v22  ;;  %v1918_v52 = vrot.slane %v5381_v30, %v5133_v26 }
 0x347   : > { %6141 = vst [vmem:[#allocation19_spill] sm:$0xff] %v5443_v37  ;;  %v5449_v17 = vpop.eup %3508  ;;  %3526 = vpow2.f32 %v1690_v55  ;;  %v5466_v55 = vsel %vm2096_vm8, %v1861_v10, %v1822_v31  ;;  %v1962_v10 = vrot.slane %v5338_v21, %v5140_v60  ;;  %v1923_v25 = vrot.slane %v5385_v24, %v5140_v60 }
 0x348   : > { %v5455_v62 = vpop.eup %3510  ;;  %3528 = vpow2.f32 %v1692_v28  ;;  %v1909_v28 = vsel %vm1779_vm1, %v1908_v23, %v1904_v20  ;;  %v1982_v35 = vrot.slane %v5414_v59, %v5102_v7  ;;  %v1991_v20 = vrot.slane %v5428_v11, %v5128_v45 }
 0x349   : > { %6143 = vst [vmem:[#allocation31_spill] sm:$0xff] %v5455_v62  ;;  %v5460_v8 = vpop.eup %3512  ;;  %3530 = vpow2.f32 %v1682_v44  ;;  %v1914_v39 = vsel %vm1786_vm2, %v1913_v0, %v1909_v28  ;;  %v1958_v22 = vsel %vm1793_vm3, %v1957_v40, %v1953_v9  ;;  %v1967_v31 = vrot.slane %v5344_v61, %v5172_v46 }
 0x34a   : > { %v5468_v18 = vpop.eup %3514  ;;  %3532 = vpow2.f32 %v1684_v48  ;;  %v2021_v48 = vrot.slane %v5455_v62, %v5102_v7  ;;  %v2025_v13 = vrot.slane %v5460_v8, %v5090_v47  ;;  %v1919_v51 = vsel %vm1793_vm3, %v1918_v52, %v1914_v39 }
 0x34b   : > { %v5473_v16 = vpop.eup %3516  ;;  %3534 = vpow2.f32 %v1694_v2  ;;  %v1986_v2 = vrot.slane %v5421_v3, %v5090_v47  ;;  %v2030_v0 = vrot.slane %v5468_v18, %v5128_v45  ;;  %v1928_v28 = vrot.slane %v5390_v34, %v5172_v46 }
 0x34c   : > { %6144 = vst [vmem:[#allocation35_spill] sm:$0xff] %v5473_v16  ;;  %v5477_v42 = vpop.eup %3518  ;;  %3536 = vpow2.f32 %v1696_v1  ;;  %v1924_v40 = vsel %vm1800_vm4, %v1923_v25, %v1919_v51  ;;  %v1933_v9 = vrot.slane %v5399_v4, %v5206_v36  ;;  %v1996_v39 = vrot.slane %v5432_v50, %v5133_v26 }
 0x34d   : > { %3538 = vpow2.f32 %v1670_v49  ;;  %v5490_v44 = vpop.eup %3520  ;;  %v1963_v49 = vsel %vm1800_vm4, %v1962_v10, %v1958_v22  ;;  %v1987_v62 = vsel %vm1779_vm1, %v1986_v2, %v1982_v35  ;;  %v2001_v25 = vrot.slane %v5437_v32, %v5140_v60 }
 0x34e   : > { %3540 = vpow2.f32 %v1686_v38  ;;  %v1992_v10 = vsel %vm1786_vm2, %v1991_v20, %v1987_v62  ;;  %v2040_v62 = vrot.slane %v5477_v42, %v5140_v60  ;;  %v2060_v20 = vrot.slane %v5490_v44, %v5102_v7 }
 0x34f   : > { %v3523_v23 = vpop.eup %3522  ;;  %3542 = vpow2.f32 %v1698_v41  ;;  %v1938_v7 = vrot.slane %v5410_v19, %v5213_v15 }
 0x350   : > { %v3525_v1 = vpop.eup %3524  ;;  %v1574_v38 = vmul.f32 %v3523_v23, %v5395_v33  ;;  %v2026_v33 = vsel %vm1779_vm1, %v2025_v13, %v2021_v48 }
 0x351   : > { %v5508_v11 = vpop.eup %3526  ;;  %v1575_v41 = vmul.f32 %v3525_v1, %v5397_v56  ;;  %v2031_v22 = vsel %vm1786_vm2, %v2030_v0, %v2026_v33  ;;  %v2035_v56 = vrot.slane %v5473_v16, %v5133_v26  ;;  %v1972_v0 = vrot.slane %v5352_v12, %v5206_v36 }
 0x352   : > { %v5515_v59 = vpop.eup %3528  ;;  %v1700_v52 = vmul.f32 1.442695, %v1574_v38  ;;  %v2064_v48 = vrot.slane %v5508_v11, %v5090_v47  ;;  %v1929_v1 = vsel %vm1807_vm5, %v1928_v28, %v1924_v40  ;;  %v2006_v47 = vrot.slane %v5443_v37, %v5172_v46 }
 0x353   : > { %v5521_v23 = vpop.eup %3530  ;;  %v1702_v35 = vmul.f32 1.442695, %v1575_v41  ;;  %v2069_v51 = vrot.slane %v5515_v59, %v5128_v45  ;;  %v1997_v41 = vsel %vm1793_vm3, %v1996_v39, %v1992_v10  ;;  %v1934_v33 = vsel %vm1814_vm6, %v1933_v9, %v1929_v1 }
 0x354   : > { %6145 = vst [vmem:[#allocation33_spill] sm:$0xff] %v5521_v23  ;;  %v5528_v2 = vpop.eup %3532  ;;  %3544 = vpow2.f32 %v1700_v52  ;;  %v2011_v28 = vrot.slane %v5449_v17, %v5206_v36  ;;  %v2045_v45 = vrot.slane %v5521_v23, %v5172_v46  ;;  %v2002_v40 = vsel %vm1800_vm4, %v2001_v25, %v1997_v41 }
 0x355   : > { %v5536_v13 = vpop.eup %3534  ;;  %3546 = vpow2.f32 %v1702_v35  ;;  %v2036_v35 = vsel %vm1793_vm3, %v2035_v56, %v2031_v22  ;;  %v2050_v10 = vrot.slane %v5528_v2, %v5206_v36  ;;  %v2065_v39 = vsel %vm1779_vm1, %v2064_v48, %v2060_v20 }
 0x356   : > { %v5543_v38 = vpop.eup %3536  ;;  %v2074_v9 = vrot.slane %v5536_v13, %v5133_v26  ;;  %v2041_v1 = vsel %vm1800_vm4, %v2040_v62, %v2036_v35  ;;  %v2070_v25 = vsel %vm1786_vm2, %v2069_v51, %v2065_v39  ;;  %v2099_v22 = vsel %vm2098_vm9, %v5463_v57, %v5466_v55 }
 0x357   : > { %v5551_v52 = vpop.eup %3538  ;;  %v2079_v23 = vrot.slane %v5543_v38, %v5140_v60  ;;  %v1939_v20 = vsel %vm1821_vm7, %v1938_v7, %v1934_v33  ;;  %v1968_v26 = vsel %vm1807_vm5, %v1967_v31, %v1963_v49  ;;  %v2007_v62 = vsel %vm1807_vm5, %v2006_v47, %v2002_v40 }
 0x358   : > { %v5559_v16 = vpop.eup %3540  ;;  %v2016_v56 = vrot.slane %v5551_v52, %v5213_v15  ;;  %v1977_v48 = vrot.slane %v5357_v5, %v5213_v15  ;;  %v2012_v60 = vsel %vm1814_vm6, %v2011_v28, %v2007_v62  ;;  %v2046_v51 = vsel %vm1807_vm5, %v2045_v45, %v2041_v1 }
 0x359   : > { %v5567_v37 = vpop.eup %3542  ;;  %v2055_v57 = vrot.slane %v5559_v16, %v5213_v15  ;;  %v1973_v41 = vsel %vm1814_vm6, %v1972_v0, %v1968_v26  ;;  %v2051_v7 = vsel %vm1814_vm6, %v2050_v10, %v2046_v51  ;;  %v2075_v31 = vsel %vm1793_vm3, %v2074_v9, %v2070_v25  ;;  %v6148_v51 = vld [vmem:[#allocation21_spill] sm:$0xff] }
 0x35a   : > { %v2084_v55 = vrot.slane %v5567_v37, %v5172_v46  ;;  %v2080_v49 = vsel %vm1800_vm4, %v2079_v23, %v2075_v31  ;;  %v2101_v47 = vsel %vm2100_vm10, %v1939_v20, %v2099_v22  ;;  %v2017_v28 = vsel %vm1821_vm7, %v2016_v56, %v2012_v60  ;;  %v6146_v20 = vld [vmem:[#allocation34_spill] sm:$0xff]  ;;  %v6150_v31 = vld [vmem:[#allocation25_spill] sm:$0xff] }
 0x35b   : > { %v1978_v46 = vsel %vm1821_vm7, %v1977_v48, %v1973_v41  ;;  %v2056_v0 = vsel %vm1821_vm7, %v2055_v57, %v2051_v7  ;;  %v3820_v56 = vmov 0   ;;  %v2123_v26 = vsub.s32 1, %v6146_v20  ;;  %v6147_v48 = vld [vmem:[#allocation40_spill] sm:$0xff] }
 0x35c   : > { %v2085_v23 = vsel %vm1807_vm5, %v2084_v55, %v2080_v49  ;;  %v2103_v10 = vsel %vm2102_vm11, %v1978_v46, %v2101_v47  ;;  %3289 = vset.pattern.permute.xlu1 %v3820_v56  ;;  %3288 = vset.pattern.permute.xlu0 %v3820_v56  ;;  %v6149_v55 = vld [vmem:[#allocation26_spill] sm:$0xff]  ;;  %v6151_v47 = vld [vmem:[#allocation60_spill] sm:$0xff] }
 0x35d   : > { %v2105_v9 = vsel %vm2104_vm12, %v2017_v28, %v2103_v10  ;;  %v6152_v46 = vld [vmem:[#allocation56_spill] sm:$0xff] }
 0x35e   : > { %v5593_v33 = vpop.eup %3544  ;;  %v2107_v25 = vsel %vm2106_vm13, %v2056_v0, %v2105_v9 }
 0x35f   : > { %v5596_v45 = vpop.eup %3546  ;;  %v2089_v40 = vrot.slane %v5593_v33, %v5206_v36 }
 0x360   : > { %v2094_v35 = vrot.slane %v5596_v45, %v5213_v15 }
 0x361   : > { %v2090_v39 = vsel %vm1814_vm6, %v2089_v40, %v2085_v23  ;;  %v6153_v40 = vld [vmem:[#allocation62_spill] sm:$0xff] }
 0x362   : > { %v2095_v1 = vsel %vm1821_vm7, %v2094_v35, %v2090_v39  ;;  %v6154_v35 = vld [vmem:[#allocation57_spill] sm:$0xff]  ;;  %v6155_v39 = vld [vmem:[#allocation64_spill] sm:$0xff] }
 0x363   : > { %v2109_v36 = vsel %vm2108_vm14, %v2095_v1, %v2107_v25  ;;  %v2127_v1 = vsub.s32 2, %v6146_v20  ;;  %v6156_v25 = vld [vmem:[#allocation58_spill] sm:$0xff] }
 0x364   : > { %v2112_v22 = vsel %vm2111_vm15, %v2109_v36, 0.0 }
 0x365   : > { %2113 = vadd.xlane.f32.xlu1 %v2112_v22 }
 0x3f2   : > { %v2114_v15 = vpop.xlane.xlu1 %2113 }
 0x3f3   : > { %3548 = vrcp.f32 %v2114_v15 }
 0x3fd   : > { %v5612_v62 = vpop.eup %3548 }
 0x3fe   : > { %v2120_v60 = vrot.slane %v5612_v62, %v6147_v48  ;;  %v2124_v7 = vrot.slane %v5612_v62, %v2123_v26  ;;  %v2128_v56 = vrot.slane %v5612_v62, %v2127_v1  ;;  %v6157_v26 = vld [vmem:[#allocation51_spill] sm:$0xff]  ;;  %v2135_v1 = vsub.s32 4, %v6146_v20 }
 0x400   : > { %v2158_v57 = vmul.f32 %v6148_v51, %v2120_v60  ;;  %v2157_v41 = vmul.f32 %v6149_v55, %v2120_v60  ;;  %v2159_v49 = vmul.f32 %v6150_v31, %v2120_v60  ;;  %v2166_v28 = vmul.f32 %v6151_v47, %v2124_v7  ;;  %v6160_v47 = vld [vmem:[#allocation61_spill] sm:$0xff] }
 0x401   : > { %v2160_v0 = vmul.f32 %v6152_v46, %v2120_v60  ;;  %v2168_v23 = vmul.f32 %v6153_v40, %v2124_v7  ;;  %v2161_v10 = vmul.f32 %v6154_v35, %v2120_v60  ;;  %v2170_v9 = vmul.f32 %v6155_v39, %v2124_v7 }
 0x402   : > { %2228 = vperm.xlu1 %3289, %v2158_v57   ;;  %2223 = vperm.xlu0 %3288, %v2157_v41   ;;  %v2162_v36 = vmul.f32 %v6156_v25, %v2120_v60  ;;  %v2172_v22 = vmul.f32 %v5254_v29, %v2124_v7  ;;  %v2163_v15 = vmul.f32 %v5192_v6, %v2120_v60  ;;  %v6158_v57 = vld [vmem:[#allocation52_spill] sm:$0xff]  ;;  %v6159_v41 = vld [vmem:[#allocation59_spill] sm:$0xff] }
 0x403   : > { %v2174_v48 = vmul.f32 %v6157_v26, %v2128_v56  ;;  %v2164_v51 = vmul.f32 %v5198_v27, %v2120_v60  ;;  %v2176_v55 = vmul.f32 %v6158_v57, %v2128_v56  ;;  %v2165_v31 = vmul.f32 %v6159_v41, %v2124_v7  ;;  %v6162_v27 = vld [vmem:[#allocation63_spill] sm:$0xff]  ;;  %v6167_v26 = vld [vmem:[#allocation17_spill] sm:$0xff] }
 0x404   : > { %v2178_v29 = vmul.f32 %v5292_v63, %v2128_v56  ;;  %v2167_v6 = vmul.f32 %v6160_v47, %v2124_v7  ;;  %v2169_v60 = vmul.f32 %v6162_v27, %v2124_v7  ;;  %v6165_v25 = vld [vmem:[#allocation27_spill] sm:$0xff]  ;;  %v2139_v57 = vsub.s32 5, %v6146_v20  ;;  %v6169_v47 = vld [vmem:[#allocation30_spill] sm:$0xff] }
 0x406   : > { %2233 = vperm.xlu1 %3289, %v2159_v49   ;;  %2268 = vperm.xlu0 %3288, %v2166_v28   ;;  %v2131_v49 = vsub.s32 3, %v6146_v20  ;;  %v6161_v28 = vld [vmem:[#allocation29_spill] sm:$0xff]  ;;  %v5659_v41 = vrot.slane %v5612_v62, %v2139_v57 }
 0x407   : > { %v2180_v46 = vmul.f32 %v6161_v28, %v2128_v56  ;;  %v6170_v28 = vld [vmem:[#allocation20_spill] sm:$0xff] }
 0x408   : > { %v2203_v27 = vmul.f32 %v5449_v17, %v5659_v41 }
 0x40a   : > { %2238 = vperm.xlu1 %3289, %v2160_v0   ;;  %2278 = vperm.xlu0 %3288, %v2168_v23   ;;  %v2132_v0 = vrot.slane %v5612_v62, %v2131_v49  ;;  %v6163_v23 = vld [vmem:[#allocation48_spill] sm:$0xff] }
 0x40b   : > { %v2171_v63 = vmul.f32 %v6163_v23, %v2124_v7  ;;  %v6166_v7 = vld [vmem:[#allocation28_spill] sm:$0xff]  ;;  %v6173_v23 = vld [vmem:[#allocation35_spill] sm:$0xff] }
 0x40c   : > { %v2182_v40 = vmul.f32 %v5368_v53, %v2132_v0  ;;  %v2184_v35 = vmul.f32 %v5381_v30, %v2132_v0  ;;  %v2188_v53 = vmul.f32 %v5410_v19, %v2132_v0  ;;  %v2177_v30 = vmul.f32 %v6166_v7, %v2128_v56 }
 0x40e   : > { %2243 = vperm.xlu1 %3289, %v2161_v10   ;;  %2288 = vperm.xlu0 %3288, %v2170_v9   ;;  %v6164_v10 = vld [vmem:[#allocation36_spill] sm:$0xff]  ;;  %v2186_v9 = vmul.f32 %v5390_v34, %v2132_v0  ;;  %v2179_v34 = vmul.f32 %v6167_v26, %v2128_v56 }
 0x40f   : > { %v2173_v39 = vmul.f32 %v6164_v10, %v2128_v56 }
 0x412   : > { %2248 = vperm.xlu1 %3289, %v2162_v36   ;;  %2298 = vperm.xlu0 %3288, %v2172_v22   ;;  %v2175_v36 = vmul.f32 %v6165_v25, %v2128_v56  ;;  %v2136_v22 = vrot.slane %v5612_v62, %v2135_v1  ;;  %v2143_v56 = vsub.s32 6, %v6146_v20  ;;  %v3550_v1 = vld [vmem:[%s4093_s13 + $0x8] sm:$0xff]  ;;  %v3551_v25 = vld [vmem:[%s4093_s13] sm:$0xff] }
 0x414   : > { %v2194_v19 = vmul.f32 %v5344_v61, %v2136_v22  ;;  %v5666_v61 = vrot.slane %v5612_v62, %v2143_v56 }
 0x416   : > { %2253 = vperm.xlu1 %3289, %v2163_v15   ;;  %2308 = vperm.xlu0 %3288, %v2174_v48   ;;  %v2190_v15 = vmul.f32 %v5319_v43, %v2136_v22  ;;  %v2192_v48 = vmul.f32 %v5333_v58, %v2136_v22  ;;  %v2196_v43 = vmul.f32 %v5357_v5, %v2136_v22 }
 0x417   : > { %v2185_v58 = vmul.f32 %v5385_v24, %v2132_v0  ;;  %v2187_v5 = vmul.f32 %v5399_v4, %v2132_v0  ;;  %v6168_v24 = vld [vmem:[#allocation55_spill] sm:$0xff]  ;;  %v2193_v4 = vmul.f32 %v5338_v21, %v2136_v22  ;;  %v2208_v17 = vmul.f32 %v6173_v23, %v5666_v61 }
 0x418   : > { %v2189_v49 = vmul.f32 %v6168_v24, %v2136_v22  ;;  %v6171_v21 = vld [vmem:[#allocation31_spill] sm:$0xff]  ;;  %v2212_v26 = vmul.f32 %v5559_v16, %v5666_v61 }
 0x41a   : > { %2258 = vperm.xlu1 %3289, %v2164_v51   ;;  %2318 = vperm.xlu0 %3288, %v2176_v55   ;;  %v2181_v51 = vmul.f32 %v5363_v14, %v2132_v0  ;;  %v2183_v55 = vmul.f32 %v5376_v54, %v2132_v0  ;;  %v2198_v14 = vmul.f32 %v5421_v3, %v5659_v41 }
 0x41b   : > { %v2206_v54 = vmul.f32 %v5460_v8, %v5666_v61 }
 0x41e   : > { %2263 = vperm.xlu1 %3289, %v2165_v31   ;;  %2328 = vperm.xlu0 %3288, %v2178_v29   ;;  %v2147_v31 = vsub.s32 7, %v6146_v20  ;;  %v2207_v20 = vmul.f32 %v5468_v18, %v5666_v61  ;;  %v2209_v18 = vmul.f32 %v5477_v42, %v5666_v61  ;;  %v2211_v42 = vmul.f32 %v5528_v2, %v5666_v61  ;;  %v6174_v2 = vld [vmem:[#allocation19_spill] sm:$0xff] }
 0x420   : > { %v2148_v29 = vrot.slane %v5612_v62, %v2147_v31  ;;  %v2195_v62 = vmul.f32 %v5352_v12, %v2136_v22  ;;  %v6172_v12 = vld [vmem:[#allocation32_spill] sm:$0xff]  ;;  %v3555_v31 = vld [vmem:[%s4093_s13 + $0x28] sm:$0xff] }
 0x422   : > { %2273 = vperm.xlu1 %3289, %v2167_v6   ;;  %2338 = vperm.xlu0 %3288, %v2180_v46   ;;  %v2213_v3 = vmul.f32 %v5490_v44, %v2148_v29  ;;  %v2191_v6 = vmul.f32 %v6169_v47, %v2136_v22  ;;  %v2215_v8 = vmul.f32 %v5515_v59, %v2148_v29 }
 0x423   : > { %v2201_v44 = vmul.f32 %v5437_v32, %v5659_v41  ;;  %v2197_v46 = vmul.f32 %v6170_v28, %v5659_v41  ;;  %v2205_v59 = vmul.f32 %v6171_v21, %v5666_v61  ;;  %v2217_v0 = vmul.f32 %v5543_v38, %v2148_v29 }
 0x424   : > { %v2199_v32 = vmul.f32 %v6172_v12, %v5659_v41  ;;  %v2200_v38 = vmul.f32 %v5432_v50, %v5659_v41  ;;  %v6175_v50 = vld [vmem:[#allocation33_spill] sm:$0xff]  ;;  %v2218_v10 = vmul.f32 %v5567_v37, %v2148_v29  ;;  %v3560_v12 = vld [vmem:[%s4093_s13 + $0x50] sm:$0xff] }
 0x426   : > { %2283 = vperm.xlu1 %3289, %v2169_v60   ;;  %2348 = vperm.xlu0 %3288, %v2182_v40   ;;  %v2214_v60 = vmul.f32 %v5508_v11, %v2148_v29  ;;  %v2219_v40 = vmul.f32 %v5593_v33, %v2148_v29  ;;  %v2216_v11 = vmul.f32 %v5536_v13, %v2148_v29 }
 0x427   : > { %v2210_v33 = vmul.f32 %v6175_v50, %v5666_v61 }
 0x42a   : > { %2293 = vperm.xlu1 %3289, %v2171_v63   ;;  %2358 = vperm.xlu0 %3288, %v2184_v35   ;;  %v2220_v63 = vmul.f32 %v5596_v45, %v2148_v29  ;;  %v2202_v35 = vmul.f32 %v6174_v2, %v5659_v41  ;;  %v3556_v29 = vld [vmem:[%s4093_s13 + $0x30] sm:$0xff]  ;;  %v3563_v2 = vld [vmem:[%s4093_s13 + $0x68] sm:$0xff] }
 0x42e   : > { %2303 = vperm.xlu1 %3289, %v2173_v39   ;;  %2368 = vperm.xlu0 %3288, %v2186_v9  }
 0x432   : > { %2313 = vperm.xlu1 %3289, %v2175_v36   ;;  %2378 = vperm.xlu0 %3288, %v2188_v53   ;;  %v2204_v53 = vmul.f32 %v5551_v52, %v5659_v41 }
 0x436   : > { %2323 = vperm.xlu1 %3289, %v2177_v30   ;;  %2388 = vperm.xlu0 %3288, %v2190_v15   ;;  %v3552_v30 = vld [vmem:[%s4093_s13 + $0x10] sm:$0xff] }
 0x43a   : > { %2333 = vperm.xlu1 %3289, %v2179_v34   ;;  %2398 = vperm.xlu0 %3288, %v2192_v48  }
 0x43e   : > { %2343 = vperm.xlu1 %3289, %v2181_v51   ;;  %2408 = vperm.xlu0 %3288, %v2194_v19   ;;  %v3553_v51 = vld [vmem:[%s4093_s13 + $0x18] sm:$0xff] }
 0x442   : > { %2353 = vperm.xlu1 %3289, %v2183_v55   ;;  %2418 = vperm.xlu0 %3288, %v2196_v43   ;;  %v3554_v43 = vld [vmem:[%s4093_s13 + $0x20] sm:$0xff] }
 0x446   : > { %2363 = vperm.xlu1 %3289, %v2185_v58   ;;  %2428 = vperm.xlu0 %3288, %v2198_v14  }
 0x44a   : > { %2373 = vperm.xlu1 %3289, %v2187_v5   ;;  %2468 = vperm.xlu0 %3288, %v2206_v54  }
 0x44e   : > { %2383 = vperm.xlu1 %3289, %v2189_v49   ;;  %2503 = vperm.xlu0 %3288, %v2213_v3  }
 0x452   : > { %2393 = vperm.xlu1 %3289, %v2191_v6   ;;  %2473 = vperm.xlu0 %3288, %v2207_v20   ;;  %v3557_v6 = vld [vmem:[%s4093_s13 + $0x38] sm:$0xff] }
 0x456   : > { %2403 = vperm.xlu1 %3289, %v2193_v4   ;;  %2513 = vperm.xlu0 %3288, %v2215_v8  }
 0x45a   : > { %2413 = vperm.xlu1 %3289, %v2195_v62   ;;  %2443 = vperm.xlu0 %3288, %v2201_v44   ;;  %v3558_v44 = vld [vmem:[%s4093_s13 + $0x48] sm:$0xff] }
 0x45e   : > { %2423 = vperm.xlu1 %3289, %v2197_v46   ;;  %2483 = vperm.xlu0 %3288, %v2209_v18   ;;  %v3559_v46 = vld [vmem:[%s4093_s13 + $0x40] sm:$0xff] }
 0x462   : > { %2463 = vperm.xlu1 %3289, %v2205_v59   ;;  %2523 = vperm.xlu0 %3288, %v2217_v0  }
 0x466   : > { %2433 = vperm.xlu1 %3289, %v2199_v32   ;;  %2453 = vperm.xlu0 %3288, %v2203_v27   ;;  %v3561_v27 = vld [vmem:[%s4093_s13 + $0x58] sm:$0xff] }
 0x46a   : > { %2508 = vperm.xlu1 %3289, %v2214_v60   ;;  %2493 = vperm.xlu0 %3288, %v2211_v42  }
 0x46e   : > { %2438 = vperm.xlu1 %3289, %v2200_v38   ;;  %2533 = vperm.xlu0 %3288, %v2219_v40  }
 0x472   : > { %2478 = vperm.xlu1 %3289, %v2208_v17   ;;  %2538 = vperm.xlu0 %3288, %v2220_v63   ;;  %v3562_v17 = vld [vmem:[%s4093_s13 + $0x60] sm:$0xff] }
 0x476   : > { %2518 = vperm.xlu1 %3289, %v2216_v11  }
 0x47a   : > { %2448 = vperm.xlu1 %3289, %v2202_v35  }
 0x47e   : > { %2488 = vperm.xlu1 %3289, %v2210_v33  }
 0x481   : > { %v2229_v39 = vpop.permute.xlu1 %2228  ;;  %v2224_v9 = vpop.permute.xlu0 %2223 }
 0x482   : > { %v2542_v45 = vmul.f32 %v3550_v1, %v2229_v39  ;;  %v2541_v36 = vmul.f32 %v3551_v25, %v2224_v9  ;;  %2528 = vperm.xlu1 %3289, %v2218_v10   ;;  %v3564_v9 = vld [vmem:[%s4093_s13 + $0x70] sm:$0xff]  ;;  %v3565_v25 = vld [vmem:[%s4093_s13 + $0x78] sm:$0xff] }
 0x484   : > { %v2605_v13 = vadd.f32 %v2542_v45, %v2541_v36 }
 0x485   : > { %v2234_v22 = vpop.permute.xlu1 %2233  ;;  %v2269_v7 = vpop.permute.xlu0 %2268 }
 0x486   : > { %v2543_v15 = vmul.f32 %v3552_v30, %v2234_v22  ;;  %2458 = vperm.xlu1 %3289, %v2204_v53   ;;  %v2550_v28 = vmul.f32 %v3558_v44, %v2269_v7  ;;  %v3566_v7 = vld [vmem:[%s4093_s13 + $0x88] sm:$0xff] }
 0x488   : > { %v2606_v37 = vadd.f32 %v2605_v13, %v2543_v15 }
 0x489   : > { %v2239_v34 = vpop.permute.xlu1 %2238  ;;  %v2279_v48 = vpop.permute.xlu0 %2278 }
 0x48a   : > { %v2544_v19 = vmul.f32 %v3553_v51, %v2239_v34  ;;  %2498 = vperm.xlu1 %3289, %v2212_v26   ;;  %v2552_v60 = vmul.f32 %v3561_v27, %v2279_v48  ;;  %v3567_v26 = vld [vmem:[%s4093_s13 + $0x80] sm:$0xff] }
 0x48c   : > { %v2607_v57 = vadd.f32 %v2606_v37, %v2544_v19 }
 0x48d   : > { %v2244_v55 = vpop.permute.xlu1 %2243  ;;  %v2289_v52 = vpop.permute.xlu0 %2288 }
 0x48e   : > { %v2545_v41 = vmul.f32 %v3554_v43, %v2244_v55  ;;  %v2554_v35 = vmul.f32 %v3563_v2, %v2289_v52  ;;  %v3568_v43 = vld [vmem:[%s4093_s13 + $0x90] sm:$0xff] }
 0x490   : > { %v2608_v56 = vadd.f32 %v2607_v57, %v2545_v41 }
 0x491   : > { %v2249_v58 = vpop.permute.xlu1 %2248  ;;  %v2299_v14 = vpop.permute.xlu0 %2298 }
 0x492   : > { %v2546_v5 = vmul.f32 %v3555_v31, %v2249_v58  ;;  %v2556_v36 = vmul.f32 %v3565_v25, %v2299_v14 }
 0x494   : > { %v2609_v16 = vadd.f32 %v2608_v56, %v2546_v5  ;;  %v3569_v56 = vld [vmem:[%s4093_s13 + $0x98] sm:$0xff] }
 0x495   : > { %v2254_v61 = vpop.permute.xlu1 %2253  ;;  %v2309_v54 = vpop.permute.xlu0 %2308 }
 0x496   : > { %v2547_v24 = vmul.f32 %v3556_v29, %v2254_v61  ;;  %v2558_v30 = vmul.f32 %v3566_v7, %v2309_v54  ;;  %v3570_v29 = vld [vmem:[%s4093_s13 + $0xa0] sm:$0xff] }
 0x498   : > { %v2610_v49 = vadd.f32 %v2609_v16, %v2547_v24 }
 0x499   : > { %v2259_v3 = vpop.permute.xlu1 %2258  ;;  %v2319_v47 = vpop.permute.xlu0 %2318 }
 0x49a   : > { %v2548_v20 = vmul.f32 %v3557_v6, %v2259_v3  ;;  %v2560_v58 = vmul.f32 %v3569_v56, %v2319_v47  ;;  %v3571_v3 = vld [vmem:[%s4093_s13 + $0xa8] sm:$0xff]  ;;  %v3572_v47 = vld [vmem:[%s4093_s13 + $0xb0] sm:$0xff] }
 0x49b   : > { %v3578_v56 = vld [vmem:[%s4093_s13 + $0xd0] sm:$0xff] }
 0x49c   : > { %v2611_v4 = vadd.f32 %v2610_v49, %v2548_v20 }
 0x49d   : > { %v2264_v8 = vpop.permute.xlu1 %2263  ;;  %v2329_v62 = vpop.permute.xlu0 %2328 }
 0x49e   : > { %v2549_v18 = vmul.f32 %v3559_v46, %v2264_v8  ;;  %v2612_v23 = vrot.slane %v2611_v4, 4  ;;  %v2562_v6 = vmul.f32 %v3571_v3, %v2329_v62  ;;  %v3580_v3 = vld [vmem:[%s4093_s13 + $0xd8] sm:$0xff] }
 0x4a0   : > { %v2618_v21 = vadd.f32 %v2550_v28, %v2549_v18  ;;  %v2613_v39 = vadd.f32 %v2612_v23, %v2611_v4 }
 0x4a1   : > { %v2274_v59 = vpop.permute.xlu1 %2273  ;;  %v5723_v0 = vpop.permute.xlu0 %2338 }
 0x4a2   : > { %v2551_v32 = vmul.f32 %v3560_v12, %v2274_v59  ;;  %v2614_v15 = vrot.slane %v2613_v39, 2  ;;  %v3573_v59 = vld [vmem:[%s4093_s13 + $0xb8] sm:$0xff] }
 0x4a3   : > { %v2564_v12 = vmul.f32 %v3573_v59, %v5723_v0 }
 0x4a4   : > { %v2619_v42 = vadd.f32 %v2618_v21, %v2551_v32  ;;  %v2615_v55 = vadd.f32 %v2614_v15, %v2613_v39 }
 0x4a5   : > { %v2284_v38 = vpop.permute.xlu1 %2283  ;;  %v5727_v40 = vpop.permute.xlu0 %2348 }
 0x4a6   : > { %v2553_v63 = vmul.f32 %v3562_v17, %v2284_v38  ;;  %v2620_v11 = vadd.f32 %v2619_v42, %v2552_v60  ;;  %v2616_v61 = vrot.slane %v2615_v55, 1 }
 0x4a8   : > { %v2621_v50 = vadd.f32 %v2620_v11, %v2553_v63  ;;  %v2617_v28 = vadd.f32 %v2616_v61, %v2615_v55  ;;  %v3576_v55 = vld [vmem:[%s4093_s13 + $0xc8] sm:$0xff] }
 0x4a9   : > { %v2294_v33 = vpop.permute.xlu1 %2293  ;;  %v5731_v10 = vpop.permute.xlu0 %2358 }
 0x4aa   : > { %v2555_v1 = vmul.f32 %v3564_v9, %v2294_v33  ;;  %v2622_v45 = vadd.f32 %v2621_v50, %v2554_v35 }
 0x4ac   : > { %v2623_v13 = vadd.f32 %v2622_v45, %v2555_v1 }
 0x4ad   : > { %v2304_v53 = vpop.permute.xlu1 %2303  ;;  %v5735_v22 = vpop.permute.xlu0 %2368 }
 0x4ae   : > { %v2624_v37 = vadd.f32 %v2623_v13, %v2556_v36  ;;  %v2557_v34 = vmul.f32 %v3567_v26, %v2304_v53  ;;  %v3574_v26 = vld [vmem:[%s4093_s13 + $0xc0] sm:$0xff] }
 0x4b0   : > { %v2625_v48 = vrot.slane %v2624_v37, 4  ;;  %v2631_v51 = vadd.f32 %v2558_v30, %v2557_v34 }
 0x4b1   : > { %v2314_v19 = vpop.permute.xlu1 %2313  ;;  %v5739_v57 = vpop.permute.xlu0 %2378 }
 0x4b2   : > { %v2626_v52 = vadd.f32 %v2625_v48, %v2624_v37  ;;  %v2559_v41 = vmul.f32 %v3568_v43, %v2314_v19  ;;  %v3575_v48 = vld [vmem:[%s4093_s13 + $0x100] sm:$0xff]  ;;  %v3577_v43 = vld [vmem:[%s4093_s13 + $0x108] sm:$0xff] }
 0x4b4   : > { %v2627_v14 = vrot.slane %v2626_v52, 2  ;;  %v2632_v31 = vadd.f32 %v2631_v51, %v2559_v41 }
 0x4b5   : > { %v2324_v5 = vpop.permute.xlu1 %2323  ;;  %v2389_v16 = vpop.permute.xlu0 %2388 }
 0x4b6   : > { %v2628_v54 = vadd.f32 %v2627_v14, %v2626_v52  ;;  %v2561_v24 = vmul.f32 %v3570_v29, %v2324_v5  ;;  %v2633_v49 = vadd.f32 %v2632_v31, %v2560_v58  ;;  %v2566_v52 = vmul.f32 %v3576_v55, %v5727_v40  ;;  %v3579_v14 = vld [vmem:[%s4093_s13 + $0x110] sm:$0xff]  ;;  %v3581_v40 = vld [vmem:[%s4093_s13 + $0x118] sm:$0xff] }
 0x4b7   : > { %v2574_v41 = vmul.f32 %v3577_v43, %v2389_v16  ;;  %v3593_v55 = vld [vmem:[%s4093_s13 + $0x150] sm:$0xff] }
 0x4b8   : > { %v2629_v20 = vrot.slane %v2628_v54, 1  ;;  %v2634_v4 = vadd.f32 %v2633_v49, %v2561_v24 }
 0x4b9   : > { %v2334_v8 = vpop.permute.xlu1 %2333  ;;  %v2399_v44 = vpop.permute.xlu0 %2398 }
 0x4ba   : > { %v2630_v46 = vadd.f32 %v2629_v20, %v2628_v54  ;;  %v2563_v18 = vmul.f32 %v3572_v47, %v2334_v8  ;;  %v2635_v21 = vadd.f32 %v2634_v4, %v2562_v6  ;;  %v2568_v6 = vmul.f32 %v3580_v3, %v5731_v10  ;;  %v3582_v8 = vld [vmem:[%s4093_s13 + $0xe0] sm:$0xff] }
 0x4bb   : > { %v2576_v16 = vmul.f32 %v3581_v40, %v2399_v44  ;;  %v3583_v47 = vld [vmem:[%s4093_s13 + $0x120] sm:$0xff] }
 0x4bc   : > { %v2717_v32 = vsel %vm2096_vm8, %v2630_v46, %v2617_v28  ;;  %v2636_v27 = vadd.f32 %v2635_v21, %v2563_v18 }
 0x4bd   : > { %v2344_v60 = vpop.permute.xlu1 %2343  ;;  %v2409_v42 = vpop.permute.xlu0 %2408 }
 0x4be   : > { %v2637_v38 = vadd.f32 %v2636_v27, %v2564_v12  ;;  %v2565_v34 = vmul.f32 %v3574_v26, %v2344_v60  ;;  %v3584_v27 = vld [vmem:[%s4093_s13 + $0xe8] sm:$0xff] }
 0x4bf   : > { %v2570_v44 = vmul.f32 %v3584_v27, %v5735_v22  ;;  %v3585_v60 = vld [vmem:[%s4093_s13 + $0x128] sm:$0xff] }
 0x4c0   : > { %v2638_v23 = vrot.slane %v2637_v38, 4  ;;  %v2644_v61 = vadd.f32 %v2566_v52, %v2565_v34  ;;  %v3590_v22 = vld [vmem:[%s4093_s13 + $0x148] sm:$0xff] }
 0x4c1   : > { %v2354_v62 = vpop.permute.xlu1 %2353  ;;  %v5749_v17 = vpop.permute.xlu0 %2418  ;;  %v3603_v27 = vld [vmem:[%s4093_s13 + $0x168] sm:$0xff] }
 0x4c2   : > { %v2639_v63 = vadd.f32 %v2638_v23, %v2637_v38  ;;  %v2567_v58 = vmul.f32 %v3578_v56, %v2354_v62  ;;  %v2578_v38 = vmul.f32 %v3585_v60, %v2409_v42  ;;  %v3586_v62 = vld [vmem:[%s4093_s13 + $0xf0] sm:$0xff]  ;;  %v3591_v42 = vld [vmem:[%s4093_s13 + $0x1c0] sm:$0xff] }
 0x4c4   : > { %v2640_v11 = vrot.slane %v2639_v63, 2  ;;  %v2645_v24 = vadd.f32 %v2644_v61, %v2567_v58 }
 0x4c5   : > { %v2364_v2 = vpop.permute.xlu1 %2363  ;;  %v5751_v35 = vpop.permute.xlu0 %2428 }
 0x4c6   : > { %v2641_v50 = vadd.f32 %v2640_v11, %v2639_v63  ;;  %v2569_v28 = vmul.f32 %v3582_v8, %v2364_v2  ;;  %v2646_v46 = vadd.f32 %v2645_v24, %v2568_v6  ;;  %v3587_v2 = vld [vmem:[%s4093_s13 + $0x130] sm:$0xff]  ;;  %v2582_v34 = vmul.f32 %v3590_v22, %v5751_v35  ;;  %v3595_v35 = vld [vmem:[%s4093_s13 + $0x158] sm:$0xff] }
 0x4c7   : > { %v3598_v24 = vld [vmem:[%s4093_s13 + $0x1d0] sm:$0xff] }
 0x4c8   : > { %v2642_v33 = vrot.slane %v2641_v50, 1  ;;  %v2647_v12 = vadd.f32 %v2646_v46, %v2569_v28  ;;  %v3600_v8 = vld [vmem:[%s4093_s13 + $0x190] sm:$0xff] }
 0x4c9   : > { %v2374_v0 = vpop.permute.xlu1 %2373  ;;  %v5753_v39 = vpop.permute.xlu0 %2468 }
 0x4ca   : > { %v2643_v9 = vadd.f32 %v2642_v33, %v2641_v50  ;;  %v2571_v63 = vmul.f32 %v3586_v62, %v2374_v0  ;;  %v2648_v11 = vadd.f32 %v2647_v12, %v2570_v44  ;;  %v3592_v0 = vld [vmem:[%s4093_s13 + $0x180] sm:$0xff] }
 0x4cb   : > { %v3604_v62 = vld [vmem:[%s4093_s13 + $0x1e0] sm:$0xff] }
 0x4cc   : > { %v5756_v1 = vsel %vm2098_vm9, %v2643_v9, %v2717_v32  ;;  %v3588_v9 = vld [vmem:[%s4093_s13 + $0x140] sm:$0xff]  ;;  %v2649_v43 = vadd.f32 %v2648_v11, %v2571_v63 }
 0x4cd   : > { %v2384_v45 = vpop.permute.xlu1 %2383  ;;  %v2504_v25 = vpop.permute.xlu0 %2503  ;;  %v3605_v11 = vld [vmem:[%s4093_s13 + $0x1a0] sm:$0xff] }
 0x4ce   : > { %v2573_v51 = vmul.f32 %v3575_v48, %v2384_v45  ;;  %v2597_v48 = vmul.f32 %v3591_v42, %v2504_v25  ;;  %v3596_v25 = vld [vmem:[%s4093_s13 + $0xf8] sm:$0xff]  ;;  %v3608_v42 = vld [vmem:[%s4093_s13 + $0x170] sm:$0xff] }
 0x4cf   : > { %v2572_v61 = vmul.f32 %v3596_v25, %v5739_v57  ;;  %v3612_v25 = vld [vmem:[%s4093_s13 + $0x1b0] sm:$0xff] }
 0x4d0   : > { %v2657_v54 = vadd.f32 %v2574_v41, %v2573_v51  ;;  %v3594_v41 = vld [vmem:[%s4093_s13 + $0x188] sm:$0xff] }
 0x4d1   : > { %v2394_v36 = vpop.permute.xlu1 %2393  ;;  %v5758_v13 = vpop.permute.xlu0 %2473  ;;  %v2590_v56 = vmul.f32 %v3594_v41, %v5753_v39  ;;  %v3599_v39 = vld [vmem:[%s4093_s13 + $0x1d8] sm:$0xff] }
 0x4d2   : > { %v2575_v31 = vmul.f32 %v3579_v14, %v2394_v36  ;;  %v3589_v36 = vld [vmem:[%s4093_s13 + $0x1c8] sm:$0xff]  ;;  %v2591_v57 = vmul.f32 %v3600_v8, %v5758_v13 }
 0x4d4   : > { %v2658_v49 = vadd.f32 %v2657_v54, %v2575_v31 }
 0x4d5   : > { %v2404_v53 = vpop.permute.xlu1 %2403  ;;  %v5760_v7 = vpop.permute.xlu0 %2513 }
 0x4d6   : > { %v2577_v18 = vmul.f32 %v3583_v47, %v2404_v53  ;;  %v2659_v21 = vadd.f32 %v2658_v49, %v2576_v16  ;;  %v2599_v49 = vmul.f32 %v3598_v24, %v5760_v7  ;;  %v2650_v16 = vadd.f32 %v2649_v43, %v2572_v61  ;;  %v3601_v47 = vld [vmem:[%s4093_s13 + $0x198] sm:$0xff] }
 0x4d8   : > { %v2660_v32 = vadd.f32 %v2659_v21, %v2577_v18  ;;  %v2651_v60 = vrot.slane %v2650_v16, 4 }
 0x4d9   : > { %v2414_v30 = vpop.permute.xlu1 %2413  ;;  %v5762_v37 = vpop.permute.xlu0 %2443 }
 0x4da   : > { %v2579_v50 = vmul.f32 %v3587_v2, %v2414_v30  ;;  %v2661_v33 = vadd.f32 %v2660_v32, %v2578_v38  ;;  %v2652_v22 = vadd.f32 %v2651_v60, %v2650_v16 }
 0x4dd   : > { %v2424_v15 = vpop.permute.xlu1 %2423  ;;  %v5771_v5 = vpop.permute.xlu0 %2483 }
 0x4de   : > { %v2581_v45 = vmul.f32 %v3588_v9, %v2424_v15  ;;  %v2662_v15 = vadd.f32 %v2661_v33, %v2579_v50  ;;  %v2593_v2 = vmul.f32 %v3605_v11, %v5771_v5  ;;  %v3606_v9 = vld [vmem:[%s4093_s13 + $0x1a8] sm:$0xff] }
 0x4e0   : > { %v2670_v58 = vadd.f32 %v2582_v34, %v2581_v45 }
 0x4e1   : > { %v2464_v19 = vpop.permute.xlu1 %2463  ;;  %v5776_v4 = vpop.permute.xlu0 %2523 }
 0x4e2   : > { %v2589_v51 = vmul.f32 %v3592_v0, %v2464_v19  ;;  %v3597_v19 = vld [vmem:[%s4093_s13 + $0x138] sm:$0xff]  ;;  %v2601_v13 = vmul.f32 %v3604_v62, %v5776_v4 }
 0x4e3   : > { %v2580_v54 = vmul.f32 %v3597_v19, %v5749_v17 }
 0x4e4   : > { %v2683_v3 = vadd.f32 %v2590_v56, %v2589_v51  ;;  %v3611_v56 = vld [vmem:[%s4093_s13 + $0x178] sm:$0xff] }
 0x4e5   : > { %v2434_v29 = vpop.permute.xlu1 %2433  ;;  %v5780_v10 = vpop.permute.xlu0 %2453 }
 0x4e6   : > { %v2583_v30 = vmul.f32 %v3593_v55, %v2434_v29  ;;  %v2684_v12 = vadd.f32 %v2683_v3, %v2591_v57  ;;  %v2587_v4 = vmul.f32 %v3608_v42, %v5780_v10  ;;  %v3610_v55 = vld [vmem:[%s4093_s13 + $0x1f8] sm:$0xff] }
 0x4e8   : > { %v2671_v6 = vadd.f32 %v2670_v58, %v2583_v30 }
 0x4e9   : > { %v2509_v20 = vpop.permute.xlu1 %2508  ;;  %v5794_v52 = vpop.permute.xlu0 %2493 }
 0x4ea   : > { %v2598_v53 = vmul.f32 %v3589_v36, %v2509_v20  ;;  %v2663_v20 = vadd.f32 %v2662_v15, %v2580_v54  ;;  %v3607_v36 = vld [vmem:[%s4093_s13 + $0x1e8] sm:$0xff]  ;;  %v2595_v61 = vmul.f32 %v3612_v25, %v5794_v52 }
 0x4ec   : > { %v2696_v14 = vadd.f32 %v2598_v53, %v2597_v48  ;;  %v2664_v38 = vrot.slane %v2663_v20, 4  ;;  %v3609_v48 = vld [vmem:[%s4093_s13 + $0x1f0] sm:$0xff] }
 0x4ed   : > { %v2439_v59 = vpop.permute.xlu1 %2438  ;;  %v2534_v46 = vpop.permute.xlu0 %2533 }
 0x4ee   : > { %v2584_v31 = vmul.f32 %v3595_v35, %v2439_v59  ;;  %v2697_v18 = vadd.f32 %v2696_v14, %v2599_v49  ;;  %v3602_v59 = vld [vmem:[%s4093_s13 + $0x160] sm:$0xff]  ;;  %v2665_v34 = vadd.f32 %v2664_v38, %v2663_v20  ;;  %v2603_v0 = vmul.f32 %v3609_v48, %v2534_v46  ;;  %v3613_v49 = vld [vmem:[%s4093_s13 + $0x1b8] sm:$0xff] }
 0x4ef   : > { %v2585_v7 = vmul.f32 %v3602_v59, %v5762_v37  ;;  %v2653_v35 = vrot.slane %v2652_v22, 2 }
 0x4f0   : > { %v2672_v28 = vadd.f32 %v2671_v6, %v2584_v31  ;;  %v2666_v31 = vrot.slane %v2665_v34, 2 }
 0x4f1   : > { %v2479_v23 = vpop.permute.xlu1 %2478  ;;  %v2539_v37 = vpop.permute.xlu0 %2538 }
 0x4f2   : > { %v2592_v17 = vmul.f32 %v3601_v47, %v2479_v23  ;;  %v2673_v23 = vadd.f32 %v2672_v28, %v2585_v7  ;;  %v2604_v30 = vmul.f32 %v3610_v55, %v2539_v37 }
 0x4f4   : > { %v2685_v63 = vadd.f32 %v2684_v12, %v2592_v17 }
 0x4f5   : > { %v2519_v26 = vpop.permute.xlu1 %2518 }
 0x4f6   : > { %v2600_v40 = vmul.f32 %v3599_v39, %v2519_v26  ;;  %v2686_v51 = vadd.f32 %v2685_v63, %v2593_v2  ;;  %v2654_v39 = vadd.f32 %v2653_v35, %v2652_v22 }
 0x4f8   : > { %v2698_v32 = vadd.f32 %v2697_v18, %v2600_v40  ;;  %v2667_v40 = vadd.f32 %v2666_v31, %v2665_v34  ;;  %v2655_v47 = vrot.slane %v2654_v39, 1 }
 0x4f9   : > { %v2449_v29 = vpop.permute.xlu1 %2448 }
 0x4fa   : > { %v2586_v44 = vmul.f32 %v3603_v27, %v2449_v29  ;;  %v2699_v26 = vadd.f32 %v2698_v32, %v2601_v13  ;;  %v2668_v52 = vrot.slane %v2667_v40, 1  ;;  %v2656_v12 = vadd.f32 %v2655_v47, %v2654_v39 }
 0x4fc   : > { %v2674_v33 = vadd.f32 %v2673_v23, %v2586_v44  ;;  %v2669_v32 = vadd.f32 %v2668_v52, %v2667_v40  ;;  %v2719_v62 = vsel %vm2100_vm10, %v2656_v12, %v5756_v1 }
 0x4fd   : > { %v2489_v21 = vpop.permute.xlu1 %2488 }
 0x4fe   : > { %v2594_v45 = vmul.f32 %v3606_v9, %v2489_v21  ;;  %v2675_v14 = vadd.f32 %v2674_v33, %v2587_v4  ;;  %v2720_v63 = vsel %vm2102_vm11, %v2669_v32, %v2719_v62 }
 0x500   : > { %v2687_v15 = vadd.f32 %v2686_v51, %v2594_v45 }
 0x501   : > { %v2529_v50 = vpop.permute.xlu1 %2528 }
 0x502   : > { %v2602_v53 = vmul.f32 %v3607_v36, %v2529_v50  ;;  %v2688_v6 = vadd.f32 %v2687_v15, %v2595_v61 }
 0x504   : > { %v2700_v5 = vadd.f32 %v2699_v26, %v2602_v53 }
 0x505   : > { %v2459_v43 = vpop.permute.xlu1 %2458 }
 0x506   : > { %v2701_v41 = vadd.f32 %v2700_v5, %v2603_v0  ;;  %v2588_v58 = vmul.f32 %v3611_v56, %v2459_v43 }
 0x508   : > { %v2702_v19 = vadd.f32 %v2701_v41, %v2604_v30  ;;  %v2676_v10 = vadd.f32 %v2675_v14, %v2588_v58 }
 0x509   : > { %v2499_v54 = vpop.permute.xlu1 %2498 }
 0x50a   : > { %v2703_v29 = vrot.slane %v2702_v19, 4  ;;  %v2677_v24 = vrot.slane %v2676_v10, 4  ;;  %v2596_v3 = vmul.f32 %v3613_v49, %v2499_v54 }
 0x50c   : > { %v2704_v16 = vadd.f32 %v2703_v29, %v2702_v19  ;;  %v2678_v20 = vadd.f32 %v2677_v24, %v2676_v10  ;;  %v2689_v8 = vadd.f32 %v2688_v6, %v2596_v3 }
 0x50e   : > { %v2705_v57 = vrot.slane %v2704_v16, 2  ;;  %v2679_v28 = vrot.slane %v2678_v20, 2  ;;  %v2690_v46 = vrot.slane %v2689_v8, 4 }
 0x510   : > { %v2680_v17 = vadd.f32 %v2679_v28, %v2678_v20  ;;  %v2691_v18 = vadd.f32 %v2690_v46, %v2689_v8  ;;  %v2706_v21 = vadd.f32 %v2705_v57, %v2704_v16 }
 0x512   : > { %v2681_v59 = vrot.slane %v2680_v17, 1  ;;  %v2692_v7 = vrot.slane %v2691_v18, 2  ;;  %v2707_v44 = vrot.slane %v2706_v21, 1 }
 0x514   : > { %v2693_v27 = vadd.f32 %v2692_v7, %v2691_v18  ;;  %v2682_v60 = vadd.f32 %v2681_v59, %v2680_v17  ;;  %v2708_v23 = vadd.f32 %v2707_v44, %v2706_v21 }
 0x516   : > { %v2694_v38 = vrot.slane %v2693_v27, 1  ;;  %v2721_v11 = vsel %vm2104_vm12, %v2682_v60, %v2720_v63 }
 0x518   : > { %v2695_v13 = vadd.f32 %v2694_v38, %v2693_v27 }
 0x51a   : > { %v2722_v2 = vsel %vm2106_vm13, %v2695_v13, %v2721_v11 }
 0x51b   : > { %v2723_v1 = vsel %vm2108_vm14, %v2708_v23, %v2722_v2 }
 0x51c   : > { %2725 = vst [vmem:[%s336_s10] sm:$0xff] %v2723_v1 }
 0x51d   : > { %3743 = shalt.err (!%p3740_p7)
}
 0x51e   : > { %s3744_s19 = scalar_lea.hbm %s5837_s16, 128  ;;  %s3748_s27 = scalar_lea.hbm %s5888_s6, 256 }
 0x51f   : > { %p3745_p9 = scmp.ne.s32.totalorder %s5837_s16, %s3744_s19  ;;  %p3749_p11 = scmp.lt.u32.totalorder %s5837_s16, %s5888_s6 }
 0x520   : > { %p3750_p2 = scmp.lt.u32.totalorder %s3748_s27, %s3744_s19  ;;  %p3752_p1 = scmp.lt.u32.totalorder %s3744_s19, %s5837_s16 }
 0x521   : > { %p3746_p0 = pnand %p3745_p9, %p6176_p13 }
 0x522   : > { %p3751_p12 = por %p3750_p2, %p3749_p11 }
 0x523   : > { %p3747_p8 = pneg %p3746_p0 }
 0x524   : > { %p3753_p6 = por %p3752_p1, %p3751_p12 }
 0x526   : > { %p3754_p10 = pnand %p3753_p6, %p3747_p8 }
 0x528   : > { %3757 = shalt.err (!%p3754_p10)
}
 0x529   : > { %3221 = dma.vmem_to_hbm [thread:$0]  (%p6176_p13), %s5839_s30, 128, %s5837_s16, %s2727_s25  }
 0x52a PF: > { %s2752_s14 = sand.u32 1, %s3796_s21   ;;  %p6177_p4 = scmp.ne.s32.totalorder %s5947_s28, 0 }
 0x52b   : > { %p6178_p5 = scmp.ge.s32.totalorder %s3808_s24, 2  ;;  %s2753_s7 = scalar_lea.sflag [#allocation4], %s2752_s14 }
 0x52d   : > { %p3238_p3 = pnand %p6178_p5, %p6177_p4 }
 0x52f   : > { %3791 = dma.done.wait (!%p3238_p3), %s2753_s7, 128  }
 0x530   : > { %3793 = vsyncadd (!%p3238_p3), %s2753_s7, 4294967168  ;;  %p23_p7 = scmp.ge.s32.totalorder %s3973_s8, 4   ;;  %s6179_s21 = smov %s3800_s22 }
 0x531   : > { %s6180_s22 = smov %s3804_s23  ;;  %s6181_s23 = smov %s3989_s11 }
 0x532   : > { %s6182_s24 = smov %s3973_s8  ;;  %25 = sbr.rel (!%p23_p7) target bundleno = 11 (0xb), region = 110 }
 0x539   :  { %2758 = vsyncpa [#allocation3], 1 }
 0x53a   :  { %2760 = vsyncpa [#allocation3 + $0x1], 1 }
 0x53b   :  { %2761 = vsyncpa [#allocation6], 1 }
 0x53c   :  { %2763 = vsyncpa [#allocation6 + $0x1], 1 }
 0x53d   :  { %2764 = vsyncpa [#allocation9], 1 }
 0x53e   :  { %2765 = vsyncpa [#allocation4], 1 }
 0x53f   :  { %2767 = vsyncpa [#allocation4 + $0x1], 1 }

</bundles_post_ra>
